<compile_context>
chip_gen: v7x
topology: tpu7x:2x2x1
jax: 0.10.0
libtpu: 0.0.40
codegen_flags: <defaults>
</compile_context>

<pallas_src>
import jax
import jax.numpy as jnp
from jax.experimental import pallas as pl
from jax.experimental.pallas import tpu as pltpu

LATENT_DIM = 32
BLUR_EMB_DIM = 16
IMG_PIXELS = 28 * 28          # 784
OUT_PAD = 896                 # 7 * 128 — lane-dense padded output width
EPS = 1e-5


def _slab_layout():
    """Static layout of all tiny (1, N) f32 params packed into one lane-aligned slab."""
    sizes = (("wb1", BLUR_EMB_DIM), ("bb1", BLUR_EMB_DIM), ("bb2", BLUR_EMB_DIM),
             ("b1", 256), ("b2", 512), ("g2", 512), ("be2", 512), ("s2", 512),
             ("b3", 1024), ("g3", 1024), ("be3", 1024), ("s3", 1024),
             ("b4", OUT_PAD), ("s4", OUT_PAD))
    layout, cur = {}, 0
    for name, n in sizes:
        layout[name] = (cur, n)
        cur += ((n + 127) // 128) * 128   # every segment starts lane-aligned
    return layout, cur


SLAB_LAYOUT, SLAB_WIDTH = _slab_layout()


def cond_generator_kernel(
    inv_n_ref,                      # SMEM (1,) f32 : 1 / real batch size
    z_ref, blur_ref, mask_ref,      # (Bp, L), (Bp, 1), (Bp, 1) f32
    slab_ref,                       # (1, SLAB_WIDTH) packed small f32 params
    wb2_ref,                        # (E, E) f32 blur-MLP layer-2 weight
    w1z_ref, w1b_ref,               # fc1 layer-1 weights (concat folded), bf16
    w2q_ref, w3q_ref, w4q_ref,      # int8 weights; per-column scales live in the slab
    out_ref,                        # (Bp, OUT_PAD) bf16
):
    f32, bf16 = jnp.float32, jnp.bfloat16
    inv_n = inv_n_ref[0]
    mask = mask_ref[...]                                    # 1.0 real row / 0.0 pad row

    def sl(name):
        off, n = SLAB_LAYOUT[name]
        return slab_ref[:, off:off + n]                     # static slice -> (1, n)

    leaky = lambda x: jnp.where(x > 0, x, 0.2 * x)          # LeakyReLU(0.2), f32 VPU

    def bn(h, gamma, beta):
        # Batch stats over real rows only (padded rows masked out of the reduction);
        # one-pass biased variance E[x^2] - mean^2, stats kept in f32.
        hm = h * mask
        m = jnp.sum(hm, axis=0, keepdims=True) * inv_n
        v = jnp.sum(hm * h, axis=0, keepdims=True) * inv_n - m * m
        v = jnp.maximum(v, 0.0)
        return (h - m) * jax.lax.rsqrt(v + EPS) * gamma + beta

    def qdot(x, wq_ref, scale_name, bias_name):
        # int8 weight-only quant: dequant on-chip to bf16 (exact), bf16 MXU dot with
        # f32 accumulation, per-output-channel scale + bias on the VPU.
        w_bf = wq_ref[...].astype(f32).astype(bf16)
        acc = jnp.dot(x.astype(bf16), w_bf, preferred_element_type=f32)
        return acc * sl(scale_name) + sl(bias_name)

    # ---- blur_emb_low_freq: Linear(1, E) -> ReLU -> Linear(E, E) ----
    # K=1 layer done as a VPU broadcast outer product (keeps the MXU pipeline clean).
    blur = blur_ref[...]                                                 # (Bp, 1)
    hb = jnp.maximum(blur * sl("wb1") + sl("bb1"), 0.0)                  # (Bp, E)
    blur_emb = jnp.dot(hb, wb2_ref[...], preferred_element_type=f32) + sl("bb2")

    # ---- fc1 layer 1: Linear(latent+emb, 256) + LeakyReLU ----
    # cat([z, blur_emb], dim=1) @ W1  ==  z @ W1[:latent] + blur_emb @ W1[latent:]
    h1 = (jnp.dot(z_ref[...].astype(bf16), w1z_ref[...], preferred_element_type=f32)
          + jnp.dot(blur_emb.astype(bf16), w1b_ref[...], preferred_element_type=f32)
          + sl("b1"))
    h1 = leaky(h1)

    # ---- fc1 layer 2: Linear(256, 512) + BatchNorm1d(512) + LeakyReLU ----
    h2 = leaky(bn(qdot(h1, w2q_ref, "s2", "b2"), sl("g2"), sl("be2")))

    # ---- fc1 layer 3: Linear(512, 1024) + BatchNorm1d(1024) + LeakyReLU ----
    h3 = leaky(bn(qdot(h2, w3q_ref, "s3", "b3"), sl("g3"), sl("be3")))

    # ---- fc1 layer 4: Linear(1024, 784 -> 896 padded) + Tanh ----
    out = qdot(h3, w4q_ref, "s4", "b4")
    out_ref[...] = jnp.tanh(out).astype(out_ref.dtype)


def init_params(key, latent_dim=LATENT_DIM, blur_emb_dim=BLUR_EMB_DIM):
    """Deterministic synthetic init (PyTorch-Linear-style uniform fan-in scaling).

    w2/w3/w4 are stored int8 with per-output-channel f32 scales; w1 (split for the
    folded concat) stays bf16; the blur MLP, biases, BN affine params and dequant
    scales are packed into a single lane-aligned f32 slab.  w4/b4/s4 are zero-padded
    784 -> 896 columns so the kernel's output is lane-dense.
    """
    ks = jax.random.split(key, 6)

    def lin(k, fan_in, fan_out):
        kw, kb = jax.random.split(k)
        lim = 1.0 / jnp.sqrt(jnp.float32(fan_in))
        w = jax.random.uniform(kw, (fan_in, fan_out), jnp.float32, -lim, lim)
        b = jax.random.uniform(kb, (1, fan_out), jnp.float32, -lim, lim)
        return w, b

    def quant_per_col(w):
        amax = jnp.max(jnp.abs(w), axis=0, keepdims=True)
        scale = jnp.maximum(amax, 1e-8) / 127.0
        q = jnp.clip(jnp.round(w / scale), -127.0, 127.0).astype(jnp.int8)
        return q, scale

    wb1, bb1 = lin(ks[0], 1, blur_emb_dim)
    wb2, bb2 = lin(ks[1], blur_emb_dim, blur_emb_dim)

    w1, b1 = lin(ks[2], latent_dim + blur_emb_dim, 256)
    w2, b2 = lin(ks[3], 256, 512)
    w3, b3 = lin(ks[4], 512, 1024)
    w4, b4 = lin(ks[5], 1024, IMG_PIXELS)

    w2q, s2 = quant_per_col(w2)
    w3q, s3 = quant_per_col(w3)
    w4q, s4 = quant_per_col(w4)
    pad = ((0, 0), (0, OUT_PAD - IMG_PIXELS))
    w4q, s4, b4 = jnp.pad(w4q, pad), jnp.pad(s4, pad), jnp.pad(b4, pad)

    pieces = {
        "wb1": wb1.reshape(1, blur_emb_dim), "bb1": bb1, "bb2": bb2,
        "b1": b1,
        "b2": b2, "g2": jnp.ones((1, 512), jnp.float32),
        "be2": jnp.zeros((1, 512), jnp.float32), "s2": s2,
        "b3": b3, "g3": jnp.ones((1, 1024), jnp.float32),
        "be3": jnp.zeros((1, 1024), jnp.float32), "s3": s3,
        "b4": b4, "s4": s4,
    }
    slab = jnp.zeros((1, SLAB_WIDTH), jnp.float32)
    for name, arr in pieces.items():
        off, n = SLAB_LAYOUT[name]
        assert arr.shape == (1, n), (name, arr.shape, n)
        slab = slab.at[:, off:off + n].set(arr)

    return {
        "slab": slab,
        "wb2": wb2,
        "w1z": w1[:latent_dim].astype(jnp.bfloat16),
        "w1b": w1[latent_dim:].astype(jnp.bfloat16),
        "w2q": w2q, "w3q": w3q, "w4q": w4q,
    }


@jax.jit
def cond_generator_forward(z, blur, params):
    B = z.shape[0]
    Bp = max(16, ((B + 15) // 16) * 16)           # pad batch to the bf16 sublane pack

    def pad_rows(x):
        if Bp == B:
            return x
        return jnp.pad(x, ((0, Bp - B),) + ((0, 0),) * (x.ndim - 1))

    z_p = pad_rows(z.astype(jnp.float32))                          # (Bp, latent)
    blur_p = pad_rows(blur.reshape(B, 1).astype(jnp.float32))      # (B,1,1,1) -> (Bp,1)
    mask = (jnp.arange(Bp) < B).astype(jnp.float32)[:, None]       # (Bp, 1)
    inv_n = jnp.full((1,), 1.0 / B, jnp.float32)                   # SMEM scalar

    args = (inv_n, z_p, blur_p, mask,
            params["slab"], params["wb2"], params["w1z"], params["w1b"],
            params["w2q"], params["w3q"], params["w4q"])

    vmem = pl.BlockSpec(memory_space=pltpu.MemorySpace.VMEM)
    smem = pl.BlockSpec(memory_space=pltpu.MemorySpace.SMEM)
    in_specs = [smem] + [vmem] * (len(args) - 1)

    flops = 2 * Bp * (LATENT_DIM * 256 + BLUR_EMB_DIM * 256
                      + BLUR_EMB_DIM * BLUR_EMB_DIM
                      + 256 * 512 + 512 * 1024 + 1024 * OUT_PAD)
    transcendentals = Bp * OUT_PAD + 512 + 1024
    bytes_accessed = (sum(int(a.size) * a.dtype.itemsize for a in args)
                      + Bp * OUT_PAD * 2)

    img_flat = pl.pallas_call(
        cond_generator_kernel,
        out_shape=jax.ShapeDtypeStruct((Bp, OUT_PAD), jnp.bfloat16),
        in_specs=in_specs,
        out_specs=vmem,
        compiler_params=pltpu.CompilerParams(vmem_limit_bytes=32 << 20),
        cost_estimate=pl.CostEstimate(
            flops=flops,
            transcendentals=transcendentals,
            bytes_accessed=bytes_accessed),
    )(*args)

    # Drop batch/lane padding; img.view(B, 1, 28, 28) — NCHW like the PyTorch module.
    return img_flat[:B, :IMG_PIXELS].astype(jnp.float32).reshape(B, 1, 28, 28)


if __name__ == "__main__":
    key = jax.random.PRNGKey(0)
    kp, kz, kb = jax.random.split(key, 3)

    params = init_params(kp)

    B = 2
    z = jax.random.normal(kz, (B, LATENT_DIM), jnp.float32)
    blur = jax.random.uniform(kb, (B, 1, 1, 1), jnp.float32)   # matches torch blur input

    img = cond_generator_forward(z, blur, params)
    jax.block_until_ready(img)

    assert img.shape == (B, 1, 28, 28)
    assert bool(jnp.all(jnp.isfinite(img)))
    assert bool(jnp.all(jnp.abs(img) <= 1.0))  # tanh output range
    print("KERNEL_OK")
</pallas_src>

<mosaic_0001>
module attributes {stable_mosaic.version = 11 : i64} {
  func.func @cond_generator_kernel(%arg0: memref<1xf32, #tpu.memory_space<smem>>, %arg1: memref<16x32xf32, #tpu.memory_space<vmem>>, %arg2: memref<16x1xf32, #tpu.memory_space<vmem>>, %arg3: memref<16x1xf32, #tpu.memory_space<vmem>>, %arg4: memref<1x8576xf32, #tpu.memory_space<vmem>>, %arg5: memref<16x16xf32, #tpu.memory_space<vmem>>, %arg6: memref<32x256xbf16, #tpu.memory_space<vmem>>, %arg7: memref<16x256xbf16, #tpu.memory_space<vmem>>, %arg8: memref<256x512xi8, #tpu.memory_space<vmem>>, %arg9: memref<512x1024xi8, #tpu.memory_space<vmem>>, %arg10: memref<1024x896xi8, #tpu.memory_space<vmem>>, %arg11: memref<16x896xbf16, #tpu.memory_space<vmem>>) attributes {dimension_semantics = [], scalar_prefetch = 0 : i64, scratch_operands = 0 : i64, tpu.core_type = #tpu.core_type<tc>} {
    %c0 = arith.constant 0 : index
    %0 = memref.load %arg0[%c0] : memref<1xf32, #tpu.memory_space<smem>>
    %c0_0 = arith.constant 0 : index
    %c0_1 = arith.constant 0 : index
    %1 = vector.load %arg3[%c0_0, %c0_1] : memref<16x1xf32, #tpu.memory_space<vmem>>, vector<16x1xf32>
    %c0_2 = arith.constant 0 : index
    %c0_3 = arith.constant 0 : index
    %2 = vector.load %arg2[%c0_2, %c0_3] : memref<16x1xf32, #tpu.memory_space<vmem>>, vector<16x1xf32>
    %c0_4 = arith.constant 0 : index
    %c0_5 = arith.constant 0 : index
    %3 = vector.load %arg4[%c0_4, %c0_5] : memref<1x8576xf32, #tpu.memory_space<vmem>>, vector<1x16xf32>
    %4 = vector.broadcast %2 : vector<16x1xf32> to vector<16x16xf32>
    %5 = vector.broadcast %3 : vector<1x16xf32> to vector<16x16xf32>
    %6 = arith.mulf %4, %5 : vector<16x16xf32>
    %c0_6 = arith.constant 0 : index
    %c128 = arith.constant 128 : index
    %7 = vector.load %arg4[%c0_6, %c128] : memref<1x8576xf32, #tpu.memory_space<vmem>>, vector<1x16xf32>
    %8 = vector.broadcast %7 : vector<1x16xf32> to vector<16x16xf32>
    %9 = arith.addf %6, %8 : vector<16x16xf32>
    %cst = arith.constant 0.000000e+00 : f32
    %10 = vector.broadcast %cst : f32 to vector<16x16xf32>
    %11 = arith.maximumf %9, %10 : vector<16x16xf32>
    %c0_7 = arith.constant 0 : index
    %c0_8 = arith.constant 0 : index
    %12 = vector.load %arg5[%c0_7, %c0_8] : memref<16x16xf32, #tpu.memory_space<vmem>>, vector<16x16xf32>
    %cst_9 = arith.constant dense<0.000000e+00> : vector<16x16xf32>
    %13 = tpu.matmul %11, %12, %cst_9 {dimension_numbers = #tpu.dot_dimension_numbers<[1], [0], [0], [1], [0, 0, 1, 1], [], []>} : vector<16x16xf32>, vector<16x16xf32>, vector<16x16xf32> -> vector<16x16xf32>
    %c0_10 = arith.constant 0 : index
    %c256 = arith.constant 256 : index
    %14 = vector.load %arg4[%c0_10, %c256] : memref<1x8576xf32, #tpu.memory_space<vmem>>, vector<1x16xf32>
    %15 = vector.broadcast %14 : vector<1x16xf32> to vector<16x16xf32>
    %16 = arith.addf %13, %15 : vector<16x16xf32>
    %c0_11 = arith.constant 0 : index
    %c0_12 = arith.constant 0 : index
    %17 = vector.load %arg1[%c0_11, %c0_12] : memref<16x32xf32, #tpu.memory_space<vmem>>, vector<16x32xf32>
    %18 = arith.truncf %17 : vector<16x32xf32> to vector<16x32xbf16>
    %c0_13 = arith.constant 0 : index
    %c0_14 = arith.constant 0 : index
    %19 = vector.load %arg6[%c0_13, %c0_14] : memref<32x256xbf16, #tpu.memory_space<vmem>>, vector<32x256xbf16>
    %cst_15 = arith.constant dense<0.000000e+00> : vector<16x256xf32>
    %20 = tpu.matmul %18, %19, %cst_15 {dimension_numbers = #tpu.dot_dimension_numbers<[1], [0], [0], [1], [0, 0, 1, 1], [], []>} : vector<16x32xbf16>, vector<32x256xbf16>, vector<16x256xf32> -> vector<16x256xf32>
    %21 = arith.truncf %16 : vector<16x16xf32> to vector<16x16xbf16>
    %c0_16 = arith.constant 0 : index
    %c0_17 = arith.constant 0 : index
    %22 = vector.load %arg7[%c0_16, %c0_17] : memref<16x256xbf16, #tpu.memory_space<vmem>>, vector<16x256xbf16>
    %cst_18 = arith.constant dense<0.000000e+00> : vector<16x256xf32>
    %23 = tpu.matmul %21, %22, %cst_18 {dimension_numbers = #tpu.dot_dimension_numbers<[1], [0], [0], [1], [0, 0, 1, 1], [], []>} : vector<16x16xbf16>, vector<16x256xbf16>, vector<16x256xf32> -> vector<16x256xf32>
    %24 = arith.addf %20, %23 : vector<16x256xf32>
    %c0_19 = arith.constant 0 : index
    %c384 = arith.constant 384 : index
    %25 = vector.load %arg4[%c0_19, %c384] : memref<1x8576xf32, #tpu.memory_space<vmem>>, vector<1x256xf32>
    %26 = vector.broadcast %25 : vector<1x256xf32> to vector<16x256xf32>
    %27 = arith.addf %24, %26 : vector<16x256xf32>
    %cst_20 = arith.constant 0.000000e+00 : f32
    %28 = vector.broadcast %cst_20 : f32 to vector<16x256xf32>
    %29 = arith.cmpf ogt, %27, %28 : vector<16x256xf32>
    %cst_21 = arith.constant 2.000000e-01 : f32
    %30 = vector.broadcast %cst_21 : f32 to vector<16x256xf32>
    %31 = arith.mulf %30, %27 : vector<16x256xf32>
    %32 = arith.select %29, %27, %31 : vector<16x256xi1>, vector<16x256xf32>
    %c0_22 = arith.constant 0 : index
    %c0_23 = arith.constant 0 : index
    %33 = vector.load %arg8[%c0_22, %c0_23] : memref<256x512xi8, #tpu.memory_space<vmem>>, vector<256x512xi8>
    %34 = arith.sitofp %33 : vector<256x512xi8> to vector<256x512xf32>
    %35 = arith.truncf %34 : vector<256x512xf32> to vector<256x512xbf16>
    %36 = arith.truncf %32 : vector<16x256xf32> to vector<16x256xbf16>
    %cst_24 = arith.constant dense<0.000000e+00> : vector<16x512xf32>
    %37 = tpu.matmul %36, %35, %cst_24 {dimension_numbers = #tpu.dot_dimension_numbers<[1], [0], [0], [1], [0, 0, 1, 1], [], []>} : vector<16x256xbf16>, vector<256x512xbf16>, vector<16x512xf32> -> vector<16x512xf32>
    %c0_25 = arith.constant 0 : index
    %c2176 = arith.constant 2176 : index
    %38 = vector.load %arg4[%c0_25, %c2176] : memref<1x8576xf32, #tpu.memory_space<vmem>>, vector<1x512xf32>
    %39 = vector.broadcast %38 : vector<1x512xf32> to vector<16x512xf32>
    %40 = arith.mulf %37, %39 : vector<16x512xf32>
    %c0_26 = arith.constant 0 : index
    %c640 = arith.constant 640 : index
    %41 = vector.load %arg4[%c0_26, %c640] : memref<1x8576xf32, #tpu.memory_space<vmem>>, vector<1x512xf32>
    %42 = vector.broadcast %41 : vector<1x512xf32> to vector<16x512xf32>
    %43 = arith.addf %40, %42 : vector<16x512xf32>
    %c0_27 = arith.constant 0 : index
    %c1152 = arith.constant 1152 : index
    %44 = vector.load %arg4[%c0_27, %c1152] : memref<1x8576xf32, #tpu.memory_space<vmem>>, vector<1x512xf32>
    %c0_28 = arith.constant 0 : index
    %c1664 = arith.constant 1664 : index
    %45 = vector.load %arg4[%c0_28, %c1664] : memref<1x8576xf32, #tpu.memory_space<vmem>>, vector<1x512xf32>
    %46 = vector.broadcast %1 : vector<16x1xf32> to vector<16x512xf32>
    %47 = arith.mulf %43, %46 : vector<16x512xf32>
    %cst_29 = arith.constant dense<0.000000e+00> : vector<512xf32>
    %48 = vector.multi_reduction <add>, %47, %cst_29 [0] : vector<16x512xf32> to vector<512xf32>
    %49 = vector.shape_cast %48 : vector<512xf32> to vector<1x512xf32>
    %50 = vector.broadcast %0 : f32 to vector<1x512xf32>
    %51 = arith.mulf %49, %50 : vector<1x512xf32>
    %52 = arith.mulf %47, %43 : vector<16x512xf32>
    %cst_30 = arith.constant dense<0.000000e+00> : vector<512xf32>
    %53 = vector.multi_reduction <add>, %52, %cst_30 [0] : vector<16x512xf32> to vector<512xf32>
    %54 = vector.shape_cast %53 : vector<512xf32> to vector<1x512xf32>
    %55 = vector.broadcast %0 : f32 to vector<1x512xf32>
    %56 = arith.mulf %54, %55 : vector<1x512xf32>
    %57 = arith.mulf %51, %51 : vector<1x512xf32>
    %58 = arith.subf %56, %57 : vector<1x512xf32>
    %cst_31 = arith.constant 0.000000e+00 : f32
    %59 = vector.broadcast %cst_31 : f32 to vector<1x512xf32>
    %60 = arith.maximumf %58, %59 : vector<1x512xf32>
    %61 = vector.broadcast %51 : vector<1x512xf32> to vector<16x512xf32>
    %62 = arith.subf %43, %61 : vector<16x512xf32>
    %cst_32 = arith.constant 9.99999974E-6 : f32
    %63 = vector.broadcast %cst_32 : f32 to vector<1x512xf32>
    %64 = arith.addf %60, %63 : vector<1x512xf32>
    %65 = math.rsqrt %64 : vector<1x512xf32>
    %66 = vector.broadcast %65 : vector<1x512xf32> to vector<16x512xf32>
    %67 = arith.mulf %62, %66 : vector<16x512xf32>
    %68 = vector.broadcast %44 : vector<1x512xf32> to vector<16x512xf32>
    %69 = arith.mulf %67, %68 : vector<16x512xf32>
    %70 = vector.broadcast %45 : vector<1x512xf32> to vector<16x512xf32>
    %71 = arith.addf %69, %70 : vector<16x512xf32>
    %cst_33 = arith.constant 0.000000e+00 : f32
    %72 = vector.broadcast %cst_33 : f32 to vector<16x512xf32>
    %73 = arith.cmpf ogt, %71, %72 : vector<16x512xf32>
    %cst_34 = arith.constant 2.000000e-01 : f32
    %74 = vector.broadcast %cst_34 : f32 to vector<16x512xf32>
    %75 = arith.mulf %74, %71 : vector<16x512xf32>
    %76 = arith.select %73, %71, %75 : vector<16x512xi1>, vector<16x512xf32>
    %c0_35 = arith.constant 0 : index
    %c0_36 = arith.constant 0 : index
    %77 = vector.load %arg9[%c0_35, %c0_36] : memref<512x1024xi8, #tpu.memory_space<vmem>>, vector<512x1024xi8>
    %78 = arith.sitofp %77 : vector<512x1024xi8> to vector<512x1024xf32>
    %79 = arith.truncf %78 : vector<512x1024xf32> to vector<512x1024xbf16>
    %80 = arith.truncf %76 : vector<16x512xf32> to vector<16x512xbf16>
    %cst_37 = arith.constant dense<0.000000e+00> : vector<16x1024xf32>
    %81 = tpu.matmul %80, %79, %cst_37 {dimension_numbers = #tpu.dot_dimension_numbers<[1], [0], [0], [1], [0, 0, 1, 1], [], []>} : vector<16x512xbf16>, vector<512x1024xbf16>, vector<16x1024xf32> -> vector<16x1024xf32>
    %c0_38 = arith.constant 0 : index
    %c5760 = arith.constant 5760 : index
    %82 = vector.load %arg4[%c0_38, %c5760] : memref<1x8576xf32, #tpu.memory_space<vmem>>, vector<1x1024xf32>
    %83 = vector.broadcast %82 : vector<1x1024xf32> to vector<16x1024xf32>
    %84 = arith.mulf %81, %83 : vector<16x1024xf32>
    %c0_39 = arith.constant 0 : index
    %c2688 = arith.constant 2688 : index
    %85 = vector.load %arg4[%c0_39, %c2688] : memref<1x8576xf32, #tpu.memory_space<vmem>>, vector<1x1024xf32>
    %86 = vector.broadcast %85 : vector<1x1024xf32> to vector<16x1024xf32>
    %87 = arith.addf %84, %86 : vector<16x1024xf32>
    %c0_40 = arith.constant 0 : index
    %c3712 = arith.constant 3712 : index
    %88 = vector.load %arg4[%c0_40, %c3712] : memref<1x8576xf32, #tpu.memory_space<vmem>>, vector<1x1024xf32>
    %c0_41 = arith.constant 0 : index
    %c4736 = arith.constant 4736 : index
    %89 = vector.load %arg4[%c0_41, %c4736] : memref<1x8576xf32, #tpu.memory_space<vmem>>, vector<1x1024xf32>
    %90 = vector.broadcast %1 : vector<16x1xf32> to vector<16x1024xf32>
    %91 = arith.mulf %87, %90 : vector<16x1024xf32>
    %cst_42 = arith.constant dense<0.000000e+00> : vector<1024xf32>
    %92 = vector.multi_reduction <add>, %91, %cst_42 [0] : vector<16x1024xf32> to vector<1024xf32>
    %93 = vector.shape_cast %92 : vector<1024xf32> to vector<1x1024xf32>
    %94 = vector.broadcast %0 : f32 to vector<1x1024xf32>
    %95 = arith.mulf %93, %94 : vector<1x1024xf32>
    %96 = arith.mulf %91, %87 : vector<16x1024xf32>
    %cst_43 = arith.constant dense<0.000000e+00> : vector<1024xf32>
    %97 = vector.multi_reduction <add>, %96, %cst_43 [0] : vector<16x1024xf32> to vector<1024xf32>
    %98 = vector.shape_cast %97 : vector<1024xf32> to vector<1x1024xf32>
    %99 = vector.broadcast %0 : f32 to vector<1x1024xf32>
    %100 = arith.mulf %98, %99 : vector<1x1024xf32>
    %101 = arith.mulf %95, %95 : vector<1x1024xf32>
    %102 = arith.subf %100, %101 : vector<1x1024xf32>
    %cst_44 = arith.constant 0.000000e+00 : f32
    %103 = vector.broadcast %cst_44 : f32 to vector<1x1024xf32>
    %104 = arith.maximumf %102, %103 : vector<1x1024xf32>
    %105 = vector.broadcast %95 : vector<1x1024xf32> to vector<16x1024xf32>
    %106 = arith.subf %87, %105 : vector<16x1024xf32>
    %cst_45 = arith.constant 9.99999974E-6 : f32
    %107 = vector.broadcast %cst_45 : f32 to vector<1x1024xf32>
    %108 = arith.addf %104, %107 : vector<1x1024xf32>
    %109 = math.rsqrt %108 : vector<1x1024xf32>
    %110 = vector.broadcast %109 : vector<1x1024xf32> to vector<16x1024xf32>
    %111 = arith.mulf %106, %110 : vector<16x1024xf32>
    %112 = vector.broadcast %88 : vector<1x1024xf32> to vector<16x1024xf32>
    %113 = arith.mulf %111, %112 : vector<16x1024xf32>
    %114 = vector.broadcast %89 : vector<1x1024xf32> to vector<16x1024xf32>
    %115 = arith.addf %113, %114 : vector<16x1024xf32>
    %cst_46 = arith.constant 0.000000e+00 : f32
    %116 = vector.broadcast %cst_46 : f32 to vector<16x1024xf32>
    %117 = arith.cmpf ogt, %115, %116 : vector<16x1024xf32>
    %cst_47 = arith.constant 2.000000e-01 : f32
    %118 = vector.broadcast %cst_47 : f32 to vector<16x1024xf32>
    %119 = arith.mulf %118, %115 : vector<16x1024xf32>
    %120 = arith.select %117, %115, %119 : vector<16x1024xi1>, vector<16x1024xf32>
    %c0_48 = arith.constant 0 : index
    %c0_49 = arith.constant 0 : index
    %121 = vector.load %arg10[%c0_48, %c0_49] : memref<1024x896xi8, #tpu.memory_space<vmem>>, vector<1024x896xi8>
    %122 = arith.sitofp %121 : vector<1024x896xi8> to vector<1024x896xf32>
    %123 = arith.truncf %122 : vector<1024x896xf32> to vector<1024x896xbf16>
    %124 = arith.truncf %120 : vector<16x1024xf32> to vector<16x1024xbf16>
    %cst_50 = arith.constant dense<0.000000e+00> : vector<16x896xf32>
    %125 = tpu.matmul %124, %123, %cst_50 {dimension_numbers = #tpu.dot_dimension_numbers<[1], [0], [0], [1], [0, 0, 1, 1], [], []>} : vector<16x1024xbf16>, vector<1024x896xbf16>, vector<16x896xf32> -> vector<16x896xf32>
    %c0_51 = arith.constant 0 : index
    %c7680 = arith.constant 7680 : index
    %126 = vector.load %arg4[%c0_51, %c7680] : memref<1x8576xf32, #tpu.memory_space<vmem>>, vector<1x896xf32>
    %127 = vector.broadcast %126 : vector<1x896xf32> to vector<16x896xf32>
    %128 = arith.mulf %125, %127 : vector<16x896xf32>
    %c0_52 = arith.constant 0 : index
    %c6784 = arith.constant 6784 : index
    %129 = vector.load %arg4[%c0_52, %c6784] : memref<1x8576xf32, #tpu.memory_space<vmem>>, vector<1x896xf32>
    %130 = vector.broadcast %129 : vector<1x896xf32> to vector<16x896xf32>
    %131 = arith.addf %128, %130 : vector<16x896xf32>
    %132 = math.tanh %131 : vector<16x896xf32>
    %133 = arith.truncf %132 : vector<16x896xf32> to vector<16x896xbf16>
    %c0_53 = arith.constant 0 : index
    %c0_54 = arith.constant 0 : index
    %134 = vector.load %arg11[%c0_53, %c0_54] : memref<16x896xbf16, #tpu.memory_space<vmem>>, vector<16x896xbf16>
    tpu.vector_store %arg11[%c0_53, %c0_54], %133 {strides = array<i32>} : memref<16x896xbf16, #tpu.memory_space<vmem>>, vector<16x896xbf16>,
    return
  }
}

</mosaic_0001>

<bundles_post_ra>
// kernel: cond_generator_forward.1
= control target key start
LH: loop header
LB: loop body
LE: loop exit
PB: predicated region body
PF: predicated region fallthrough
CT: control target
= control target key end

     0   :  { %17 = vsyncpa [#allocation4], 0  ;;  %s4991_s0 = inlined_call_operand.<no memory space> [shape: f32[1], index: 0, kind: input, shape index: {}]   ;;  %s4992_s1 = inlined_call_operand.vmem [shape: f32[16,32], index: 1, kind: input, shape index: {}]   ;;  %s4993_s2 = inlined_call_operand.vmem [shape: f32[16,1], index: 2, kind: input, shape index: {}]   ;;  %s4994_s3 = inlined_call_operand.vmem [shape: f32[16,1], index: 3, kind: input, shape index: {}]   ;;  %s4995_s4 = inlined_call_operand.vmem [shape: f32[1,8576], index: 4, kind: input, shape index: {}]   ;;  %s4996_s5 = inlined_call_operand.vmem [shape: f32[16,16], index: 5, kind: input, shape index: {}]   ;;  %s4997_s6 = inlined_call_operand.hbm [shape: bf16[32,256], index: 6, kind: input, shape index: {}]   ;;  %s4998_s7 = inlined_call_operand.hbm [shape: bf16[16,256], index: 7, kind: input, shape index: {}]   ;;  %s4999_s8 = inlined_call_operand.hbm [shape: s8[256,512], index: 8, kind: input, shape index: {}]   ;;  %s5000_s9 = inlined_call_operand.hbm [shape: s8[512,1024], index: 9, kind: input, shape index: {}]   ;;  %s5001_s10 = inlined_call_operand.hbm [shape: s8[1024,896], index: 10, kind: input, shape index: {}]   ;;  %s5002_s11 = inlined_call_operand.vmem [shape: bf16[16,896], index: 11, kind: output, shape index: {}]  }
   0x1   :  { %18 = vsyncpa [#allocation6], 0 }
   0x2   :  { %19 = vsyncpa [#allocation9], 0  ;;  %s4011_s17 = smov [#allocation5]   ;;  %s4012_s19 = smov [#allocation8]  }
   0x3   :  { %s49_s18 = sshll.u32 %s4011_s17, 4  ;;  %s73_s20 = sshll.u32 %s4012_s19, 4  ;;  %s50_s18 = int_to_ptr.vmem [resolvable:$true] %s49_s18  ;;  %s4085_s20 = int_to_ptr.vmem [resolvable:$true] %s73_s20 }
   0x4   :  { %s3895_s23 = scalar_lea.hbm %s4998_s7, 256 }
   0x5   :  { %p3896_p0 = scmp.ne.s32.totalorder %s4998_s7, %s3895_s23  ;;  %p3899_p1 = scmp.lt.u32.totalorder %s3895_s23, %s4998_s7 }
   0x7   :  { %p3901_p2 = pnand %p3899_p1, %p3896_p0 }
   0x9   :  { %3904 = shalt.err (!%p3901_p2)
}
   0xa   :  { %s3905_s28 = scalar_lea.vmem %s50_s18, 256  ;;  %p3910_p4 = scmp.lt.s32.totalorder %s50_s18, %s50_s18 }
   0xb   :  { %p3906_p3 = scmp.ne.s32.totalorder %s50_s18, %s3905_s28  ;;  %p3911_p5 = scmp.lt.s32.totalorder %s3905_s28, %s3905_s28 }
   0xd   :  { %p3912_p6 = por %p3911_p5, %p3910_p4 }
   0xf   :  { %p3913_p7 = pnand %p3912_p6, %p3906_p3 }
  0x11   :  { %3916 = shalt.err (!%p3913_p7)
}
  0x12   :  { %s4013_s29 = smov 128   ;;  %s4014_s30 = smov 8  }
  0x13   :  { %55 = dma.hbm_to_vmem [thread:$0]  %s4998_s7, 256, %s50_s18, [#allocation6], %s4013_s29, %s4013_s29, %s4014_s30  }
  0x14   :  { %s3917_s16 = scalar_lea.hbm %s5000_s9, 16384 }
  0x15   :  { %p3918_p8 = scmp.ne.s32.totalorder %s5000_s9, %s3917_s16  ;;  %p3921_p9 = scmp.lt.u32.totalorder %s3917_s16, %s5000_s9 }
  0x17   :  { %p3923_p10 = pnand %p3921_p9, %p3918_p8 }
  0x19   :  { %3926 = shalt.err (!%p3923_p10)
}
  0x1a   :  { %s3927_s23 = scalar_lea.vmem %s4085_s20, 16384  ;;  %p3932_p12 = scmp.lt.s32.totalorder %s4085_s20, %s4085_s20 }
  0x1b   :  { %p3928_p11 = scmp.ne.s32.totalorder %s4085_s20, %s3927_s23  ;;  %p3933_p13 = scmp.lt.s32.totalorder %s3927_s23, %s3927_s23 }
  0x1d   :  { %p3934_p0 = por %p3933_p13, %p3932_p12 }
  0x1f   :  { %p3935_p1 = pnand %p3934_p0, %p3928_p11 }
  0x21   :  { %3938 = shalt.err (!%p3935_p1)
}
  0x22   :  { %s4015_s7 = smov 1024   ;;  %s4016_s18 = smov 64  }
  0x23   :  { %79 = dma.hbm_to_vmem [thread:$0]  %s5000_s9, 16384, %s4085_s20, [#allocation9], %s4015_s7, %s4015_s7, %s4016_s18  }
  0x24   :  { %s4017_s26 = smov [#allocation3]   ;;  %s4018_s28 = smov [#allocation7]  }
  0x25   :  { %s37_s27 = sshll.u32 %s4017_s26, 4  ;;  %s61_s12 = sshll.u32 %s4018_s28, 4  ;;  %s38_s27 = int_to_ptr.vmem [resolvable:$true] %s37_s27  ;;  %s4119_s12 = int_to_ptr.vmem [resolvable:$true] %s61_s12 }
  0x26   :  { %s3939_s15 = scalar_lea.hbm %s4997_s6, 512 }
  0x27   :  { %p3940_p2 = scmp.ne.s32.totalorder %s4997_s6, %s3939_s15  ;;  %p3943_p3 = scmp.lt.u32.totalorder %s3939_s15, %s4997_s6 }
  0x29   :  { %p3945_p4 = pnand %p3943_p3, %p3940_p2 }
  0x2b   :  { %3948 = shalt.err (!%p3945_p4)
}
  0x2c   :  { %s3949_s9 = scalar_lea.vmem %s38_s27, 512  ;;  %p3954_p6 = scmp.lt.s32.totalorder %s38_s27, %s38_s27 }
  0x2d   :  { %p3950_p5 = scmp.ne.s32.totalorder %s38_s27, %s3949_s9  ;;  %p3955_p7 = scmp.lt.s32.totalorder %s3949_s9, %s3949_s9 }
  0x2f   :  { %p3956_p8 = por %p3955_p7, %p3954_p6 }
  0x31   :  { %p3957_p9 = pnand %p3956_p8, %p3950_p5 }
  0x33   :  { %3960 = shalt.err (!%p3957_p9)
}
  0x34   :  { %43 = dma.hbm_to_vmem [thread:$0]  %s4997_s6, 512, %s38_s27, [#allocation4], %s4013_s29, %s4013_s29, %s4014_s30  }
  0x35   :  { %s3961_s18 = scalar_lea.hbm %s4999_s8, 4096 }
  0x36   :  { %p3962_p10 = scmp.ne.s32.totalorder %s4999_s8, %s3961_s18  ;;  %p3965_p11 = scmp.lt.u32.totalorder %s3961_s18, %s4999_s8 }
  0x38   :  { %p3967_p12 = pnand %p3965_p11, %p3962_p10 }
  0x3a   :  { %3970 = shalt.err (!%p3967_p12)
}
  0x3b   :  { %s3971_s13 = scalar_lea.vmem %s4119_s12, 4096  ;;  %p3976_p0 = scmp.lt.s32.totalorder %s4119_s12, %s4119_s12 }
  0x3c   :  { %p3972_p13 = scmp.ne.s32.totalorder %s4119_s12, %s3971_s13  ;;  %p3977_p1 = scmp.lt.s32.totalorder %s3971_s13, %s3971_s13 }
  0x3e   :  { %p3978_p2 = por %p3977_p1, %p3976_p0 }
  0x40   :  { %p3979_p3 = pnand %p3978_p2, %p3972_p13 }
  0x42   :  { %3982 = shalt.err (!%p3979_p3)
}
  0x43   :  { %s4019_s6 = smov 512   ;;  %s4020_s29 = smov 32  }
  0x44   :  { %67 = dma.hbm_to_vmem [thread:$0]  %s4999_s8, 4096, %s4119_s12, [#allocation6], %s4019_s6, %s4019_s6, %s4020_s29  }
  0x45   :  { %s4021_s14 = smov [#allocation10]   ;;  %s3983_s19 = scalar_lea.hbm %s5001_s10, 28672 }
  0x46   :  { %s85_s15 = sshll.u32 %s4021_s14, 4  ;;  %p3984_p4 = scmp.ne.s32.totalorder %s5001_s10, %s3983_s19  ;;  %s86_s15 = int_to_ptr.vmem [resolvable:$true] %s85_s15 }
  0x47   :  { %p3987_p5 = scmp.lt.u32.totalorder %s3983_s19, %s5001_s10 }
  0x49   :  { %p3989_p6 = pnand %p3987_p5, %p3984_p4 }
  0x4b   :  { %3992 = shalt.err (!%p3989_p6)
}
  0x4c   :  { %s3993_s23 = scalar_lea.vmem %s86_s15, 28672  ;;  %p3998_p8 = scmp.lt.s32.totalorder %s86_s15, %s86_s15 }
  0x4d   :  { %p3994_p7 = scmp.ne.s32.totalorder %s86_s15, %s3993_s23  ;;  %p3999_p9 = scmp.lt.s32.totalorder %s3993_s23, %s3993_s23 }
  0x4f   :  { %p4000_p10 = por %p3999_p9, %p3998_p8 }
  0x51   :  { %p4001_p11 = pnand %p4000_p10, %p3994_p7 }
  0x53   :  { %4004 = shalt.err (!%p4001_p11)
}
  0x54   :  { %s4022_s8 = smov 896   ;;  %s4023_s12 = smov 56  }
  0x55   :  { %91 = dma.hbm_to_vmem [thread:$0]  %s5001_s10, 28672, %s86_s15, [#allocation9], %s4022_s8, %s4022_s8, %s4023_s12  }
  0x56   :  { %4005 = dma.done.wait [#allocation4], 512  }
  0x57   :  { %4006 = vsyncadd [#allocation4], 4294966784 }
  0x58   :  { %4007 = dma.done.wait [#allocation6], 4352  }
  0x59   :  { %4008 = vsyncadd [#allocation6], 4294962944 }
  0x5a   :  { %4009 = dma.done.wait [#allocation9], 45056  }
  0x5b   :  { %4010 = vsyncadd [#allocation9], 4294922240  ;;  %v4024_v0 = vmov 0   ;;  %v111_v1 = vld [vmem:[%s4993_s2] sm:$0xff]  ;;  %v112_v2 = vld [vmem:[%s4993_s2 + $0x8] sm:$0xff]  ;;  %vm152_vm0 = vcmask 130048  }
  0x5c   :  { %3831 = vset.pattern.permute.xlu0 %v4024_v0  ;;  %356 = vmatprep.mubr.bf16.mxu1 %v4024_v0  ;;  %v143_v3 = vld [vmem:[%s4996_s5] sm:$0xff]  ;;  %v144_v4 = vld [vmem:[%s4996_s5 + $0x8] sm:$0xff]  ;;  %v3836_v8 = vld [vmem:[#allocation3 + $0x14] ss:$8 sps:$4 sm:$0xff]   ;;  %vm320_vm1 = vcmask 261120  }
  0x5d   :  { %3832 = vset.pattern.permute.xlu1 %v4024_v0  ;;  %116 = vperm.xlu0 %3831, %v111_v1   ;;  %v3757_v5 = vpack.c.bf16 %v144_v4, %v143_v3  ;;  %v3833_v6 = vld [vmem:[#allocation3 + $0x4] ss:$8 sps:$4 sm:$0xff]   ;;  %v3835_v7 = vld [vmem:[#allocation3] ss:$8 sps:$4 sm:$0xff]   ;;  %v3838_v19 = vld [vmem:[#allocation3 + $0x10] ss:$8 sps:$4 sm:$0xff]  }
  0x5e   :  { %324 = vmatprep.subr.bf16.mxu1 %v3833_v6  ;;  %v3629_v9 = vld [vmem:[%s4995_s4] ss:$0 sm:$0xff]  ;;  %v3630_v11 = vld [vmem:[%s4995_s4 + $0x1] ss:$0 sm:$0xff]  ;;  %v3841_v20 = vld [vmem:[#allocation5 + $0x4] ss:$8 sps:$4 sm:$0xff]  }
  0x5f   :  { %3758 = vmatprep.subr.bf16.mxu0 %v3757_v5  ;;  %325 = vmatpush1.bf16.msra.mxu1 %v3835_v7  ;;  %v234_v21 = vld [vmem:[%s4992_s1] sm:$0xff]  ;;  %v235_v23 = vld [vmem:[%s4992_s1 + $0x8] sm:$0xff]  ;;  %v396_v25 = vld [vmem:[#allocation7 + $0x8] sm:$0xff] }
  0x60   :  { %3760 = vmatpush3.bf16.msra.mxu0 %v3757_v5  ;;  %326 = vmatprep.subr.bf16.mxu1 %v3836_v8  ;;  %v3839_v22 = vld [vmem:[#allocation5] ss:$8 sps:$4 sm:$0xff]   ;;  %v236_v24 = vpack.c.bf16 %v235_v23, %v234_v21  ;;  %v395_v26 = vld [vmem:[#allocation7] sm:$0xff]  ;;  %v428_v27 = vunpack.c.l.s8.bf16 %v396_v25  ;;  %v432_v29 = vunpack.c.h.s8.bf16 %v396_v25  ;;  %v400_v30 = vld [vmem:[#allocation7 + $0x28] sm:$0xff] }
  0x61   :  { %121 = vperm.xlu0 %3831, %v112_v2   ;;  %257 = vmatprep.subr.bf16.mxu0 %v3841_v20  ;;  %v427_v28 = vunpack.c.l.s8.bf16 %v395_v26  ;;  %v431_v31 = vunpack.c.h.s8.bf16 %v395_v26  ;;  %v436_v32 = vunpack.c.l.s8.bf16 %v400_v30  ;;  %v399_v33 = vld [vmem:[#allocation7 + $0x20] sm:$0xff]  ;;  %v440_v35 = vunpack.c.h.s8.bf16 %v400_v30  ;;  %v404_v36 = vld [vmem:[#allocation7 + $0x48] sm:$0xff]  ;;  %v3631_v1 = vld [vmem:[%s4995_s4 + $0x2] ss:$0 sm:$0xff] }
  0x62   :  { %v435_v34 = vunpack.c.l.s8.bf16 %v399_v33  ;;  %v439_v37 = vunpack.c.h.s8.bf16 %v399_v33  ;;  %v444_v38 = vunpack.c.l.s8.bf16 %v404_v36  ;;  %v403_v39 = vld [vmem:[#allocation7 + $0x40] sm:$0xff]  ;;  %v448_v41 = vunpack.c.h.s8.bf16 %v404_v36  ;;  %v408_v42 = vld [vmem:[#allocation7 + $0x68] sm:$0xff]  ;;  %v109_v21 = vld [vmem:[%s4994_s3] sm:$0xff] }
  0x63   :  { %327 = vmatpush1.bf16.msra.mxu1 %v3838_v19  ;;  %v443_v40 = vunpack.c.l.s8.bf16 %v403_v39  ;;  %v447_v43 = vunpack.c.h.s8.bf16 %v403_v39  ;;  %v452_v44 = vunpack.c.l.s8.bf16 %v408_v42  ;;  %v407_v45 = vld [vmem:[#allocation7 + $0x60] sm:$0xff]  ;;  %v456_v47 = vunpack.c.h.s8.bf16 %v408_v42  ;;  %v412_v48 = vld [vmem:[#allocation7 + $0x88] sm:$0xff]  ;;  %v398_v19 = vld [vmem:[#allocation7 + $0x18] sm:$0xff]  ;;  %643 = vperm.xlu1 %3832, %v109_v21  }
  0x64   :  { %493 = vmatprep.subr.bf16.mxu1 %v428_v27  ;;  %v451_v46 = vunpack.c.l.s8.bf16 %v407_v45  ;;  %v455_v49 = vunpack.c.h.s8.bf16 %v407_v45  ;;  %v460_v50 = vunpack.c.l.s8.bf16 %v412_v48  ;;  %v411_v51 = vld [vmem:[#allocation7 + $0x80] sm:$0xff]  ;;  %v464_v53 = vunpack.c.h.s8.bf16 %v412_v48  ;;  %v416_v54 = vld [vmem:[#allocation7 + $0xa8] sm:$0xff]  ;;  %v110_v26 = vld [vmem:[%s4994_s3 + $0x8] sm:$0xff] }
  0x65   :  { %v459_v52 = vunpack.c.l.s8.bf16 %v411_v51  ;;  %v463_v55 = vunpack.c.h.s8.bf16 %v411_v51  ;;  %v468_v56 = vunpack.c.l.s8.bf16 %v416_v54  ;;  %v415_v57 = vld [vmem:[#allocation7 + $0xa0] sm:$0xff]  ;;  %v472_v59 = vunpack.c.h.s8.bf16 %v416_v54  ;;  %v420_v61 = vld [vmem:[#allocation7 + $0xc8] sm:$0xff]  ;;  %v418_v21 = vld [vmem:[#allocation7 + $0xb8] sm:$0xff] }
  0x66   :  { %3641 = vmatmul.mubr.msk.bf16.vlgmr.msra.gmra.mrb[0].mxu1 %vm320_vm1, %v236_v24  ;;  %v467_v58 = vunpack.c.l.s8.bf16 %v415_v57  ;;  %v471_v60 = vunpack.c.h.s8.bf16 %v415_v57  ;;  %v476_v62 = vunpack.c.l.s8.bf16 %v420_v61  ;;  %v419_v63 = vld [vmem:[#allocation7 + $0xc0] sm:$0xff]  ;;  %v430_v20 = vunpack.c.l.s8.bf16 %v398_v19 }
  0x67   :  { %494 = vmatpush1.bf16.msra.mxu1 %v427_v28  ;;  %v850_v24 = vld [vmem:[#allocation8] sm:$0xff]  ;;  %648 = vperm.xlu1 %3832, %v110_v26   ;;  %v474_v26 = vunpack.c.h.s8.bf16 %v418_v21 }
  0x68   :  { %495 = vmatprep.subr.bf16.mxu1 %v432_v29  ;;  %v978_v27 = vunpack.c.l.s8.bf16 %v850_v24  ;;  %v986_v28 = vunpack.c.h.s8.bf16 %v850_v24  ;;  %v369_v29 = vlaneseq  ;;  %v417_v24 = vld [vmem:[#allocation7 + $0xb0] sm:$0xff] }
  0x6a   :  { %v4201_v30 = vshrl.u32 %v369_v29, 7 }
  0x6b   :  { %496 = vmatpush1.bf16.msra.mxu1 %v431_v31 }
  0x6c   :  { %497 = vmatprep.subr.bf16.mxu1 %v436_v32  ;;  %v4204_v31 = vsub.s32 0, %v4201_v30  ;;  %v367_v32 = vld [vmem:[%s4995_s4 + $0x3] sm:$0x3]  ;;  %v4210_v33 = vsub.s32 1, %v4201_v30 }
  0x6e   :  { %v376_v36 = vrot.slane %v367_v32, %v4210_v33 }
  0x6f   :  { %498 = vmatpush1.bf16.msra.mxu1 %v435_v34  ;;  %v372_v34 = vrot.slane %v367_v32, %v4204_v31  ;;  %v421_v32 = vld [vmem:[#allocation7 + $0xd0] sm:$0xff] }
  0x70   :  { %499 = vmatprep.subr.bf16.mxu1 %v440_v35 }
  0x73   :  { %500 = vmatpush1.bf16.msra.mxu1 %v439_v37 }
  0x74   :  { %501 = vmatprep.subr.bf16.mxu1 %v444_v38 }
  0x77   :  { %502 = vmatpush1.bf16.msra.mxu1 %v443_v40 }
  0x78   :  { %503 = vmatprep.subr.bf16.mxu1 %v448_v41 }
  0x7b   :  { %504 = vmatpush1.bf16.msra.mxu1 %v447_v43 }
  0x7c   :  { %505 = vmatprep.subr.bf16.mxu1 %v452_v44 }
  0x7f   :  { %506 = vmatpush1.bf16.msra.mxu1 %v451_v46 }
  0x80   :  { %507 = vmatprep.subr.bf16.mxu1 %v456_v47 }
  0x83   :  { %508 = vmatpush1.bf16.msra.mxu1 %v455_v49 }
  0x84   :  { %509 = vmatprep.subr.bf16.mxu1 %v460_v50 }
  0x87   :  { %510 = vmatpush1.bf16.msra.mxu1 %v459_v52  ;;  %v397_v52 = vld [vmem:[#allocation7 + $0x10] sm:$0xff] }
  0x88   :  { %511 = vmatprep.subr.bf16.mxu1 %v464_v53 }
  0x8b   :  { %512 = vmatpush1.bf16.msra.mxu1 %v463_v55 }
  0x8c   :  { %513 = vmatprep.subr.bf16.mxu1 %v468_v56 }
  0x8f   :  { %514 = vmatpush1.bf16.msra.mxu1 %v467_v58 }
  0x90   :  { %515 = vmatprep.subr.bf16.mxu1 %v472_v59  ;;  %v429_v59 = vunpack.c.l.s8.bf16 %v397_v52 }
  0x93   :  { %516 = vmatpush1.bf16.msra.mxu1 %v471_v60  ;;  %v434_v60 = vunpack.c.h.s8.bf16 %v398_v19 }
  0x94   :  { %517 = vmatprep.subr.bf16.mxu1 %v476_v62  ;;  %v433_v62 = vunpack.c.h.s8.bf16 %v397_v52 }
  0xdc   :  { %v117_v10 = vpop.permute.xlu0 %116 }
  0xdd   :  { %v130_v12 = vmul.f32 %v3629_v9, %v117_v10 }
  0xdf   :  { %v139_v13 = vadd.f32 %v3630_v11, %v130_v12 }
  0xe0   :  { %v122_v14 = vpop.permute.xlu0 %121 }
  0xe1   :  { %v131_v15 = vmul.f32 %v3629_v9, %v122_v14  ;;  %v141_v16 = vmax.f32 %v139_v13, 0.0  ;;  %v480_v9 = vunpack.c.h.s8.bf16 %v420_v61  ;;  %v424_v13 = vld [vmem:[#allocation7 + $0xe8] sm:$0xff]  ;;  %v402_v61 = vld [vmem:[#allocation7 + $0x38] sm:$0xff] }
  0xe2   :  { %v484_v14 = vunpack.c.l.s8.bf16 %v424_v13 }
  0xe3   :  { %v140_v17 = vadd.f32 %v3630_v11, %v131_v15  ;;  %3754 = vmatprep.mubr.msk.f32.mxu0 %vm152_vm0, %v141_v16  ;;  %v479_v11 = vunpack.c.h.s8.bf16 %v419_v63  ;;  %v423_v15 = vld [vmem:[#allocation7 + $0xe0] sm:$0xff] }
  0xe4   :  { %v483_v16 = vunpack.c.l.s8.bf16 %v423_v15 }
  0xe5   :  { %v142_v18 = vmax.f32 %v140_v17, 0.0  ;;  %v488_v17 = vunpack.c.h.s8.bf16 %v424_v13 }
  0xe7   :  { %3755 = vmatmul.mubr.msk.f32.vlgmr.msra.gmra.mrb[0].mxu0 %vm152_vm0, %v142_v18  ;;  %v487_v18 = vunpack.c.h.s8.bf16 %v423_v15  ;;  %v414_v15 = vld [vmem:[#allocation7 + $0x98] sm:$0xff] }
  0xe8   :  { %289 = vmatprep.mubr.bf16.mxu0 %v4024_v0  ;;  %258 = vmatpush1.bf16.msra.mxu0 %v3839_v22  ;;  %v475_v0 = vunpack.c.l.s8.bf16 %v419_v63  ;;  %v851_v22 = vld [vmem:[#allocation8 + $0x8] sm:$0xff]  ;;  %v438_v63 = vunpack.c.l.s8.bf16 %v402_v61 }
  0xe9   :  { %v979_v23 = vunpack.c.l.s8.bf16 %v851_v22  ;;  %v987_v25 = vunpack.c.h.s8.bf16 %v851_v22 }
  0xea   :  { %518 = vmatpush1.bf16.msra.mxu1 %v475_v0  ;;  %v401_v0 = vld [vmem:[#allocation7 + $0x30] sm:$0xff] }
  0xeb   :  { %519 = vmatprep.subr.bf16.mxu1 %v480_v9  ;;  %1238 = vmatprep.subr.bf16.mxu0 %v979_v23  ;;  %v410_v9 = vld [vmem:[#allocation7 + $0x78] sm:$0xff]  ;;  %v470_v23 = vunpack.c.l.s8.bf16 %v418_v21 }
  0xee   :  { %520 = vmatpush1.bf16.msra.mxu1 %v479_v11  ;;  %v454_v11 = vunpack.c.l.s8.bf16 %v410_v9 }
  0xef   :  { %521 = vmatprep.subr.bf16.mxu1 %v484_v14  ;;  %v458_v14 = vunpack.c.h.s8.bf16 %v410_v9 }
  0xf2   :  { %522 = vmatpush1.bf16.msra.mxu1 %v483_v16 }
  0xf3   :  { %523 = vmatprep.subr.bf16.mxu1 %v488_v17  ;;  %v462_v17 = vunpack.c.l.s8.bf16 %v414_v15 }
  0xf6   :  { %524 = vmatpush1.bf16.msra.mxu1 %v487_v18  ;;  %v413_v18 = vld [vmem:[#allocation7 + $0x90] sm:$0xff] }
  0xf7   :  { %536 = vmatprep.subr.bf16.mxu1 %v430_v20  ;;  %v461_v19 = vunpack.c.l.s8.bf16 %v413_v18  ;;  %v466_v20 = vunpack.c.h.s8.bf16 %v414_v15  ;;  %v465_v22 = vunpack.c.h.s8.bf16 %v413_v18 }
 0x139   :  { %v358_v7 = vpop.f32.mrb[0].mxu1 }
 0x13a   :  { %v360_v8 = vpop.f32.mrb[1].mxu1 }
 0x13b   :  { %v362_v10 = vpop.f32.mrb[2].mxu1 }
 0x13c   :  { %v364_v12 = vpop.f32.mrb[3].mxu1 }
 0x1ba   :  { %v3756_v2 = vpop.f32.mrb[0].mxu0 }
 0x1bb   :  { %v231_v3 = vadd.f32 %v3756_v2, %v3631_v1  ;;  %v225_v4 = vpop.f32.mrb[1].mxu0  ;;  %v442_v2 = vunpack.c.h.s8.bf16 %v402_v61  ;;  %v867_v61 = vld [vmem:[#allocation8 + $0x88] sm:$0xff] }
 0x1bc   :  { %v226_v5 = vadd.f32 %v3631_v1, %v225_v4  ;;  %v437_v1 = vunpack.c.l.s8.bf16 %v401_v0  ;;  %v441_v4 = vunpack.c.h.s8.bf16 %v401_v0 }
 0x1be   :  { %v241_v6 = vpack.c.bf16 %v231_v3, %v226_v5  ;;  %v406_v3 = vld [vmem:[#allocation7 + $0x58] sm:$0xff] }
 0x1bf   :  { %v446_v5 = vunpack.c.l.s8.bf16 %v406_v3 }
 0x1c0   :  { %3636 = vmatmul.mubr.msk.bf16.vlgmr.msra.gmra.mrb[4].mxu0 %vm152_vm0, %v241_v6  ;;  %v405_v6 = vld [vmem:[#allocation7 + $0x50] sm:$0xff] }
 0x1c1   :  { %1239 = vmatpush1.bf16.msra.mxu0 %v978_v27  ;;  %v422_v27 = vld [vmem:[#allocation7 + $0xd8] sm:$0xff] }
 0x1c2   :  { %1240 = vmatprep.subr.bf16.mxu0 %v987_v25  ;;  %v469_v25 = vunpack.c.l.s8.bf16 %v417_v24  ;;  %v478_v29 = vunpack.c.l.s8.bf16 %v422_v27 }
 0x1c5   :  { %1241 = vmatpush1.bf16.msra.mxu0 %v986_v28  ;;  %v473_v28 = vunpack.c.h.s8.bf16 %v417_v24 }
 0x293   :  { %v291_v35 = vpop.f32.mrb[4].mxu0 }
 0x294   :  { %v359_v37 = vadd.f32 %v358_v7, %v291_v35  ;;  %v293_v38 = vpop.f32.mrb[5].mxu0  ;;  %v445_v7 = vunpack.c.l.s8.bf16 %v405_v6  ;;  %v482_v35 = vunpack.c.h.s8.bf16 %v422_v27 }
 0x295   :  { %v361_v39 = vadd.f32 %v360_v8, %v293_v38  ;;  %v295_v40 = vpop.f32.mrb[6].mxu0  ;;  %v450_v8 = vunpack.c.h.s8.bf16 %v406_v3 }
 0x296   :  { %v379_v41 = vadd.f32 %v372_v34, %v359_v37  ;;  %v363_v42 = vadd.f32 %v362_v10, %v295_v40  ;;  %v297_v43 = vpop.f32.mrb[7].mxu0  ;;  %v449_v10 = vunpack.c.h.s8.bf16 %v405_v6  ;;  %v481_v37 = vunpack.c.h.s8.bf16 %v421_v32 }
 0x297   :  { %v380_v44 = vadd.f32 %v376_v36, %v361_v39  ;;  %v365_v45 = vadd.f32 %v364_v12, %v297_v43  ;;  %v409_v12 = vld [vmem:[#allocation7 + $0x70] sm:$0xff] }
 0x298   :  { %v387_v46 = vmul.f32 0.2, %v379_v41  ;;  %v381_v47 = vadd.f32 %v372_v34, %v363_v42  ;;  %vm383_vm2 = vcmp.gt.f32.partialorder %v379_v41, 0.0  ;;  %v453_v13 = vunpack.c.l.s8.bf16 %v409_v12  ;;  %v425_v39 = vld [vmem:[#allocation7 + $0xf0] sm:$0xff]  ;;  %v853_v42 = vld [vmem:[#allocation8 + $0x18] sm:$0xff] }
 0x299   :  { %v388_v48 = vmul.f32 0.2, %v380_v44  ;;  %v382_v49 = vadd.f32 %v376_v36, %v365_v45  ;;  %vm384_vm3 = vcmp.gt.f32.partialorder %v380_v44, 0.0  ;;  %v457_v16 = vunpack.c.h.s8.bf16 %v409_v12  ;;  %v426_v36 = vld [vmem:[#allocation7 + $0xf8] sm:$0xff]  ;;  %v852_v45 = vld [vmem:[#allocation8 + $0x10] sm:$0xff] }
 0x29a   :  { %vm385_vm4 = vcmp.gt.f32.partialorder %v381_v47, 0.0  ;;  %v389_v50 = vmul.f32 0.2, %v381_v47  ;;  %v391_v53 = vsel %vm383_vm2, %v379_v41, %v387_v46  ;;  %v477_v34 = vunpack.c.l.s8.bf16 %v421_v32 }
 0x29b   :  { %vm386_vm5 = vcmp.gt.f32.partialorder %v382_v49, 0.0  ;;  %v390_v51 = vmul.f32 0.2, %v382_v49  ;;  %v392_v55 = vsel %vm384_vm3, %v380_v44, %v388_v48  ;;  %v486_v38 = vunpack.c.l.s8.bf16 %v426_v36 }
 0x29c   :  { %v393_v54 = vsel %vm385_vm4, %v381_v47, %v389_v50  ;;  %v485_v40 = vunpack.c.l.s8.bf16 %v425_v39  ;;  %v490_v41 = vunpack.c.h.s8.bf16 %v426_v36  ;;  %v489_v43 = vunpack.c.h.s8.bf16 %v425_v39  ;;  %v861_v50 = vld [vmem:[#allocation8 + $0x58] sm:$0xff] }
 0x29d   :  { %v394_v56 = vsel %vm386_vm5, %v382_v49, %v390_v51  ;;  %v4214_v57 = vpack.c.bf16 %v393_v54, %v391_v53  ;;  %v981_v44 = vunpack.c.l.s8.bf16 %v853_v42  ;;  %v980_v46 = vunpack.c.l.s8.bf16 %v852_v45  ;;  %v859_v49 = vld [vmem:[#allocation8 + $0x48] sm:$0xff]  ;;  %v858_v53 = vld [vmem:[#allocation8 + $0x40] sm:$0xff]  ;;  %v860_v54 = vld [vmem:[#allocation8 + $0x50] sm:$0xff] }
 0x29e   :  { %v492_v58 = vpack.c.bf16 %v394_v56, %v392_v55  ;;  %v989_v47 = vunpack.c.h.s8.bf16 %v853_v42  ;;  %v988_v48 = vunpack.c.h.s8.bf16 %v852_v45  ;;  %v995_v51 = vunpack.c.l.s8.bf16 %v859_v49 }
 0x29f   :  { %v997_v52 = vunpack.c.l.s8.bf16 %v861_v50  ;;  %v994_v55 = vunpack.c.l.s8.bf16 %v858_v53  ;;  %v996_v56 = vunpack.c.l.s8.bf16 %v860_v54 }
 0x2a0   :  { %525 = vmatprep.mubr.bf16.mxu1 %v492_v58  ;;  %1242 = vmatprep.subr.bf16.mxu0 %v995_v51 }
 0x2a1   :  { %526 = vmatmul.mubr.bf16.vlgmr.msra.gmra.mrb[4].mxu1 %v4214_v57  ;;  %1243 = vmatpush1.bf16.msra.mxu0 %v994_v55 }
 0x2a2   :  { %537 = vmatpush1.bf16.msra.mxu1 %v429_v59  ;;  %568 = vmatprep.mubr.bf16.mxu1 %v492_v58  ;;  %v1003_v58 = vunpack.c.h.s8.bf16 %v859_v49  ;;  %v1005_v59 = vunpack.c.h.s8.bf16 %v861_v50 }
 0x2a3   :  { %538 = vmatprep.subr.bf16.mxu1 %v434_v60  ;;  %v1002_v60 = vunpack.c.h.s8.bf16 %v858_v53  ;;  %v900_v53 = vld [vmem:[#allocation8 + $0x190] sm:$0xff] }
 0x2a4   :  { %1244 = vmatprep.subr.bf16.mxu0 %v1003_v58  ;;  %v1076_v55 = vunpack.c.l.s8.bf16 %v900_v53 }
 0x2a5   :  { %1245 = vmatpush1.bf16.msra.mxu0 %v1002_v60  ;;  %v909_v60 = vld [vmem:[#allocation8 + $0x1d8] sm:$0xff] }
 0x2a6   :  { %539 = vmatpush1.bf16.msra.mxu1 %v433_v62  ;;  %v869_v62 = vld [vmem:[#allocation8 + $0x98] sm:$0xff] }
 0x2a7   :  { %540 = vmatprep.subr.bf16.mxu1 %v438_v63  ;;  %v1011_v63 = vunpack.c.l.s8.bf16 %v867_v61  ;;  %v1013_v0 = vunpack.c.l.s8.bf16 %v869_v62  ;;  %v1021_v6 = vunpack.c.h.s8.bf16 %v869_v62 }
 0x2a9   :  { %1246 = vmatprep.subr.bf16.mxu0 %v1011_v63  ;;  %v1093_v63 = vunpack.c.l.s8.bf16 %v909_v60 }
 0x2aa   :  { %541 = vmatpush1.bf16.msra.mxu1 %v437_v1  ;;  %v866_v1 = vld [vmem:[#allocation8 + $0x80] sm:$0xff] }
 0x2ab   :  { %542 = vmatprep.subr.bf16.mxu1 %v442_v2  ;;  %v868_v2 = vld [vmem:[#allocation8 + $0x90] sm:$0xff]  ;;  %v1010_v3 = vunpack.c.l.s8.bf16 %v866_v1  ;;  %v1018_v9 = vunpack.c.h.s8.bf16 %v866_v1 }
 0x2ac   :  { %v908_v1 = vld [vmem:[#allocation8 + $0x1d0] sm:$0xff] }
 0x2ad   :  { %1247 = vmatpush1.bf16.msra.mxu0 %v1010_v3  ;;  %v1092_v3 = vunpack.c.l.s8.bf16 %v908_v1 }
 0x2ae   :  { %543 = vmatpush1.bf16.msra.mxu1 %v441_v4  ;;  %v1012_v4 = vunpack.c.l.s8.bf16 %v868_v2 }
 0x2af   :  { %544 = vmatprep.subr.bf16.mxu1 %v446_v5  ;;  %v1019_v5 = vunpack.c.h.s8.bf16 %v867_v61  ;;  %v1084_v61 = vunpack.c.h.s8.bf16 %v900_v53 }
 0x2b1   :  { %1248 = vmatprep.subr.bf16.mxu0 %v1019_v5  ;;  %v1101_v5 = vunpack.c.h.s8.bf16 %v909_v60 }
 0x2b2   :  { %545 = vmatpush1.bf16.msra.mxu1 %v445_v7  ;;  %v875_v7 = vld [vmem:[#allocation8 + $0xc8] sm:$0xff]  ;;  %1249 = vmatpush1.bf16.msra.mxu0 %v1018_v9  ;;  %v4220_v9 = vld [vmem:[#allocation8 + $0x218] sm:$0xff] }
 0x2b3   :  { %546 = vmatprep.subr.bf16.mxu1 %v450_v8  ;;  %v877_v8 = vld [vmem:[#allocation8 + $0xd8] sm:$0xff] }
 0x2b4   :  { %v1029_v12 = vunpack.c.l.s8.bf16 %v877_v8  ;;  %v1037_v18 = vunpack.c.h.s8.bf16 %v877_v8  ;;  %v4218_v8 = vld [vmem:[#allocation8 + $0x208] sm:$0xff] }
 0x2b6   :  { %547 = vmatpush1.bf16.msra.mxu1 %v449_v10  ;;  %v1020_v10 = vunpack.c.h.s8.bf16 %v868_v2 }
 0x2b7   :  { %548 = vmatprep.subr.bf16.mxu1 %v454_v11  ;;  %v1027_v11 = vunpack.c.l.s8.bf16 %v875_v7 }
 0x2b9   :  { %1250 = vmatprep.subr.bf16.mxu0 %v1027_v11  ;;  %v1109_v11 = vunpack.c.l.s8.bf16 %v4220_v9 }
 0x2ba   :  { %549 = vmatpush1.bf16.msra.mxu1 %v453_v13  ;;  %v874_v13 = vld [vmem:[#allocation8 + $0xc0] sm:$0xff] }
 0x2bb   :  { %550 = vmatprep.subr.bf16.mxu1 %v458_v14  ;;  %v876_v14 = vld [vmem:[#allocation8 + $0xd0] sm:$0xff]  ;;  %v1026_v15 = vunpack.c.l.s8.bf16 %v874_v13  ;;  %v1034_v21 = vunpack.c.h.s8.bf16 %v874_v13 }
 0x2bc   :  { %v4232_v13 = vld [vmem:[%s4995_s4 + $0x5] sm:$0xf] }
 0x2bd   :  { %1251 = vmatpush1.bf16.msra.mxu0 %v1026_v15 }
 0x2be   :  { %551 = vmatpush1.bf16.msra.mxu1 %v457_v16  ;;  %v1028_v16 = vunpack.c.l.s8.bf16 %v876_v14 }
 0x2bf   :  { %552 = vmatprep.subr.bf16.mxu1 %v462_v17  ;;  %v1035_v17 = vunpack.c.h.s8.bf16 %v875_v7  ;;  %v1100_v7 = vunpack.c.h.s8.bf16 %v908_v1 }
 0x2c1   :  { %1252 = vmatprep.subr.bf16.mxu0 %v1035_v17  ;;  %v4240_v17 = vpop.permute.xlu1 %643 }
 0x2c2   :  { %553 = vmatpush1.bf16.msra.mxu1 %v461_v19  ;;  %v883_v19 = vld [vmem:[#allocation8 + $0x108] sm:$0xff]  ;;  %1253 = vmatpush1.bf16.msra.mxu0 %v1034_v21 }
 0x2c3   :  { %554 = vmatprep.subr.bf16.mxu1 %v466_v20  ;;  %v885_v20 = vld [vmem:[#allocation8 + $0x118] sm:$0xff] }
 0x2c4   :  { %v1045_v24 = vunpack.c.l.s8.bf16 %v885_v20  ;;  %v1053_v32 = vunpack.c.h.s8.bf16 %v885_v20 }
 0x2c6   :  { %555 = vmatpush1.bf16.msra.mxu1 %v465_v22  ;;  %v1036_v22 = vunpack.c.h.s8.bf16 %v876_v14 }
 0x2c7   :  { %556 = vmatprep.subr.bf16.mxu1 %v470_v23  ;;  %v1043_v23 = vunpack.c.l.s8.bf16 %v883_v19 }
 0x2c9   :  { %1254 = vmatprep.subr.bf16.mxu0 %v1043_v23 }
 0x2ca   :  { %557 = vmatpush1.bf16.msra.mxu1 %v469_v25  ;;  %v882_v25 = vld [vmem:[#allocation8 + $0x100] sm:$0xff] }
 0x2cb   :  { %558 = vmatprep.subr.bf16.mxu1 %v474_v26  ;;  %v884_v26 = vld [vmem:[#allocation8 + $0x110] sm:$0xff]  ;;  %v1042_v27 = vunpack.c.l.s8.bf16 %v882_v25  ;;  %v1050_v36 = vunpack.c.h.s8.bf16 %v882_v25 }
 0x2cd   :  { %1255 = vmatpush1.bf16.msra.mxu0 %v1042_v27 }
 0x2ce   :  { %559 = vmatpush1.bf16.msra.mxu1 %v473_v28  ;;  %v1044_v28 = vunpack.c.l.s8.bf16 %v884_v26 }
 0x2cf   :  { %560 = vmatprep.subr.bf16.mxu1 %v478_v29  ;;  %v1051_v29 = vunpack.c.h.s8.bf16 %v883_v19  ;;  %v618_v19 = vrot.slane %v4232_v13, %v4210_v33 }
 0x2d1   :  { %1256 = vmatprep.subr.bf16.mxu0 %v1051_v29 }
 0x2d2   :  { %561 = vmatpush1.bf16.msra.mxu1 %v477_v34  ;;  %v891_v34 = vld [vmem:[#allocation8 + $0x148] sm:$0xff]  ;;  %1257 = vmatpush1.bf16.msra.mxu0 %v1050_v36  ;;  %v4256_v36 = vpop.permute.xlu1 %648 }
 0x2d3   :  { %562 = vmatprep.subr.bf16.mxu1 %v482_v35  ;;  %v893_v35 = vld [vmem:[#allocation8 + $0x158] sm:$0xff] }
 0x2d4   :  { %v1061_v39 = vunpack.c.l.s8.bf16 %v893_v35  ;;  %v1069_v45 = vunpack.c.h.s8.bf16 %v893_v35 }
 0x2d6   :  { %563 = vmatpush1.bf16.msra.mxu1 %v481_v37  ;;  %v1052_v37 = vunpack.c.h.s8.bf16 %v884_v26 }
 0x2d7   :  { %564 = vmatprep.subr.bf16.mxu1 %v486_v38  ;;  %v1059_v38 = vunpack.c.l.s8.bf16 %v891_v34 }
 0x2d9   :  { %1258 = vmatprep.subr.bf16.mxu0 %v1059_v38 }
 0x2da   :  { %565 = vmatpush1.bf16.msra.mxu1 %v485_v40  ;;  %v890_v40 = vld [vmem:[#allocation8 + $0x140] sm:$0xff] }
 0x2db   :  { %566 = vmatprep.subr.bf16.mxu1 %v490_v41  ;;  %v892_v41 = vld [vmem:[#allocation8 + $0x150] sm:$0xff]  ;;  %v1058_v42 = vunpack.c.l.s8.bf16 %v890_v40 }
 0x2dc   :  { %v1068_v49 = vunpack.c.h.s8.bf16 %v892_v41 }
 0x2dd   :  { %1259 = vmatpush1.bf16.msra.mxu0 %v1058_v42 }
 0x2de   :  { %567 = vmatpush1.bf16.msra.mxu1 %v489_v43  ;;  %v1060_v43 = vunpack.c.l.s8.bf16 %v892_v41 }
 0x2df   :  { %1324 = vmatprep.subr.bf16.mxu1 %v981_v44  ;;  %v1067_v44 = vunpack.c.h.s8.bf16 %v891_v34 }
 0x2e1   :  { %569 = vmatmul.mubr.bf16.vlgmr.msra.gmra.mrb[8].mxu1 %v4214_v57  ;;  %v1004_v57 = vunpack.c.h.s8.bf16 %v860_v54  ;;  %1260 = vmatprep.subr.bf16.mxu0 %v1067_v44 }
 0x2e2   :  { %1325 = vmatpush1.bf16.msra.mxu1 %v980_v46  ;;  %v899_v46 = vld [vmem:[#allocation8 + $0x188] sm:$0xff] }
 0x2e3   :  { %1326 = vmatprep.subr.bf16.mxu1 %v989_v47  ;;  %v901_v47 = vld [vmem:[#allocation8 + $0x198] sm:$0xff]  ;;  %v1075_v50 = vunpack.c.l.s8.bf16 %v899_v46 }
 0x2e4   :  { %v1077_v51 = vunpack.c.l.s8.bf16 %v901_v47  ;;  %v1085_v58 = vunpack.c.h.s8.bf16 %v901_v47 }
 0x2e6   :  { %1327 = vmatpush1.bf16.msra.mxu1 %v988_v48  ;;  %v1066_v48 = vunpack.c.h.s8.bf16 %v890_v40 }
 0x2e7   :  { %1328 = vmatprep.subr.bf16.mxu1 %v997_v52  ;;  %v898_v52 = vld [vmem:[#allocation8 + $0x180] sm:$0xff] }
 0x2e8   :  { %1261 = vmatpush1.bf16.msra.mxu0 %v1066_v48  ;;  %v1074_v54 = vunpack.c.l.s8.bf16 %v898_v52 }
 0x2e9   :  { %1262 = vmatprep.subr.bf16.mxu0 %v1075_v50 }
 0x2ea   :  { %1329 = vmatpush1.bf16.msra.mxu1 %v996_v56  ;;  %v1083_v56 = vunpack.c.h.s8.bf16 %v899_v46 }
 0x2eb   :  { %1330 = vmatprep.subr.bf16.mxu1 %v1005_v59  ;;  %v907_v59 = vld [vmem:[#allocation8 + $0x1c8] sm:$0xff] }
 0x2ec   :  { %1263 = vmatpush1.bf16.msra.mxu0 %v1074_v54  ;;  %v1091_v62 = vunpack.c.l.s8.bf16 %v907_v59 }
 0x2ed   :  { %1264 = vmatprep.subr.bf16.mxu0 %v1083_v56 }
 0x2ee   :  { %1331 = vmatpush1.bf16.msra.mxu1 %v1004_v57  ;;  %v1082_v57 = vunpack.c.h.s8.bf16 %v898_v52 }
 0x2ef   :  { %1332 = vmatprep.subr.bf16.mxu1 %v1013_v0  ;;  %v906_v0 = vld [vmem:[#allocation8 + $0x1c0] sm:$0xff] }
 0x2f0   :  { %1265 = vmatpush1.bf16.msra.mxu0 %v1082_v57  ;;  %v1090_v2 = vunpack.c.l.s8.bf16 %v906_v0 }
 0x2f1   :  { %1266 = vmatprep.subr.bf16.mxu0 %v1091_v62 }
 0x2f2   :  { %1333 = vmatpush1.bf16.msra.mxu1 %v1012_v4  ;;  %v1099_v4 = vunpack.c.h.s8.bf16 %v907_v59 }
 0x2f3   :  { %1334 = vmatprep.subr.bf16.mxu1 %v1021_v6  ;;  %v1098_v6 = vunpack.c.h.s8.bf16 %v906_v0  ;;  %v4269_v0 = vstv %s4991_s0 }
 0x2f4   :  { %1267 = vmatpush1.bf16.msra.mxu0 %v1090_v2 }
 0x2f5   :  { %1268 = vmatprep.subr.bf16.mxu0 %v1099_v4 }
 0x2f6   :  { %1335 = vmatpush1.bf16.msra.mxu1 %v1020_v10  ;;  %v1107_v10 = vunpack.c.l.s8.bf16 %v4218_v8 }
 0x2f7   :  { %1336 = vmatprep.subr.bf16.mxu1 %v1029_v12  ;;  %v4227_v12 = vld [vmem:[%s4995_s4 + $0x11] sm:$0xf] }
 0x2f8   :  { %1269 = vmatpush1.bf16.msra.mxu0 %v1098_v6  ;;  %v584_v14 = vrot.slane %v4227_v12, %v4204_v31  ;;  %v588_v15 = vrot.slane %v4227_v12, %v4210_v33 }
 0x2f9   :  { %1281 = vmatprep.subr.bf16.mxu0 %v1107_v10 }
 0x2fa   :  { %1337 = vmatpush1.bf16.msra.mxu1 %v1028_v16  ;;  %v614_v16 = vrot.slane %v4232_v13, %v4204_v31 }
 0x2fb   :  { %1338 = vmatprep.subr.bf16.mxu1 %v1037_v18 }
 0x2fe   :  { %1339 = vmatpush1.bf16.msra.mxu1 %v1036_v22 }
 0x2ff   :  { %1340 = vmatprep.subr.bf16.mxu1 %v1045_v24 }
 0x302   :  { %1341 = vmatpush1.bf16.msra.mxu1 %v1044_v28 }
 0x303   :  { %1342 = vmatprep.subr.bf16.mxu1 %v1053_v32 }
 0x306   :  { %1343 = vmatpush1.bf16.msra.mxu1 %v1052_v37 }
 0x307   :  { %1344 = vmatprep.subr.bf16.mxu1 %v1061_v39 }
 0x30a   :  { %1345 = vmatpush1.bf16.msra.mxu1 %v1060_v43 }
 0x30b   :  { %1346 = vmatprep.subr.bf16.mxu1 %v1069_v45 }
 0x30e   :  { %1347 = vmatpush1.bf16.msra.mxu1 %v1068_v49 }
 0x30f   :  { %1348 = vmatprep.subr.bf16.mxu1 %v1077_v51 }
 0x312   :  { %1349 = vmatpush1.bf16.msra.mxu1 %v1076_v55 }
 0x313   :  { %1350 = vmatprep.subr.bf16.mxu1 %v1085_v58 }
 0x316   :  { %1351 = vmatpush1.bf16.msra.mxu1 %v1084_v61 }
 0x317   :  { %1352 = vmatprep.subr.bf16.mxu1 %v1093_v63 }
 0x31a   :  { %1353 = vmatpush1.bf16.msra.mxu1 %v1092_v3 }
 0x31b   :  { %1354 = vmatprep.subr.bf16.mxu1 %v1101_v5 }
 0x31e   :  { %1355 = vmatpush1.bf16.msra.mxu1 %v1100_v7 }
 0x31f   :  { %1367 = vmatprep.subr.bf16.mxu1 %v1109_v11 }
 0x374   :  { %v527_v18 = vpop.f32.mrb[4].mxu1 }
 0x375   :  { %v601_v20 = vmul.f32 %v584_v14, %v527_v18  ;;  %v529_v21 = vpop.f32.mrb[5].mxu1 }
 0x376   :  { %v602_v22 = vmul.f32 %v588_v15, %v529_v21  ;;  %v531_v23 = vpop.f32.mrb[6].mxu1 }
 0x377   :  { %v4244_v24 = vadd.f32 %v614_v16, %v601_v20  ;;  %v605_v25 = vmul.f32 %v584_v14, %v531_v23  ;;  %v533_v26 = vpop.f32.mrb[7].mxu1 }
 0x378   :  { %v4246_v27 = vadd.f32 %v618_v19, %v602_v22  ;;  %v606_v28 = vmul.f32 %v588_v15, %v533_v26 }
 0x379   :  { %v651_v29 = vmul.f32 %v4240_v17, %v4244_v24  ;;  %v4250_v32 = vadd.f32 %v614_v16, %v605_v25 }
 0x37a   :  { %v652_v34 = vmul.f32 %v4240_v17, %v4246_v27  ;;  %v4254_v35 = vadd.f32 %v618_v19, %v606_v28 }
 0x37b   :  { %v655_v37 = vmul.f32 %v4256_v36, %v4250_v32  ;;  %v692_v39 = vmul.f32 %v651_v29, %v4244_v24 }
 0x37c   :  { %v656_v38 = vmul.f32 %v4256_v36, %v4254_v35  ;;  %v693_v42 = vmul.f32 %v652_v34, %v4246_v27 }
 0x37d   :  { %v659_v40 = vadd.f32 %v655_v37, %v651_v29  ;;  %v696_v41 = vmul.f32 %v655_v37, %v4250_v32 }
 0x37e   :  { %v666_v43 = vadd.f32 %v656_v38, %v652_v34  ;;  %v697_v44 = vmul.f32 %v656_v38, %v4254_v35 }
 0x37f   :  { %v660_v45 = vrot.slane %v659_v40, 4  ;;  %v700_v46 = vadd.f32 %v696_v41, %v692_v39 }
 0x380   :  { %v667_v47 = vrot.slane %v666_v43, 4  ;;  %v707_v48 = vadd.f32 %v697_v44, %v693_v42 }
 0x381   :  { %v661_v49 = vadd.f32 %v660_v45, %v659_v40  ;;  %v701_v50 = vrot.slane %v700_v46, 4 }
 0x382   :  { %v668_v51 = vadd.f32 %v667_v47, %v666_v43  ;;  %v708_v52 = vrot.slane %v707_v48, 4 }
 0x383   :  { %v662_v53 = vrot.slane %v661_v49, 2  ;;  %v702_v54 = vadd.f32 %v701_v50, %v700_v46 }
 0x384   :  { %v669_v55 = vrot.slane %v668_v51, 2  ;;  %v709_v56 = vadd.f32 %v708_v52, %v707_v48 }
 0x385   :  { %v663_v58 = vadd.f32 %v662_v53, %v661_v49  ;;  %v703_v59 = vrot.slane %v702_v54, 2  ;;  %v914_v53 = vld [vmem:[#allocation8 + $0x200] sm:$0xff] }
 0x386   :  { %v670_v60 = vadd.f32 %v669_v55, %v668_v51  ;;  %v710_v57 = vrot.slane %v709_v56, 2 }
 0x387   :  { %v664_v61 = vrot.slane %v663_v58, 1  ;;  %v704_v62 = vadd.f32 %v703_v59, %v702_v54  ;;  %v916_v54 = vld [vmem:[#allocation8 + $0x210] sm:$0xff] }
 0x388   :  { %v671_v63 = vrot.slane %v670_v60, 1  ;;  %v711_v1 = vadd.f32 %v710_v57, %v709_v56 }
 0x389   :  { %v665_v2 = vadd.f32 %v664_v61, %v663_v58  ;;  %v705_v3 = vrot.slane %v704_v62, 1 }
 0x38a   :  { %v672_v4 = vadd.f32 %v671_v63, %v670_v60  ;;  %v712_v5 = vrot.slane %v711_v1, 1 }
 0x38b   :  { %v688_v6 = vmul.f32 %v4269_v0, %v665_v2  ;;  %v706_v7 = vadd.f32 %v705_v3, %v704_v62  ;;  %v1106_v2 = vunpack.c.l.s8.bf16 %v914_v53  ;;  %v1108_v3 = vunpack.c.l.s8.bf16 %v916_v54 }
 0x38c   :  { %v689_v10 = vmul.f32 %v4269_v0, %v672_v4  ;;  %v713_v11 = vadd.f32 %v712_v5, %v711_v1  ;;  %v1115_v4 = vunpack.c.h.s8.bf16 %v4218_v8  ;;  %v1117_v5 = vunpack.c.h.s8.bf16 %v4220_v9 }
 0x38d   :  { %v728_v14 = vmul.f32 %v706_v7, %v4269_v0  ;;  %v732_v15 = vmul.f32 %v688_v6, %v688_v6  ;;  %v744_v16 = vsub.f32 %v4244_v24, %v688_v6  ;;  %v748_v18 = vsub.f32 %v4250_v32, %v688_v6  ;;  %v4282_v24 = vld [vmem:[%s4995_s4 + $0x9] sm:$0xf]  ;;  %v4287_v32 = vld [vmem:[%s4995_s4 + $0xd] sm:$0xf]  ;;  %v923_v6 = vld [vmem:[#allocation8 + $0x248] sm:$0xff] }
 0x38e   :  { %v729_v19 = vmul.f32 %v713_v11, %v4269_v0  ;;  %v733_v20 = vmul.f32 %v689_v10, %v689_v10  ;;  %v745_v21 = vsub.f32 %v4246_v27, %v689_v10  ;;  %v749_v22 = vsub.f32 %v4254_v35, %v689_v10  ;;  %v925_v7 = vld [vmem:[#allocation8 + $0x258] sm:$0xff] }
 0x38f   :  { %v736_v23 = vsub.f32 %v728_v14, %v732_v15  ;;  %v772_v27 = vrot.slane %v4282_v24, %v4204_v31  ;;  %v776_v37 = vrot.slane %v4282_v24, %v4210_v33  ;;  %v801_v41 = vrot.slane %v4287_v32, %v4204_v31 }
 0x390   :  { %v737_v25 = vsub.f32 %v729_v19, %v733_v20  ;;  %v805_v44 = vrot.slane %v4287_v32, %v4210_v33  ;;  %v4308_v10 = vsub.s32 2, %v4201_v30  ;;  %v1114_v11 = vunpack.c.h.s8.bf16 %v914_v53 }
 0x391   :  { %v740_v26 = vmax.f32 %v736_v23, 0.0  ;;  %v1116_v14 = vunpack.c.h.s8.bf16 %v916_v54  ;;  %v4311_v8 = vsub.s32 3, %v4201_v30  ;;  %v1123_v9 = vunpack.c.l.s8.bf16 %v923_v6 }
 0x392   :  { %v741_v28 = vmax.f32 %v737_v25, 0.0  ;;  %v1125_v15 = vunpack.c.l.s8.bf16 %v925_v7  ;;  %v592_v19 = vrot.slane %v4227_v12, %v4308_v10  ;;  %v622_v23 = vrot.slane %v4232_v13, %v4308_v10 }
 0x393   :  { %v752_v29 = vadd.f32 1e-05, %v740_v26  ;;  %v596_v20 = vrot.slane %v4227_v12, %v4311_v8  ;;  %v1131_v25 = vunpack.c.h.s8.bf16 %v923_v6  ;;  %v1133_v26 = vunpack.c.h.s8.bf16 %v925_v7 }
 0x394   :  { %v753_v34 = vadd.f32 1e-05, %v741_v28 }
 0x395   :  { %3842 = vrsqrt.f32 %v752_v29  ;;  %v626_v29 = vrot.slane %v4232_v13, %v4311_v8  ;;  %v932_v13 = vld [vmem:[#allocation8 + $0x290] sm:$0xff] }
 0x396   :  { %3844 = vrsqrt.f32 %v753_v34  ;;  %v931_v34 = vld [vmem:[#allocation8 + $0x288] sm:$0xff]  ;;  %v1140_v54 = vunpack.c.l.s8.bf16 %v932_v13  ;;  %v1148_v7 = vunpack.c.h.s8.bf16 %v932_v13 }
 0x39f   :  { %v3843_v35 = vpop.eup %3842 }
 0x3a0   :  { %v3845_v38 = vpop.eup %3844  ;;  %v760_v39 = vmul.f32 %v3843_v35, %v744_v16  ;;  %v764_v40 = vmul.f32 %v3843_v35, %v748_v18  ;;  %v922_v16 = vld [vmem:[#allocation8 + $0x240] sm:$0xff]  ;;  %v924_v18 = vld [vmem:[#allocation8 + $0x250] sm:$0xff] }
 0x3a1   :  { %v761_v42 = vmul.f32 %v3845_v38, %v745_v21  ;;  %v765_v43 = vmul.f32 %v3845_v38, %v749_v22  ;;  %v1122_v21 = vunpack.c.l.s8.bf16 %v922_v16  ;;  %v1124_v22 = vunpack.c.l.s8.bf16 %v924_v18 }
 0x3a2   :  { %v789_v45 = vmul.f32 %v772_v27, %v760_v39  ;;  %v793_v46 = vmul.f32 %v772_v27, %v764_v40  ;;  %v933_v27 = vld [vmem:[#allocation8 + $0x298] sm:$0xff]  ;;  %v1130_v12 = vunpack.c.h.s8.bf16 %v922_v16  ;;  %v1132_v40 = vunpack.c.h.s8.bf16 %v924_v18  ;;  %v938_v16 = vld [vmem:[#allocation8 + $0x2c0] sm:$0xff]  ;;  %v940_v18 = vld [vmem:[#allocation8 + $0x2d0] sm:$0xff] }
 0x3a3   :  { %v790_v47 = vmul.f32 %v776_v37, %v761_v42  ;;  %v794_v48 = vmul.f32 %v776_v37, %v765_v43 }
 0x3a4   :  { %v818_v49 = vadd.f32 %v801_v41, %v789_v45  ;;  %v822_v50 = vadd.f32 %v801_v41, %v793_v46  ;;  %v1141_v45 = vunpack.c.l.s8.bf16 %v933_v27  ;;  %v930_v46 = vld [vmem:[#allocation8 + $0x280] sm:$0xff] }
 0x3a5   :  { %v819_v51 = vadd.f32 %v805_v44, %v790_v47  ;;  %v823_v52 = vadd.f32 %v805_v44, %v794_v48  ;;  %v1139_v44 = vunpack.c.l.s8.bf16 %v931_v34  ;;  %v1138_v53 = vunpack.c.l.s8.bf16 %v930_v46 }
 0x3a6   :  { %vm826_vm6 = vcmp.gt.f32.partialorder %v818_v49, 0.0  ;;  %vm830_vm7 = vcmp.gt.f32.partialorder %v822_v50, 0.0  ;;  %v834_v55 = vmul.f32 0.2, %v818_v49  ;;  %v838_v56 = vmul.f32 0.2, %v822_v50 }
 0x3a7   :  { %vm827_vm8 = vcmp.gt.f32.partialorder %v819_v51, 0.0  ;;  %vm831_vm9 = vcmp.gt.f32.partialorder %v823_v52, 0.0  ;;  %v835_v58 = vmul.f32 0.2, %v819_v51  ;;  %v839_v59 = vmul.f32 0.2, %v823_v52 }
 0x3a8   :  { %v842_v60 = vsel %vm826_vm6, %v818_v49, %v834_v55  ;;  %v846_v57 = vsel %vm830_vm7, %v822_v50, %v838_v56  ;;  %v1147_v56 = vunpack.c.h.s8.bf16 %v931_v34 }
 0x3a9   :  { %v843_v61 = vsel %vm827_vm8, %v819_v51, %v835_v58  ;;  %v847_v62 = vsel %vm831_vm9, %v823_v52, %v839_v59  ;;  %v4297_v63 = vpack.c.bf16 %v846_v57, %v842_v60  ;;  %v1149_v58 = vunpack.c.h.s8.bf16 %v933_v27  ;;  %v939_v60 = vld [vmem:[#allocation8 + $0x2c8] sm:$0xff]  ;;  %v941_v57 = vld [vmem:[#allocation8 + $0x2d8] sm:$0xff] }
 0x3aa   :  { %v4299_v1 = vpack.c.bf16 %v847_v62, %v843_v61  ;;  %v1163_v27 = vunpack.c.h.s8.bf16 %v939_v60 }
 0x3ac   :  { %1270 = vmatprep.mubr.bf16.mxu0 %v4299_v1  ;;  %1356 = vmatprep.mubr.bf16.mxu1 %v4299_v1 }
 0x3ad   :  { %1271 = vmatmul.mubr.bf16.vlgmr.msra.gmra.mrb[8].mxu0 %v4297_v63  ;;  %1357 = vmatmul.mubr.bf16.vlgmr.msra.gmra.mrb[12].mxu1 %v4297_v63 }
 0x3ae   :  { %1282 = vmatpush1.bf16.msra.mxu0 %v1106_v2  ;;  %1368 = vmatpush1.bf16.msra.mxu1 %v1108_v3  ;;  %v1146_v3 = vunpack.c.h.s8.bf16 %v930_v46  ;;  %v1164_v46 = vunpack.c.h.s8.bf16 %v940_v18 }
 0x3af   :  { %1283 = vmatprep.subr.bf16.mxu0 %v1115_v4  ;;  %1369 = vmatprep.subr.bf16.mxu1 %v1117_v5 }
 0x3b2   :  { %1284 = vmatpush1.bf16.msra.mxu0 %v1114_v11  ;;  %1370 = vmatpush1.bf16.msra.mxu1 %v1116_v14 }
 0x3b3   :  { %1285 = vmatprep.subr.bf16.mxu0 %v1123_v9  ;;  %1371 = vmatprep.subr.bf16.mxu1 %v1125_v15  ;;  %v1155_v9 = vunpack.c.l.s8.bf16 %v939_v60  ;;  %v1157_v15 = vunpack.c.l.s8.bf16 %v941_v57 }
 0x3b4   :  { %v570_v28 = vpop.f32.mrb[8].mxu1 }
 0x3b5   :  { %v603_v35 = vmul.f32 %v592_v19, %v570_v28  ;;  %v572_v37 = vpop.f32.mrb[9].mxu1  ;;  %v1156_v28 = vunpack.c.l.s8.bf16 %v940_v18 }
 0x3b6   :  { %v604_v38 = vmul.f32 %v596_v20, %v572_v37  ;;  %v574_v39 = vpop.f32.mrb[10].mxu1  ;;  %1286 = vmatpush1.bf16.msra.mxu0 %v1122_v21  ;;  %1372 = vmatpush1.bf16.msra.mxu1 %v1124_v22 }
 0x3b7   :  { %v4321_v41 = vadd.f32 %v622_v23, %v603_v35  ;;  %v607_v42 = vmul.f32 %v592_v19, %v574_v39  ;;  %v576_v43 = vpop.f32.mrb[11].mxu1  ;;  %1287 = vmatprep.subr.bf16.mxu0 %v1131_v25  ;;  %1373 = vmatprep.subr.bf16.mxu1 %v1133_v26  ;;  %v1154_v26 = vunpack.c.l.s8.bf16 %v938_v16  ;;  %v1165_v35 = vunpack.c.h.s8.bf16 %v941_v57  ;;  %v947_v39 = vld [vmem:[#allocation8 + $0x308] sm:$0xff] }
 0x3b8   :  { %v4323_v47 = vadd.f32 %v626_v29, %v604_v38  ;;  %v608_v48 = vmul.f32 %v596_v20, %v576_v43 }
 0x3b9   :  { %v653_v49 = vmul.f32 %v4240_v17, %v4321_v41  ;;  %v4327_v50 = vadd.f32 %v622_v23, %v607_v42 }
 0x3ba   :  { %v654_v51 = vmul.f32 %v4240_v17, %v4323_v47  ;;  %v4331_v52 = vadd.f32 %v626_v29, %v608_v48  ;;  %1288 = vmatpush1.bf16.msra.mxu0 %v1130_v12  ;;  %1374 = vmatpush1.bf16.msra.mxu1 %v1132_v40  ;;  %v949_v12 = vld [vmem:[#allocation8 + $0x318] sm:$0xff] }
 0x3bb   :  { %v657_v55 = vmul.f32 %v4256_v36, %v4327_v50  ;;  %1289 = vmatprep.subr.bf16.mxu0 %v1139_v44  ;;  %1375 = vmatprep.subr.bf16.mxu1 %v1141_v45  ;;  %v694_v61 = vmul.f32 %v653_v49, %v4321_v41  ;;  %v1162_v45 = vunpack.c.h.s8.bf16 %v938_v16 }
 0x3bc   :  { %v658_v59 = vmul.f32 %v4256_v36, %v4331_v52  ;;  %v695_v4 = vmul.f32 %v654_v51, %v4323_v47 }
 0x3bd   :  { %v673_v62 = vadd.f32 %v657_v55, %v653_v49  ;;  %v698_v2 = vmul.f32 %v657_v55, %v4327_v50  ;;  %v1171_v49 = vunpack.c.l.s8.bf16 %v947_v39 }
 0x3be   :  { %v680_v5 = vadd.f32 %v658_v59, %v654_v51  ;;  %v699_v6 = vmul.f32 %v658_v59, %v4331_v52  ;;  %1290 = vmatpush1.bf16.msra.mxu0 %v1138_v53  ;;  %1376 = vmatpush1.bf16.msra.mxu1 %v1140_v54  ;;  %v1173_v51 = vunpack.c.l.s8.bf16 %v949_v12  ;;  %v946_v53 = vld [vmem:[#allocation8 + $0x300] sm:$0xff] }
 0x3bf   :  { %v674_v11 = vrot.slane %v673_v62, 4  ;;  %v714_v14 = vadd.f32 %v698_v2, %v694_v61  ;;  %1291 = vmatprep.subr.bf16.mxu0 %v1147_v56  ;;  %1377 = vmatprep.subr.bf16.mxu1 %v1149_v58  ;;  %v948_v56 = vld [vmem:[#allocation8 + $0x310] sm:$0xff]  ;;  %v1170_v61 = vunpack.c.l.s8.bf16 %v946_v53 }
 0x3c0   :  { %v681_v19 = vrot.slane %v680_v5, 4  ;;  %v721_v20 = vadd.f32 %v699_v6, %v695_v4  ;;  %v1179_v4 = vunpack.c.h.s8.bf16 %v947_v39 }
 0x3c1   :  { %v675_v21 = vadd.f32 %v674_v11, %v673_v62  ;;  %v715_v22 = vrot.slane %v714_v14, 4  ;;  %v1178_v11 = vunpack.c.h.s8.bf16 %v946_v53 }
 0x3c2   :  { %v682_v23 = vadd.f32 %v681_v19, %v680_v5  ;;  %v722_v25 = vrot.slane %v721_v20, 4  ;;  %1292 = vmatpush1.bf16.msra.mxu0 %v1146_v3  ;;  %1378 = vmatpush1.bf16.msra.mxu1 %v1148_v7  ;;  %v1172_v3 = vunpack.c.l.s8.bf16 %v948_v56  ;;  %v1181_v7 = vunpack.c.h.s8.bf16 %v949_v12  ;;  %v957_v19 = vld [vmem:[#allocation8 + $0x358] sm:$0xff] }
 0x3c3   :  { %v676_v29 = vrot.slane %v675_v21, 2  ;;  %v716_v34 = vadd.f32 %v715_v22, %v714_v14  ;;  %1293 = vmatprep.subr.bf16.mxu0 %v1155_v9  ;;  %1379 = vmatprep.subr.bf16.mxu1 %v1157_v15  ;;  %v955_v14 = vld [vmem:[#allocation8 + $0x348] sm:$0xff] }
 0x3c4   :  { %v683_v37 = vrot.slane %v682_v23, 2  ;;  %v723_v38 = vadd.f32 %v722_v25, %v721_v20 }
 0x3c5   :  { %v677_v40 = vadd.f32 %v676_v29, %v675_v21  ;;  %v717_v42 = vrot.slane %v716_v34, 2  ;;  %v954_v29 = vld [vmem:[#allocation8 + $0x340] sm:$0xff] }
 0x3c6   :  { %v684_v43 = vadd.f32 %v683_v37, %v682_v23  ;;  %v724_v44 = vrot.slane %v723_v38, 2  ;;  %1294 = vmatpush1.bf16.msra.mxu0 %v1154_v26  ;;  %1380 = vmatpush1.bf16.msra.mxu1 %v1156_v28  ;;  %v1180_v26 = vunpack.c.h.s8.bf16 %v948_v56  ;;  %v1187_v28 = vunpack.c.l.s8.bf16 %v955_v14 }
 0x3c7   :  { %v678_v13 = vrot.slane %v677_v40, 1  ;;  %v718_v48 = vadd.f32 %v717_v42, %v716_v34  ;;  %1295 = vmatprep.subr.bf16.mxu0 %v1163_v27  ;;  %1381 = vmatprep.subr.bf16.mxu1 %v1165_v35  ;;  %v1189_v27 = vunpack.c.l.s8.bf16 %v957_v19  ;;  %v956_v35 = vld [vmem:[#allocation8 + $0x350] sm:$0xff]  ;;  %v1186_v39 = vunpack.c.l.s8.bf16 %v954_v29 }
 0x3c8   :  { %v685_v54 = vrot.slane %v684_v43, 1  ;;  %v725_v55 = vadd.f32 %v724_v44, %v723_v38  ;;  %v1195_v42 = vunpack.c.h.s8.bf16 %v955_v14  ;;  %v1197_v44 = vunpack.c.h.s8.bf16 %v957_v19  ;;  %v972_v19 = vld [vmem:[#allocation8 + $0x3d0] sm:$0xff] }
 0x3c9   :  { %v679_v58 = vadd.f32 %v678_v13, %v677_v40  ;;  %v719_v59 = vrot.slane %v718_v48, 1  ;;  %v1188_v40 = vunpack.c.l.s8.bf16 %v956_v35  ;;  %v1194_v13 = vunpack.c.h.s8.bf16 %v954_v29 }
 0x3ca   :  { %v686_v60 = vadd.f32 %v685_v54, %v684_v43  ;;  %v726_v57 = vrot.slane %v725_v55, 1  ;;  %1296 = vmatpush1.bf16.msra.mxu0 %v1162_v45  ;;  %1382 = vmatpush1.bf16.msra.mxu1 %v1164_v46  ;;  %v963_v45 = vld [vmem:[#allocation8 + $0x388] sm:$0xff]  ;;  %v965_v46 = vld [vmem:[#allocation8 + $0x398] sm:$0xff]  ;;  %v964_v54 = vld [vmem:[#allocation8 + $0x390] sm:$0xff] }
 0x3cb   :  { %v4342_v62 = vmul.f32 %v4269_v0, %v679_v58  ;;  %v720_v2 = vadd.f32 %v719_v59, %v718_v48  ;;  %1297 = vmatprep.subr.bf16.mxu0 %v1171_v49  ;;  %1383 = vmatprep.subr.bf16.mxu1 %v1173_v51  ;;  %v1196_v48 = vunpack.c.h.s8.bf16 %v956_v35  ;;  %v1203_v49 = vunpack.c.l.s8.bf16 %v963_v45  ;;  %v962_v51 = vld [vmem:[#allocation8 + $0x380] sm:$0xff] }
 0x3cc   :  { %v4345_v5 = vmul.f32 %v4269_v0, %v686_v60  ;;  %v727_v6 = vadd.f32 %v726_v57, %v725_v55  ;;  %v1205_v53 = vunpack.c.l.s8.bf16 %v965_v46  ;;  %v1202_v55 = vunpack.c.l.s8.bf16 %v962_v51  ;;  %v971_v60 = vld [vmem:[#allocation8 + $0x3c8] sm:$0xff]  ;;  %v973_v57 = vld [vmem:[#allocation8 + $0x3d8] sm:$0xff] }
 0x3cd   :  { %v730_v9 = vmul.f32 %v720_v2, %v4269_v0  ;;  %v734_v15 = vmul.f32 %v4342_v62, %v4342_v62  ;;  %v746_v16 = vsub.f32 %v4321_v41, %v4342_v62  ;;  %v750_v18 = vsub.f32 %v4327_v50, %v4342_v62  ;;  %v855_v41 = vld [vmem:[#allocation8 + $0x28] sm:$0xff] }
 0x3ce   :  { %v731_v20 = vmul.f32 %v727_v6, %v4269_v0  ;;  %v735_v21 = vmul.f32 %v4345_v5, %v4345_v5  ;;  %v747_v22 = vsub.f32 %v4323_v47, %v4345_v5  ;;  %v751_v23 = vsub.f32 %v4331_v52, %v4345_v5  ;;  %1298 = vmatpush1.bf16.msra.mxu0 %v1170_v61 }
 0x3cf   :  { %v738_v25 = vsub.f32 %v730_v9, %v734_v15  ;;  %1384 = vmatpush1.bf16.msra.mxu1 %v1172_v3  ;;  %1299 = vmatprep.subr.bf16.mxu0 %v1179_v4  ;;  %v1204_v56 = vunpack.c.l.s8.bf16 %v964_v54  ;;  %v1211_v58 = vunpack.c.h.s8.bf16 %v963_v45  ;;  %v1213_v59 = vunpack.c.h.s8.bf16 %v965_v46  ;;  %v856_v45 = vld [vmem:[#allocation8 + $0x30] sm:$0xff] }
 0x3d0   :  { %v739_v34 = vsub.f32 %v731_v20, %v735_v21  ;;  %1385 = vmatprep.subr.bf16.mxu1 %v1181_v7  ;;  %v780_v61 = vrot.slane %v4282_v24, %v4308_v10  ;;  %v1210_v2 = vunpack.c.h.s8.bf16 %v962_v51  ;;  %v784_v4 = vrot.slane %v4282_v24, %v4311_v8 }
 0x3d1   :  { %v742_v37 = vmax.f32 %v738_v25, 0.0  ;;  %v1212_v6 = vunpack.c.h.s8.bf16 %v964_v54  ;;  %v1219_v7 = vunpack.c.l.s8.bf16 %v971_v60  ;;  %v1221_v15 = vunpack.c.l.s8.bf16 %v973_v57 }
 0x3d2   :  { %v743_v38 = vmax.f32 %v739_v34, 0.0  ;;  %1300 = vmatpush1.bf16.msra.mxu0 %v1178_v11  ;;  %v970_v11 = vld [vmem:[#allocation8 + $0x3c0] sm:$0xff]  ;;  %v809_v24 = vrot.slane %v4287_v32, %v4308_v10  ;;  %v813_v50 = vrot.slane %v4287_v32, %v4311_v8  ;;  %v1227_v29 = vunpack.c.h.s8.bf16 %v971_v60 }
 0x3d3   :  { %v754_v12 = vadd.f32 1e-05, %v742_v37  ;;  %1386 = vmatpush1.bf16.msra.mxu1 %v1180_v26  ;;  %1301 = vmatprep.subr.bf16.mxu0 %v1187_v28  ;;  %v1218_v26 = vunpack.c.l.s8.bf16 %v970_v11  ;;  %v1229_v52 = vunpack.c.h.s8.bf16 %v973_v57  ;;  %v1228_v5 = vunpack.c.h.s8.bf16 %v972_v19  ;;  %v857_v37 = vld [vmem:[#allocation8 + $0x38] sm:$0xff] }
 0x3d4   :  { %v755_v43 = vadd.f32 1e-05, %v743_v38  ;;  %1387 = vmatprep.subr.bf16.mxu1 %v1189_v27  ;;  %v983_v32 = vunpack.c.l.s8.bf16 %v855_v41  ;;  %v854_v38 = vld [vmem:[#allocation8 + $0x20] sm:$0xff]  ;;  %v984_v54 = vunpack.c.l.s8.bf16 %v856_v45  ;;  %v992_v57 = vunpack.c.h.s8.bf16 %v856_v45 }
 0x3d5   :  { %3846 = vrsqrt.f32 %v754_v12  ;;  %v990_v60 = vunpack.c.h.s8.bf16 %v854_v38 }
 0x3d6   :  { %3848 = vrsqrt.f32 %v755_v43  ;;  %1302 = vmatpush1.bf16.msra.mxu0 %v1186_v39 }
 0x3d7   :  { %1388 = vmatpush1.bf16.msra.mxu1 %v1188_v40  ;;  %1303 = vmatprep.subr.bf16.mxu0 %v1195_v42 }
 0x3d8   :  { %1389 = vmatprep.subr.bf16.mxu1 %v1197_v44 }
 0x3da   :  { %1304 = vmatpush1.bf16.msra.mxu0 %v1194_v13 }
 0x3db   :  { %1390 = vmatpush1.bf16.msra.mxu1 %v1196_v48  ;;  %1305 = vmatprep.subr.bf16.mxu0 %v1203_v49  ;;  %v985_v49 = vunpack.c.l.s8.bf16 %v857_v37 }
 0x3dc   :  { %1391 = vmatprep.subr.bf16.mxu1 %v1205_v53  ;;  %v982_v53 = vunpack.c.l.s8.bf16 %v854_v38 }
 0x3de   :  { %1306 = vmatpush1.bf16.msra.mxu0 %v1202_v55  ;;  %v991_v55 = vunpack.c.h.s8.bf16 %v855_v41  ;;  %v879_v41 = vld [vmem:[#allocation8 + $0xe8] sm:$0xff] }
 0x3df   :  { %v3847_v3 = vpop.eup %3846  ;;  %1392 = vmatpush1.bf16.msra.mxu1 %v1204_v56  ;;  %1307 = vmatprep.subr.bf16.mxu0 %v1211_v58  ;;  %v863_v56 = vld [vmem:[#allocation8 + $0x68] sm:$0xff]  ;;  %v993_v58 = vunpack.c.h.s8.bf16 %v857_v37  ;;  %v889_v37 = vld [vmem:[#allocation8 + $0x138] sm:$0xff] }
 0x3e0   :  { %v3849_v14 = vpop.eup %3848  ;;  %v766_v9 = vmul.f32 %v3847_v3, %v750_v18  ;;  %1393 = vmatprep.subr.bf16.mxu1 %v1213_v59  ;;  %v762_v20 = vmul.f32 %v3847_v3, %v746_v16  ;;  %v1220_v16 = vunpack.c.l.s8.bf16 %v972_v19  ;;  %v865_v59 = vld [vmem:[#allocation8 + $0x78] sm:$0xff] }
 0x3e1   :  { %v767_v21 = vmul.f32 %v3849_v14, %v751_v23  ;;  %v763_v25 = vmul.f32 %v3849_v14, %v747_v22  ;;  %v1226_v23 = vunpack.c.h.s8.bf16 %v970_v11  ;;  %v1001_v3 = vunpack.c.l.s8.bf16 %v865_v59 }
 0x3e2   :  { %v795_v18 = vmul.f32 %v780_v61, %v766_v9  ;;  %1308 = vmatpush1.bf16.msra.mxu0 %v1210_v2  ;;  %v791_v28 = vmul.f32 %v780_v61, %v762_v20  ;;  %v999_v61 = vunpack.c.l.s8.bf16 %v863_v56  ;;  %v862_v2 = vld [vmem:[#allocation8 + $0x60] sm:$0xff]  ;;  %v1007_v11 = vunpack.c.h.s8.bf16 %v863_v56  ;;  %v871_v9 = vld [vmem:[#allocation8 + $0xa8] sm:$0xff] }
 0x3e3   :  { %v796_v62 = vmul.f32 %v784_v4, %v767_v21  ;;  %1394 = vmatpush1.bf16.msra.mxu1 %v1212_v6  ;;  %1309 = vmatprep.subr.bf16.mxu0 %v1219_v7  ;;  %v792_v34 = vmul.f32 %v784_v4, %v763_v25  ;;  %v864_v4 = vld [vmem:[#allocation8 + $0x70] sm:$0xff]  ;;  %v998_v6 = vunpack.c.l.s8.bf16 %v862_v2  ;;  %v1009_v14 = vunpack.c.h.s8.bf16 %v865_v59 }
 0x3e4   :  { %1395 = vmatprep.subr.bf16.mxu1 %v1221_v15  ;;  %v820_v27 = vadd.f32 %v809_v24, %v791_v28  ;;  %v824_v47 = vadd.f32 %v809_v24, %v795_v18  ;;  %v1000_v7 = vunpack.c.l.s8.bf16 %v864_v4  ;;  %v873_v15 = vld [vmem:[#allocation8 + $0xb8] sm:$0xff]  ;;  %v1006_v19 = vunpack.c.h.s8.bf16 %v862_v2  ;;  %v870_v24 = vld [vmem:[#allocation8 + $0xa0] sm:$0xff]  ;;  %v872_v25 = vld [vmem:[#allocation8 + $0xb0] sm:$0xff] }
 0x3e5   :  { %v821_v22 = vadd.f32 %v813_v50, %v792_v34  ;;  %v825_v35 = vadd.f32 %v813_v50, %v796_v62  ;;  %v1008_v20 = vunpack.c.h.s8.bf16 %v864_v4  ;;  %v1017_v21 = vunpack.c.l.s8.bf16 %v873_v15  ;;  %v881_v62 = vld [vmem:[#allocation8 + $0xf8] sm:$0xff]  ;;  %v903_v4 = vld [vmem:[#allocation8 + $0x1a8] sm:$0xff] }
 0x3e6   :  { %1310 = vmatpush1.bf16.msra.mxu0 %v1218_v26  ;;  %vm828_vm10 = vcmp.gt.f32.partialorder %v820_v27, 0.0  ;;  %vm832_vm11 = vcmp.gt.f32.partialorder %v824_v47, 0.0  ;;  %v836_v39 = vmul.f32 0.2, %v820_v27  ;;  %v840_v12 = vmul.f32 0.2, %v824_v47 }
 0x3e7   :  { %1396 = vmatpush1.bf16.msra.mxu1 %v1220_v16  ;;  %1311 = vmatprep.subr.bf16.mxu0 %v1227_v29  ;;  %vm829_vm12 = vcmp.gt.f32.partialorder %v821_v22, 0.0  ;;  %vm833_vm13 = vcmp.gt.f32.partialorder %v825_v35, 0.0  ;;  %v837_v40 = vmul.f32 0.2, %v821_v22  ;;  %v841_v42 = vmul.f32 0.2, %v825_v35 }
 0x3e8   :  { %1397 = vmatprep.subr.bf16.mxu1 %v1229_v52  ;;  %v844_v43 = vsel %vm828_vm10, %v820_v27, %v836_v39  ;;  %v848_v44 = vsel %vm832_vm11, %v824_v47, %v840_v12  ;;  %v1014_v50 = vunpack.c.l.s8.bf16 %v870_v24  ;;  %v1016_v18 = vunpack.c.l.s8.bf16 %v872_v25  ;;  %v878_v52 = vld [vmem:[#allocation8 + $0xe0] sm:$0xff]  ;;  %v880_v27 = vld [vmem:[#allocation8 + $0xf0] sm:$0xff] }
 0x3e9   :  { %v845_v46 = vsel %vm829_vm12, %v821_v22, %v837_v40  ;;  %v849_v13 = vsel %vm833_vm13, %v825_v35, %v841_v42  ;;  %v4381_v48 = vpack.c.bf16 %v848_v44, %v844_v43  ;;  %v1023_v26 = vunpack.c.h.s8.bf16 %v871_v9  ;;  %v886_v40 = vld [vmem:[#allocation8 + $0x120] sm:$0xff]  ;;  %v888_v43 = vld [vmem:[#allocation8 + $0x130] sm:$0xff] }
 0x3ea   :  { %1312 = vmatpush1.bf16.msra.mxu0 %v1226_v23  ;;  %v4383_v51 = vpack.c.bf16 %v849_v13, %v845_v46  ;;  %v1025_v28 = vunpack.c.h.s8.bf16 %v873_v15  ;;  %v1022_v16 = vunpack.c.h.s8.bf16 %v870_v24  ;;  %v1024_v29 = vunpack.c.h.s8.bf16 %v872_v25  ;;  %v911_v25 = vld [vmem:[#allocation8 + $0x1e8] sm:$0xff] }
 0x3eb   :  { %1398 = vmatpush1.bf16.msra.mxu1 %v1228_v5  ;;  %1410 = vmatprep.subr.bf16.mxu0 %v983_v32  ;;  %v1031_v34 = vunpack.c.l.s8.bf16 %v879_v41  ;;  %v1033_v23 = vunpack.c.l.s8.bf16 %v881_v62  ;;  %v1030_v47 = vunpack.c.l.s8.bf16 %v878_v52  ;;  %v1032_v5 = vunpack.c.l.s8.bf16 %v880_v27  ;;  %v887_v32 = vld [vmem:[#allocation8 + $0x128] sm:$0xff] }
 0x3ec   :  { %1313 = vmatprep.mubr.bf16.mxu0 %v4383_v51  ;;  %1399 = vmatprep.mubr.bf16.mxu1 %v4383_v51  ;;  %v1039_v22 = vunpack.c.h.s8.bf16 %v879_v41  ;;  %v1041_v35 = vunpack.c.h.s8.bf16 %v881_v62  ;;  %v1038_v38 = vunpack.c.h.s8.bf16 %v878_v52  ;;  %v1040_v39 = vunpack.c.h.s8.bf16 %v880_v27  ;;  %v910_v41 = vld [vmem:[#allocation8 + $0x1e0] sm:$0xff]  ;;  %v919_v27 = vld [vmem:[#allocation8 + $0x228] sm:$0xff] }
 0x3ed   :  { %1314 = vmatmul.mubr.bf16.vlgmr.msra.gmra.mrb[8].mxu0 %v4381_v48  ;;  %1496 = vmatprep.subr.bf16.mxu1 %v985_v49  ;;  %v1047_v12 = vunpack.c.l.s8.bf16 %v887_v32  ;;  %v1049_v42 = vunpack.c.l.s8.bf16 %v889_v37  ;;  %v1046_v44 = vunpack.c.l.s8.bf16 %v886_v40  ;;  %v1048_v45 = vunpack.c.l.s8.bf16 %v888_v43  ;;  %v895_v49 = vld [vmem:[#allocation8 + $0x168] sm:$0xff] }
 0x3ee   :  { %1400 = vmatmul.mubr.bf16.vlgmr.msra.gmra.mrb[12].mxu1 %v4381_v48  ;;  %1411 = vmatpush1.bf16.msra.mxu0 %v982_v53  ;;  %v1055_v46 = vunpack.c.h.s8.bf16 %v887_v32  ;;  %v1057_v13 = vunpack.c.h.s8.bf16 %v889_v37  ;;  %v897_v53 = vld [vmem:[#allocation8 + $0x178] sm:$0xff]  ;;  %v1063_v56 = vunpack.c.l.s8.bf16 %v895_v49  ;;  %v1071_v2 = vunpack.c.h.s8.bf16 %v895_v49  ;;  %v918_v32 = vld [vmem:[#allocation8 + $0x220] sm:$0xff] }
 0x3ef   :  { %1442 = vmatprep.mubr.bf16.mxu0 %v4299_v1  ;;  %1497 = vmatpush1.bf16.msra.mxu1 %v984_v54  ;;  %v1054_v54 = vunpack.c.h.s8.bf16 %v886_v40  ;;  %v1065_v59 = vunpack.c.l.s8.bf16 %v897_v53  ;;  %v1087_v24 = vunpack.c.h.s8.bf16 %v903_v4  ;;  %v1103_v52 = vunpack.c.h.s8.bf16 %v911_v25  ;;  %v926_v49 = vld [vmem:[#allocation8 + $0x260] sm:$0xff] }
 0x3f0   :  { %1528 = vmatprep.mubr.bf16.mxu1 %v4299_v1  ;;  %1412 = vmatprep.subr.bf16.mxu0 %v991_v55  ;;  %v1015_v1 = vunpack.c.l.s8.bf16 %v871_v9  ;;  %v1056_v55 = vunpack.c.h.s8.bf16 %v888_v43  ;;  %v902_v9 = vld [vmem:[#allocation8 + $0x1a0] sm:$0xff]  ;;  %v1119_v40 = vunpack.c.h.s8.bf16 %v919_v27 }
 0x3f1   :  { %1498 = vmatprep.subr.bf16.mxu1 %v993_v58  ;;  %v894_v58 = vld [vmem:[#allocation8 + $0x160] sm:$0xff] }
 0x3f2   :  { %1413 = vmatpush1.bf16.msra.mxu0 %v990_v60  ;;  %v896_v60 = vld [vmem:[#allocation8 + $0x170] sm:$0xff] }
 0x3f3   :  { %1499 = vmatpush1.bf16.msra.mxu1 %v992_v57  ;;  %1414 = vmatprep.subr.bf16.mxu0 %v999_v61  ;;  %v1062_v57 = vunpack.c.l.s8.bf16 %v894_v58  ;;  %v1064_v61 = vunpack.c.l.s8.bf16 %v896_v60 }
 0x3f4   :  { %1500 = vmatprep.subr.bf16.mxu1 %v1001_v3  ;;  %v1073_v3 = vunpack.c.h.s8.bf16 %v897_v53 }
 0x3f6   :  { %1415 = vmatpush1.bf16.msra.mxu0 %v998_v6  ;;  %v905_v6 = vld [vmem:[#allocation8 + $0x1b8] sm:$0xff] }
 0x3f7   :  { %1501 = vmatpush1.bf16.msra.mxu1 %v1000_v7  ;;  %1416 = vmatprep.subr.bf16.mxu0 %v1007_v11  ;;  %v1070_v7 = vunpack.c.h.s8.bf16 %v894_v58  ;;  %v1072_v11 = vunpack.c.h.s8.bf16 %v896_v60  ;;  %v1081_v15 = vunpack.c.l.s8.bf16 %v905_v6  ;;  %v937_v60 = vld [vmem:[#allocation8 + $0x2b8] sm:$0xff] }
 0x3f8   :  { %1502 = vmatprep.subr.bf16.mxu1 %v1009_v14  ;;  %v1079_v14 = vunpack.c.l.s8.bf16 %v903_v4  ;;  %v936_v4 = vld [vmem:[#allocation8 + $0x2b0] sm:$0xff] }
 0x3fa   :  { %1417 = vmatpush1.bf16.msra.mxu0 %v1006_v19  ;;  %v904_v19 = vld [vmem:[#allocation8 + $0x1b0] sm:$0xff] }
 0x3fb   :  { %1503 = vmatpush1.bf16.msra.mxu1 %v1008_v20  ;;  %1418 = vmatprep.subr.bf16.mxu0 %v1015_v1  ;;  %v1078_v20 = vunpack.c.l.s8.bf16 %v902_v9  ;;  %v1080_v1 = vunpack.c.l.s8.bf16 %v904_v19 }
 0x3fc   :  { %1504 = vmatprep.subr.bf16.mxu1 %v1017_v21  ;;  %v1089_v21 = vunpack.c.h.s8.bf16 %v905_v6 }
 0x3fe   :  { %1419 = vmatpush1.bf16.msra.mxu0 %v1014_v50  ;;  %v913_v50 = vld [vmem:[#allocation8 + $0x1f8] sm:$0xff] }
 0x3ff   :  { %1505 = vmatpush1.bf16.msra.mxu1 %v1016_v18  ;;  %1420 = vmatprep.subr.bf16.mxu0 %v1023_v26  ;;  %v1086_v18 = vunpack.c.h.s8.bf16 %v902_v9  ;;  %v1088_v26 = vunpack.c.h.s8.bf16 %v904_v19  ;;  %v1097_v62 = vunpack.c.l.s8.bf16 %v913_v50  ;;  %v943_v9 = vld [vmem:[#allocation8 + $0x2e8] sm:$0xff] }
 0x400   :  { %1506 = vmatprep.subr.bf16.mxu1 %v1025_v28  ;;  %v1095_v28 = vunpack.c.l.s8.bf16 %v911_v25  ;;  %v944_v25 = vld [vmem:[#allocation8 + $0x2f0] sm:$0xff] }
 0x402   :  { %1421 = vmatpush1.bf16.msra.mxu0 %v1022_v16  ;;  %v912_v16 = vld [vmem:[#allocation8 + $0x1f0] sm:$0xff] }
 0x403   :  { %1507 = vmatpush1.bf16.msra.mxu1 %v1024_v29  ;;  %1422 = vmatprep.subr.bf16.mxu0 %v1031_v34  ;;  %v1094_v29 = vunpack.c.l.s8.bf16 %v910_v41  ;;  %v1096_v34 = vunpack.c.l.s8.bf16 %v912_v16 }
 0x404   :  { %1508 = vmatprep.subr.bf16.mxu1 %v1033_v23  ;;  %v1105_v23 = vunpack.c.h.s8.bf16 %v913_v50 }
 0x406   :  { %1423 = vmatpush1.bf16.msra.mxu0 %v1030_v47  ;;  %v921_v47 = vld [vmem:[#allocation8 + $0x238] sm:$0xff] }
 0x407   :  { %1509 = vmatpush1.bf16.msra.mxu1 %v1032_v5  ;;  %1424 = vmatprep.subr.bf16.mxu0 %v1039_v22  ;;  %v1102_v5 = vunpack.c.h.s8.bf16 %v910_v41  ;;  %v1104_v22 = vunpack.c.h.s8.bf16 %v912_v16  ;;  %v1113_v37 = vunpack.c.l.s8.bf16 %v921_v47  ;;  %v1121_v43 = vunpack.c.h.s8.bf16 %v921_v47  ;;  %v951_v41 = vld [vmem:[#allocation8 + $0x328] sm:$0xff] }
 0x408   :  { %1510 = vmatprep.subr.bf16.mxu1 %v1041_v35  ;;  %v1111_v35 = vunpack.c.l.s8.bf16 %v919_v27  ;;  %v952_v27 = vld [vmem:[#allocation8 + $0x330] sm:$0xff] }
 0x40a   :  { %1425 = vmatpush1.bf16.msra.mxu0 %v1038_v38  ;;  %v920_v38 = vld [vmem:[#allocation8 + $0x230] sm:$0xff] }
 0x40b   :  { %1511 = vmatpush1.bf16.msra.mxu1 %v1040_v39  ;;  %1426 = vmatprep.subr.bf16.mxu0 %v1047_v12  ;;  %v1110_v39 = vunpack.c.l.s8.bf16 %v918_v32  ;;  %v1112_v12 = vunpack.c.l.s8.bf16 %v920_v38 }
 0x40c   :  { %1512 = vmatprep.subr.bf16.mxu1 %v1049_v42  ;;  %v927_v42 = vld [vmem:[#allocation8 + $0x268] sm:$0xff] }
 0x40e   :  { %1427 = vmatpush1.bf16.msra.mxu0 %v1046_v44  ;;  %v929_v44 = vld [vmem:[#allocation8 + $0x278] sm:$0xff] }
 0x40f   :  { %1513 = vmatpush1.bf16.msra.mxu1 %v1048_v45  ;;  %1428 = vmatprep.subr.bf16.mxu0 %v1055_v46  ;;  %v1118_v45 = vunpack.c.h.s8.bf16 %v918_v32  ;;  %v1120_v46 = vunpack.c.h.s8.bf16 %v920_v38  ;;  %v1129_v53 = vunpack.c.l.s8.bf16 %v929_v44  ;;  %v1137_v58 = vunpack.c.h.s8.bf16 %v929_v44  ;;  %v959_v32 = vld [vmem:[#allocation8 + $0x368] sm:$0xff] }
 0x410   :  { %1514 = vmatprep.subr.bf16.mxu1 %v1057_v13  ;;  %v1127_v13 = vunpack.c.l.s8.bf16 %v927_v42 }
 0x412   :  { %1429 = vmatpush1.bf16.msra.mxu0 %v1054_v54  ;;  %v928_v54 = vld [vmem:[#allocation8 + $0x270] sm:$0xff] }
 0x413   :  { %1515 = vmatpush1.bf16.msra.mxu1 %v1056_v55  ;;  %1430 = vmatprep.subr.bf16.mxu0 %v1063_v56  ;;  %v1126_v55 = vunpack.c.l.s8.bf16 %v926_v49  ;;  %v1128_v56 = vunpack.c.l.s8.bf16 %v928_v54 }
 0x414   :  { %1516 = vmatprep.subr.bf16.mxu1 %v1065_v59  ;;  %v935_v59 = vld [vmem:[#allocation8 + $0x2a8] sm:$0xff] }
 0x416   :  { %1431 = vmatpush1.bf16.msra.mxu0 %v1062_v57  ;;  %v1134_v57 = vunpack.c.h.s8.bf16 %v926_v49  ;;  %v967_v49 = vld [vmem:[#allocation8 + $0x3a8] sm:$0xff] }
 0x417   :  { %1517 = vmatpush1.bf16.msra.mxu1 %v1064_v61  ;;  %1432 = vmatprep.subr.bf16.mxu0 %v1071_v2  ;;  %v1136_v61 = vunpack.c.h.s8.bf16 %v928_v54  ;;  %v934_v2 = vld [vmem:[#allocation8 + $0x2a0] sm:$0xff] }
 0x418   :  { %1518 = vmatprep.subr.bf16.mxu1 %v1073_v3  ;;  %v1145_v3 = vunpack.c.l.s8.bf16 %v937_v60  ;;  %v1142_v6 = vunpack.c.l.s8.bf16 %v934_v2  ;;  %v1150_v19 = vunpack.c.h.s8.bf16 %v934_v2  ;;  %v975_v2 = vld [vmem:[#allocation8 + $0x3e8] sm:$0xff] }
 0x41a   :  { %1433 = vmatpush1.bf16.msra.mxu0 %v1070_v7  ;;  %v1144_v7 = vunpack.c.l.s8.bf16 %v936_v4 }
 0x41b   :  { %1519 = vmatpush1.bf16.msra.mxu1 %v1072_v11  ;;  %1434 = vmatprep.subr.bf16.mxu0 %v1079_v14  ;;  %v1151_v11 = vunpack.c.h.s8.bf16 %v935_v59  ;;  %v1153_v14 = vunpack.c.h.s8.bf16 %v937_v60 }
 0x41c   :  { %1520 = vmatprep.subr.bf16.mxu1 %v1081_v15  ;;  %v945_v15 = vld [vmem:[#allocation8 + $0x2f8] sm:$0xff] }
 0x41e   :  { %1435 = vmatpush1.bf16.msra.mxu0 %v1078_v20  ;;  %v1152_v20 = vunpack.c.h.s8.bf16 %v936_v4 }
 0x41f   :  { %1521 = vmatpush1.bf16.msra.mxu1 %v1080_v1  ;;  %1436 = vmatprep.subr.bf16.mxu0 %v1087_v24  ;;  %v1159_v1 = vunpack.c.l.s8.bf16 %v943_v9  ;;  %v942_v24 = vld [vmem:[#allocation8 + $0x2e0] sm:$0xff] }
 0x420   :  { %1522 = vmatprep.subr.bf16.mxu1 %v1089_v21  ;;  %v1161_v21 = vunpack.c.l.s8.bf16 %v945_v15  ;;  %v1158_v50 = vunpack.c.l.s8.bf16 %v942_v24  ;;  %v1166_v16 = vunpack.c.h.s8.bf16 %v942_v24  ;;  %v2095_v24 = vld [vmem:[#allocation10 + $0x8] sm:$0xff] }
 0x422   :  { %1437 = vmatpush1.bf16.msra.mxu0 %v1086_v18  ;;  %v1160_v18 = vunpack.c.l.s8.bf16 %v944_v25 }
 0x423   :  { %1523 = vmatpush1.bf16.msra.mxu1 %v1088_v26  ;;  %1438 = vmatprep.subr.bf16.mxu0 %v1095_v28  ;;  %v1167_v26 = vunpack.c.h.s8.bf16 %v943_v9  ;;  %v1169_v28 = vunpack.c.h.s8.bf16 %v945_v15  ;;  %v976_v9 = vld [vmem:[#allocation8 + $0x3f0] sm:$0xff] }
 0x424   :  { %1524 = vmatprep.subr.bf16.mxu1 %v1097_v62  ;;  %v953_v62 = vld [vmem:[#allocation8 + $0x338] sm:$0xff] }
 0x426   :  { %1439 = vmatpush1.bf16.msra.mxu0 %v1094_v29  ;;  %v1168_v29 = vunpack.c.h.s8.bf16 %v944_v25 }
 0x427   :  { %1525 = vmatpush1.bf16.msra.mxu1 %v1096_v34  ;;  %1440 = vmatprep.subr.bf16.mxu0 %v1103_v52  ;;  %v1175_v34 = vunpack.c.l.s8.bf16 %v951_v41  ;;  %v950_v52 = vld [vmem:[#allocation8 + $0x320] sm:$0xff] }
 0x428   :  { %1526 = vmatprep.subr.bf16.mxu1 %v1105_v23  ;;  %v1177_v23 = vunpack.c.l.s8.bf16 %v953_v62  ;;  %v1174_v47 = vunpack.c.l.s8.bf16 %v950_v52  ;;  %v1182_v38 = vunpack.c.h.s8.bf16 %v950_v52  ;;  %v2102_v52 = vld [vmem:[#allocation10 + $0x40] sm:$0xff] }
 0x42a   :  { %1441 = vmatpush1.bf16.msra.mxu0 %v1102_v5  ;;  %v1176_v5 = vunpack.c.l.s8.bf16 %v952_v27 }
 0x42b   :  { %1527 = vmatpush1.bf16.msra.mxu1 %v1104_v22  ;;  %1453 = vmatprep.subr.bf16.mxu0 %v1111_v35  ;;  %v1183_v22 = vunpack.c.h.s8.bf16 %v951_v41  ;;  %v1185_v35 = vunpack.c.h.s8.bf16 %v953_v62  ;;  %v2096_v41 = vld [vmem:[#allocation10 + $0x10] sm:$0xff] }
 0x42c   :  { %1539 = vmatprep.subr.bf16.mxu1 %v1113_v37  ;;  %v961_v37 = vld [vmem:[#allocation8 + $0x378] sm:$0xff] }
 0x42d   :  { %1443 = vmatmul.mubr.bf16.vlgmr.msra.gmra.mrb[12].mxu0 %v4297_v63 }
 0x42e   :  { %1529 = vmatmul.mubr.bf16.vlgmr.msra.gmra.mrb[16].mxu1 %v4297_v63  ;;  %1454 = vmatpush1.bf16.msra.mxu0 %v1110_v39  ;;  %v1135_v63 = vunpack.c.h.s8.bf16 %v927_v42  ;;  %v1184_v39 = vunpack.c.h.s8.bf16 %v952_v27  ;;  %v1193_v42 = vunpack.c.l.s8.bf16 %v961_v37 }
 0x42f   :  { %1485 = vmatprep.mubr.bf16.mxu0 %v4383_v51  ;;  %1540 = vmatpush1.bf16.msra.mxu1 %v1112_v12  ;;  %v1191_v12 = vunpack.c.l.s8.bf16 %v959_v32 }
 0x430   :  { %1571 = vmatprep.mubr.bf16.mxu1 %v4383_v51  ;;  %1455 = vmatprep.subr.bf16.mxu0 %v1119_v40  ;;  %v1143_v51 = vunpack.c.l.s8.bf16 %v935_v59  ;;  %v958_v40 = vld [vmem:[#allocation8 + $0x360] sm:$0xff]  ;;  %v968_v59 = vld [vmem:[#allocation8 + $0x3b0] sm:$0xff] }
 0x431   :  { %1541 = vmatprep.subr.bf16.mxu1 %v1121_v43  ;;  %v960_v43 = vld [vmem:[#allocation8 + $0x370] sm:$0xff]  ;;  %v1190_v44 = vunpack.c.l.s8.bf16 %v958_v40  ;;  %v1198_v54 = vunpack.c.h.s8.bf16 %v958_v40  ;;  %v2109_v40 = vld [vmem:[#allocation10 + $0x78] sm:$0xff] }
 0x432   :  { %1456 = vmatpush1.bf16.msra.mxu0 %v1118_v45  ;;  %v1192_v45 = vunpack.c.l.s8.bf16 %v960_v43 }
 0x433   :  { %1542 = vmatpush1.bf16.msra.mxu1 %v1120_v46  ;;  %1457 = vmatprep.subr.bf16.mxu0 %v1127_v13  ;;  %v1199_v46 = vunpack.c.h.s8.bf16 %v959_v32  ;;  %v1201_v13 = vunpack.c.h.s8.bf16 %v961_v37  ;;  %v2103_v32 = vld [vmem:[#allocation10 + $0x48] sm:$0xff] }
 0x434   :  { %1543 = vmatprep.subr.bf16.mxu1 %v1129_v53  ;;  %v969_v53 = vld [vmem:[#allocation8 + $0x3b8] sm:$0xff] }
 0x436   :  { %1458 = vmatpush1.bf16.msra.mxu0 %v1126_v55  ;;  %v1200_v55 = vunpack.c.h.s8.bf16 %v960_v43  ;;  %v2341_v43 = vunpack.c.h.s8.bf16 %v2103_v32 }
 0x437   :  { %1544 = vmatpush1.bf16.msra.mxu1 %v1128_v56  ;;  %1459 = vmatprep.subr.bf16.mxu0 %v1135_v63  ;;  %v1207_v56 = vunpack.c.l.s8.bf16 %v967_v49  ;;  %v966_v63 = vld [vmem:[#allocation8 + $0x3a0] sm:$0xff] }
 0x438   :  { %1545 = vmatprep.subr.bf16.mxu1 %v1137_v58  ;;  %v1209_v58 = vunpack.c.l.s8.bf16 %v969_v53  ;;  %v1206_v60 = vunpack.c.l.s8.bf16 %v966_v63  ;;  %v1214_v4 = vunpack.c.h.s8.bf16 %v966_v63  ;;  %v2118_v63 = vld [vmem:[#allocation10 + $0xc0] sm:$0xff] }
 0x43a   :  { %1460 = vmatpush1.bf16.msra.mxu0 %v1134_v57  ;;  %v1208_v57 = vunpack.c.l.s8.bf16 %v968_v59 }
 0x43b   :  { %1546 = vmatpush1.bf16.msra.mxu1 %v1136_v61  ;;  %1461 = vmatprep.subr.bf16.mxu0 %v1143_v51  ;;  %v1215_v61 = vunpack.c.h.s8.bf16 %v967_v49  ;;  %v1217_v51 = vunpack.c.h.s8.bf16 %v969_v53 }
 0x43c   :  { %1547 = vmatprep.subr.bf16.mxu1 %v1145_v3  ;;  %v977_v3 = vld [vmem:[#allocation8 + $0x3f8] sm:$0xff] }
 0x43e   :  { %1462 = vmatpush1.bf16.msra.mxu0 %v1142_v6  ;;  %v1216_v6 = vunpack.c.h.s8.bf16 %v968_v59 }
 0x43f   :  { %1548 = vmatpush1.bf16.msra.mxu1 %v1144_v7  ;;  %1463 = vmatprep.subr.bf16.mxu0 %v1151_v11  ;;  %v1223_v7 = vunpack.c.l.s8.bf16 %v975_v2  ;;  %v974_v11 = vld [vmem:[#allocation8 + $0x3e0] sm:$0xff] }
 0x440   :  { %1549 = vmatprep.subr.bf16.mxu1 %v1153_v14  ;;  %v1225_v14 = vunpack.c.l.s8.bf16 %v977_v3  ;;  %v1222_v15 = vunpack.c.l.s8.bf16 %v974_v11  ;;  %v1230_v25 = vunpack.c.h.s8.bf16 %v974_v11  ;;  %v2125_v11 = vld [vmem:[#allocation10 + $0xf8] sm:$0xff] }
 0x442   :  { %1464 = vmatpush1.bf16.msra.mxu0 %v1150_v19  ;;  %v1224_v19 = vunpack.c.l.s8.bf16 %v976_v9 }
 0x443   :  { %1550 = vmatpush1.bf16.msra.mxu1 %v1152_v20  ;;  %1465 = vmatprep.subr.bf16.mxu0 %v1159_v1  ;;  %v1231_v20 = vunpack.c.h.s8.bf16 %v975_v2  ;;  %v1233_v1 = vunpack.c.h.s8.bf16 %v977_v3 }
 0x444   :  { %1551 = vmatprep.subr.bf16.mxu1 %v1161_v21  ;;  %v2097_v21 = vld [vmem:[#allocation10 + $0x18] sm:$0xff] }
 0x446   :  { %1466 = vmatpush1.bf16.msra.mxu0 %v1158_v50  ;;  %v1232_v50 = vunpack.c.h.s8.bf16 %v976_v9 }
 0x447   :  { %1552 = vmatpush1.bf16.msra.mxu1 %v1160_v18  ;;  %1467 = vmatprep.subr.bf16.mxu0 %v1167_v26  ;;  %v2319_v18 = vunpack.c.l.s8.bf16 %v2095_v24  ;;  %v2094_v26 = vld [vmem:[#allocation10] sm:$0xff] }
 0x448   :  { %1553 = vmatprep.subr.bf16.mxu1 %v1169_v28  ;;  %v2321_v28 = vunpack.c.l.s8.bf16 %v2097_v21  ;;  %v2318_v62 = vunpack.c.l.s8.bf16 %v2094_v26  ;;  %v2325_v27 = vunpack.c.h.s8.bf16 %v2094_v26  ;;  %v2132_v26 = vld [vmem:[#allocation10 + $0x130] sm:$0xff] }
 0x44a   :  { %1468 = vmatpush1.bf16.msra.mxu0 %v1166_v16  ;;  %v2320_v16 = vunpack.c.l.s8.bf16 %v2096_v41 }
 0x44b   :  { %1554 = vmatpush1.bf16.msra.mxu1 %v1168_v29  ;;  %1469 = vmatprep.subr.bf16.mxu0 %v1175_v34  ;;  %v2326_v29 = vunpack.c.h.s8.bf16 %v2095_v24  ;;  %v2328_v34 = vunpack.c.h.s8.bf16 %v2097_v21 }
 0x44c   :  { %1555 = vmatprep.subr.bf16.mxu1 %v1177_v23  ;;  %v2104_v23 = vld [vmem:[#allocation10 + $0x50] sm:$0xff] }
 0x44e   :  { %1470 = vmatpush1.bf16.msra.mxu0 %v1174_v47  ;;  %v2327_v47 = vunpack.c.h.s8.bf16 %v2096_v41 }
 0x44f   :  { %1556 = vmatpush1.bf16.msra.mxu1 %v1176_v5  ;;  %1471 = vmatprep.subr.bf16.mxu0 %v1183_v22  ;;  %v2333_v5 = vunpack.c.l.s8.bf16 %v2102_v52  ;;  %v2101_v22 = vld [vmem:[#allocation10 + $0x38] sm:$0xff] }
 0x450   :  { %1557 = vmatprep.subr.bf16.mxu1 %v1185_v35  ;;  %v2335_v35 = vunpack.c.l.s8.bf16 %v2104_v23  ;;  %v2332_v37 = vunpack.c.l.s8.bf16 %v2101_v22 }
 0x452   :  { %1472 = vmatpush1.bf16.msra.mxu0 %v1182_v38  ;;  %v2334_v38 = vunpack.c.l.s8.bf16 %v2103_v32 }
 0x453   :  { %1558 = vmatpush1.bf16.msra.mxu1 %v1184_v39  ;;  %1473 = vmatprep.subr.bf16.mxu0 %v1191_v12  ;;  %v2340_v39 = vunpack.c.h.s8.bf16 %v2102_v52  ;;  %v2342_v12 = vunpack.c.h.s8.bf16 %v2104_v23 }
 0x454   :  { %1559 = vmatprep.subr.bf16.mxu1 %v1193_v42  ;;  %v2339_v42 = vunpack.c.h.s8.bf16 %v2101_v22  ;;  %v2139_v22 = vld [vmem:[#allocation10 + $0x168] sm:$0xff] }
 0x456   :  { %1474 = vmatpush1.bf16.msra.mxu0 %v1190_v44  ;;  %v2347_v44 = vunpack.c.l.s8.bf16 %v2109_v40 }
 0x457   :  { %1560 = vmatpush1.bf16.msra.mxu1 %v1192_v45  ;;  %1475 = vmatprep.subr.bf16.mxu0 %v1199_v46  ;;  %v2108_v45 = vld [vmem:[#allocation10 + $0x70] sm:$0xff] }
 0x458   :  { %1561 = vmatprep.subr.bf16.mxu1 %v1201_v13  ;;  %v2110_v13 = vld [vmem:[#allocation10 + $0x80] sm:$0xff]  ;;  %v2346_v49 = vunpack.c.l.s8.bf16 %v2108_v45 }
 0x459   :  { %v2348_v53 = vunpack.c.l.s8.bf16 %v2110_v13  ;;  %v2355_v59 = vunpack.c.h.s8.bf16 %v2110_v13 }
 0x45a   :  { %1476 = vmatpush1.bf16.msra.mxu0 %v1198_v54  ;;  %v2354_v54 = vunpack.c.h.s8.bf16 %v2109_v40 }
 0x45b   :  { %1562 = vmatpush1.bf16.msra.mxu1 %v1200_v55  ;;  %1477 = vmatprep.subr.bf16.mxu0 %v1207_v56  ;;  %v2116_v56 = vld [vmem:[#allocation10 + $0xb0] sm:$0xff] }
 0x45c   :  { %1563 = vmatprep.subr.bf16.mxu1 %v1209_v58  ;;  %v2353_v58 = vunpack.c.h.s8.bf16 %v2108_v45  ;;  %v2146_v45 = vld [vmem:[#allocation10 + $0x1a0] sm:$0xff] }
 0x45e   :  { %1478 = vmatpush1.bf16.msra.mxu0 %v1206_v60  ;;  %v2361_v60 = vunpack.c.l.s8.bf16 %v2116_v56 }
 0x45f   :  { %1564 = vmatpush1.bf16.msra.mxu1 %v1208_v57  ;;  %1479 = vmatprep.subr.bf16.mxu0 %v1215_v61  ;;  %v2115_v57 = vld [vmem:[#allocation10 + $0xa8] sm:$0xff]  ;;  %v2363_v61 = vunpack.c.l.s8.bf16 %v2118_v63 }
 0x460   :  { %1565 = vmatprep.subr.bf16.mxu1 %v1217_v51  ;;  %v2117_v51 = vld [vmem:[#allocation10 + $0xb8] sm:$0xff]  ;;  %v2360_v2 = vunpack.c.l.s8.bf16 %v2115_v57 }
 0x461   :  { %v2362_v3 = vunpack.c.l.s8.bf16 %v2117_v51  ;;  %v2369_v9 = vunpack.c.h.s8.bf16 %v2117_v51 }
 0x462   :  { %1480 = vmatpush1.bf16.msra.mxu0 %v1214_v4  ;;  %v2368_v4 = vunpack.c.h.s8.bf16 %v2116_v56 }
 0x463   :  { %1566 = vmatpush1.bf16.msra.mxu1 %v1216_v6  ;;  %1481 = vmatprep.subr.bf16.mxu0 %v1223_v7  ;;  %v2370_v6 = vunpack.c.h.s8.bf16 %v2118_v63  ;;  %v2123_v7 = vld [vmem:[#allocation10 + $0xe8] sm:$0xff] }
 0x464   :  { %1567 = vmatprep.subr.bf16.mxu1 %v1225_v14  ;;  %v2367_v14 = vunpack.c.h.s8.bf16 %v2115_v57  ;;  %v4399_v57 = vld [vmem:[#allocation10 + $0x1d8] sm:$0xff] }
 0x466   :  { %1482 = vmatpush1.bf16.msra.mxu0 %v1222_v15  ;;  %v2375_v15 = vunpack.c.l.s8.bf16 %v2123_v7 }
 0x467   :  { %1568 = vmatpush1.bf16.msra.mxu1 %v1224_v19  ;;  %1483 = vmatprep.subr.bf16.mxu0 %v1231_v20  ;;  %v2122_v19 = vld [vmem:[#allocation10 + $0xe0] sm:$0xff]  ;;  %v2377_v20 = vunpack.c.l.s8.bf16 %v2125_v11 }
 0x468   :  { %1569 = vmatprep.subr.bf16.mxu1 %v1233_v1  ;;  %v2124_v1 = vld [vmem:[#allocation10 + $0xf0] sm:$0xff]  ;;  %v2374_v24 = vunpack.c.l.s8.bf16 %v2122_v19 }
 0x469   :  { %v2376_v21 = vunpack.c.l.s8.bf16 %v2124_v1  ;;  %v2383_v41 = vunpack.c.h.s8.bf16 %v2124_v1 }
 0x46a   :  { %1484 = vmatpush1.bf16.msra.mxu0 %v1230_v25  ;;  %v2382_v25 = vunpack.c.h.s8.bf16 %v2123_v7 }
 0x46b   :  { %1570 = vmatpush1.bf16.msra.mxu1 %v1232_v50  ;;  %2774 = vmatprep.subr.bf16.mxu0 %v2319_v18  ;;  %v2384_v50 = vunpack.c.h.s8.bf16 %v2125_v11  ;;  %v2130_v18 = vld [vmem:[#allocation10 + $0x120] sm:$0xff] }
 0x46c   :  { %2946 = vmatprep.subr.bf16.mxu1 %v2321_v28  ;;  %v2381_v28 = vunpack.c.h.s8.bf16 %v2122_v19 }
 0x46d   :  { %1486 = vmatmul.mubr.bf16.vlgmr.msra.gmra.mrb[12].mxu0 %v4381_v48 }
 0x46e   :  { %1572 = vmatmul.mubr.bf16.vlgmr.msra.gmra.mrb[16].mxu1 %v4381_v48  ;;  %2775 = vmatpush1.bf16.msra.mxu0 %v2318_v62  ;;  %v2111_v48 = vld [vmem:[#allocation10 + $0x88] sm:$0xff]  ;;  %v2389_v62 = vunpack.c.l.s8.bf16 %v2130_v18 }
 0x46f   :  { %2947 = vmatpush1.bf16.msra.mxu1 %v2320_v16  ;;  %2776 = vmatprep.subr.bf16.mxu0 %v2326_v29  ;;  %v2349_v46 = vunpack.c.l.s8.bf16 %v2111_v48  ;;  %v2356_v55 = vunpack.c.h.s8.bf16 %v2111_v48  ;;  %v2129_v16 = vld [vmem:[#allocation10 + $0x118] sm:$0xff]  ;;  %v2391_v29 = vunpack.c.l.s8.bf16 %v2132_v26 }
 0x470   :  { %2948 = vmatprep.subr.bf16.mxu1 %v2328_v34  ;;  %v2131_v34 = vld [vmem:[#allocation10 + $0x128] sm:$0xff]  ;;  %v2388_v52 = vunpack.c.l.s8.bf16 %v2129_v16 }
 0x471   :  { %v2390_v23 = vunpack.c.l.s8.bf16 %v2131_v34  ;;  %v2397_v32 = vunpack.c.h.s8.bf16 %v2131_v34 }
 0x472   :  { %2777 = vmatpush1.bf16.msra.mxu0 %v2325_v27  ;;  %v2396_v27 = vunpack.c.h.s8.bf16 %v2130_v18 }
 0x473   :  { %2949 = vmatpush1.bf16.msra.mxu1 %v2327_v47  ;;  %2778 = vmatprep.subr.bf16.mxu0 %v2333_v5  ;;  %v2398_v47 = vunpack.c.h.s8.bf16 %v2132_v26  ;;  %v2137_v5 = vld [vmem:[#allocation10 + $0x158] sm:$0xff] }
 0x474   :  { %2950 = vmatprep.subr.bf16.mxu1 %v2335_v35  ;;  %v2395_v35 = vunpack.c.h.s8.bf16 %v2129_v16 }
 0x476   :  { %2779 = vmatpush1.bf16.msra.mxu0 %v2332_v37  ;;  %v2403_v37 = vunpack.c.l.s8.bf16 %v2137_v5 }
 0x477   :  { %2951 = vmatpush1.bf16.msra.mxu1 %v2334_v38  ;;  %2780 = vmatprep.subr.bf16.mxu0 %v2340_v39  ;;  %v2136_v38 = vld [vmem:[#allocation10 + $0x150] sm:$0xff]  ;;  %v2405_v39 = vunpack.c.l.s8.bf16 %v2139_v22 }
 0x478   :  { %2952 = vmatprep.subr.bf16.mxu1 %v2342_v12  ;;  %v2138_v12 = vld [vmem:[#allocation10 + $0x160] sm:$0xff]  ;;  %v2402_v40 = vunpack.c.l.s8.bf16 %v2136_v38 }
 0x479   :  { %v2404_v48 = vunpack.c.l.s8.bf16 %v2138_v12  ;;  %v2411_v13 = vunpack.c.h.s8.bf16 %v2138_v12 }
 0x47a   :  { %2781 = vmatpush1.bf16.msra.mxu0 %v2339_v42  ;;  %v2410_v42 = vunpack.c.h.s8.bf16 %v2137_v5 }
 0x47b   :  { %2953 = vmatpush1.bf16.msra.mxu1 %v2341_v43  ;;  %2782 = vmatprep.subr.bf16.mxu0 %v2347_v44  ;;  %v2412_v43 = vunpack.c.h.s8.bf16 %v2139_v22  ;;  %v2144_v44 = vld [vmem:[#allocation10 + $0x190] sm:$0xff] }
 0x47c   :  { %2954 = vmatprep.subr.bf16.mxu1 %v2349_v46  ;;  %v2409_v46 = vunpack.c.h.s8.bf16 %v2136_v38 }
 0x47e   :  { %2783 = vmatpush1.bf16.msra.mxu0 %v2346_v49  ;;  %v2417_v49 = vunpack.c.l.s8.bf16 %v2144_v44 }
 0x47f   :  { %2955 = vmatpush1.bf16.msra.mxu1 %v2348_v53  ;;  %2784 = vmatprep.subr.bf16.mxu0 %v2354_v54  ;;  %v2143_v53 = vld [vmem:[#allocation10 + $0x188] sm:$0xff]  ;;  %v2419_v54 = vunpack.c.l.s8.bf16 %v2146_v45 }
 0x480   :  { %2956 = vmatprep.subr.bf16.mxu1 %v2356_v55  ;;  %v2145_v55 = vld [vmem:[#allocation10 + $0x198] sm:$0xff]  ;;  %v2416_v56 = vunpack.c.l.s8.bf16 %v2143_v53 }
 0x481   :  { %v2418_v63 = vunpack.c.l.s8.bf16 %v2145_v55  ;;  %v2425_v51 = vunpack.c.h.s8.bf16 %v2145_v55 }
 0x482   :  { %2785 = vmatpush1.bf16.msra.mxu0 %v2353_v58  ;;  %v2424_v58 = vunpack.c.h.s8.bf16 %v2144_v44 }
 0x483   :  { %2957 = vmatpush1.bf16.msra.mxu1 %v2355_v59  ;;  %2786 = vmatprep.subr.bf16.mxu0 %v2361_v60  ;;  %v2426_v59 = vunpack.c.h.s8.bf16 %v2146_v45  ;;  %v4397_v60 = vld [vmem:[#allocation10 + $0x1c8] sm:$0xff] }
 0x484   :  { %2958 = vmatprep.subr.bf16.mxu1 %v2363_v61  ;;  %v2423_v61 = vunpack.c.h.s8.bf16 %v2143_v53 }
 0x486   :  { %2787 = vmatpush1.bf16.msra.mxu0 %v2360_v2  ;;  %v2431_v2 = vunpack.c.l.s8.bf16 %v4397_v60 }
 0x487   :  { %2959 = vmatpush1.bf16.msra.mxu1 %v2362_v3  ;;  %2788 = vmatprep.subr.bf16.mxu0 %v2368_v4  ;;  %v2433_v3 = vunpack.c.l.s8.bf16 %v4399_v57  ;;  %v4406_v4 = vld [vmem:[%s4995_s4 + $0x2d] sm:$0xff] }
 0x488   :  { %2960 = vmatprep.subr.bf16.mxu1 %v2370_v6  ;;  %v4411_v6 = vld [vmem:[%s4995_s4 + $0x15] sm:$0xff]  ;;  %v1587_v7 = vrot.slane %v4406_v4, %v4204_v31  ;;  %v1595_v11 = vrot.slane %v4406_v4, %v4308_v10 }
 0x489   :  { %v1649_v1 = vrot.slane %v4411_v6, %v4210_v33 }
 0x48a   :  { %2789 = vmatpush1.bf16.msra.mxu0 %v2367_v14  ;;  %v1591_v14 = vrot.slane %v4406_v4, %v4210_v33 }
 0x48b   :  { %2961 = vmatpush1.bf16.msra.mxu1 %v2369_v9  ;;  %2790 = vmatprep.subr.bf16.mxu0 %v2375_v15  ;;  %v1645_v9 = vrot.slane %v4411_v6, %v4204_v31  ;;  %v1599_v15 = vrot.slane %v4406_v4, %v4311_v8 }
 0x48c   :  { %2962 = vmatprep.subr.bf16.mxu1 %v2377_v20  ;;  %v1653_v20 = vrot.slane %v4411_v6, %v4308_v10 }
 0x48e   :  { %2791 = vmatpush1.bf16.msra.mxu0 %v2374_v24 }
 0x48f   :  { %2963 = vmatpush1.bf16.msra.mxu1 %v2376_v21  ;;  %2792 = vmatprep.subr.bf16.mxu0 %v2382_v25 }
 0x490   :  { %2964 = vmatprep.subr.bf16.mxu1 %v2384_v50  ;;  %v1657_v50 = vrot.slane %v4411_v6, %v4311_v8 }
 0x492   :  { %2793 = vmatpush1.bf16.msra.mxu0 %v2381_v28 }
 0x493   :  { %2965 = vmatpush1.bf16.msra.mxu1 %v2383_v41  ;;  %2794 = vmatprep.subr.bf16.mxu0 %v2389_v62 }
 0x494   :  { %2966 = vmatprep.subr.bf16.mxu1 %v2391_v29 }
 0x496   :  { %2795 = vmatpush1.bf16.msra.mxu0 %v2388_v52 }
 0x497   :  { %2967 = vmatpush1.bf16.msra.mxu1 %v2390_v23  ;;  %2796 = vmatprep.subr.bf16.mxu0 %v2396_v27 }
 0x498   :  { %2968 = vmatprep.subr.bf16.mxu1 %v2398_v47 }
 0x49a   :  { %2797 = vmatpush1.bf16.msra.mxu0 %v2395_v35 }
 0x49b   :  { %2969 = vmatpush1.bf16.msra.mxu1 %v2397_v32  ;;  %2798 = vmatprep.subr.bf16.mxu0 %v2403_v37 }
 0x49c   :  { %2970 = vmatprep.subr.bf16.mxu1 %v2405_v39 }
 0x49e   :  { %2799 = vmatpush1.bf16.msra.mxu0 %v2402_v40 }
 0x49f   :  { %2971 = vmatpush1.bf16.msra.mxu1 %v2404_v48  ;;  %2800 = vmatprep.subr.bf16.mxu0 %v2410_v42 }
 0x4a0   :  { %2972 = vmatprep.subr.bf16.mxu1 %v2412_v43 }
 0x4a2   :  { %2801 = vmatpush1.bf16.msra.mxu0 %v2409_v46 }
 0x4a3   :  { %2973 = vmatpush1.bf16.msra.mxu1 %v2411_v13  ;;  %2802 = vmatprep.subr.bf16.mxu0 %v2417_v49 }
 0x4a4   :  { %2974 = vmatprep.subr.bf16.mxu1 %v2419_v54 }
 0x4a6   :  { %2803 = vmatpush1.bf16.msra.mxu0 %v2416_v56 }
 0x4a7   :  { %2975 = vmatpush1.bf16.msra.mxu1 %v2418_v63  ;;  %2804 = vmatprep.subr.bf16.mxu0 %v2424_v58 }
 0x4a8   :  { %2976 = vmatprep.subr.bf16.mxu1 %v2426_v59 }
 0x4aa   :  { %2805 = vmatpush1.bf16.msra.mxu0 %v2423_v61 }
 0x4ab   :  { %2977 = vmatpush1.bf16.msra.mxu1 %v2425_v51  ;;  %2817 = vmatprep.subr.bf16.mxu0 %v2431_v2 }
 0x4ac   :  { %2989 = vmatprep.subr.bf16.mxu1 %v2433_v3 }
 0x4c0   :  { %v1315_v19 = vpop.f32.mrb[8].mxu0 }
 0x4c1   :  { %v1624_v24 = vmul.f32 %v1587_v7, %v1315_v19  ;;  %v1401_v21 = vpop.f32.mrb[12].mxu1  ;;  %v1317_v25 = vpop.f32.mrb[9].mxu0 }
 0x4c2   :  { %v1626_v18 = vmul.f32 %v1595_v11, %v1401_v21  ;;  %v1625_v26 = vmul.f32 %v1591_v14, %v1317_v25  ;;  %v1403_v28 = vpop.f32.mrb[13].mxu1  ;;  %v1319_v41 = vpop.f32.mrb[10].mxu0 }
 0x4c3   :  { %v4429_v62 = vadd.f32 %v1645_v9, %v1624_v24  ;;  %v1627_v16 = vmul.f32 %v1599_v15, %v1403_v28  ;;  %v1632_v29 = vmul.f32 %v1587_v7, %v1319_v41  ;;  %v1405_v34 = vpop.f32.mrb[14].mxu1  ;;  %v1321_v52 = vpop.f32.mrb[11].mxu0 }
 0x4c4   :  { %v4431_v23 = vadd.f32 %v1653_v20, %v1626_v18  ;;  %v4433_v27 = vadd.f32 %v1649_v1, %v1625_v26  ;;  %v1634_v47 = vmul.f32 %v1595_v11, %v1405_v34  ;;  %v1633_v5 = vmul.f32 %v1591_v14, %v1321_v52  ;;  %v1407_v22 = vpop.f32.mrb[15].mxu1 }
 0x4c5   :  { %v1700_v35 = vmul.f32 %v4429_v62, %v4240_v17  ;;  %v4437_v32 = vadd.f32 %v1657_v50, %v1627_v16  ;;  %v4439_v37 = vadd.f32 %v1645_v9, %v1632_v29  ;;  %v1635_v38 = vmul.f32 %v1599_v15, %v1407_v22 }
 0x4c6   :  { %v1702_v39 = vmul.f32 %v4431_v23, %v4240_v17  ;;  %v1701_v12 = vmul.f32 %v4433_v27, %v4240_v17  ;;  %v4445_v40 = vadd.f32 %v1653_v20, %v1634_v47  ;;  %v4447_v48 = vadd.f32 %v1649_v1, %v1633_v5 }
 0x4c7   :  { %v1780_v42 = vmul.f32 %v1700_v35, %v4429_v62  ;;  %v1703_v43 = vmul.f32 %v4437_v32, %v4240_v17  ;;  %v1708_v44 = vmul.f32 %v4439_v37, %v4256_v36  ;;  %v4454_v45 = vadd.f32 %v1657_v50, %v1635_v38 }
 0x4c8   :  { %v1782_v46 = vmul.f32 %v1702_v39, %v4431_v23  ;;  %v1781_v13 = vmul.f32 %v1701_v12, %v4433_v27  ;;  %v1710_v49 = vmul.f32 %v4445_v40, %v4256_v36  ;;  %v1709_v53 = vmul.f32 %v4447_v48, %v4256_v36 }
 0x4c9   :  { %v1783_v54 = vmul.f32 %v1703_v43, %v4437_v32  ;;  %v1716_v55 = vadd.f32 %v1708_v44, %v1700_v35  ;;  %v1788_v56 = vmul.f32 %v1708_v44, %v4439_v37  ;;  %v1711_v63 = vmul.f32 %v4454_v45, %v4256_v36 }
 0x4ca   :  { %v1730_v58 = vadd.f32 %v1710_v49, %v1702_v39  ;;  %v1790_v59 = vmul.f32 %v1710_v49, %v4445_v40  ;;  %v1723_v61 = vadd.f32 %v1709_v53, %v1701_v12  ;;  %v1789_v51 = vmul.f32 %v1709_v53, %v4447_v48 }
 0x4cb   :  { %v1717_v2 = vrot.slane %v1716_v55, 4  ;;  %v1796_v3 = vadd.f32 %v1788_v56, %v1780_v42  ;;  %v1737_v7 = vadd.f32 %v1711_v63, %v1703_v43  ;;  %v1791_v11 = vmul.f32 %v1711_v63, %v4454_v45 }
 0x4cc   :  { %v1731_v14 = vrot.slane %v1730_v58, 4  ;;  %v1810_v9 = vadd.f32 %v1790_v59, %v1782_v46  ;;  %v1724_v15 = vrot.slane %v1723_v61, 4  ;;  %v1803_v19 = vadd.f32 %v1789_v51, %v1781_v13 }
 0x4cd   :  { %v1718_v20 = vadd.f32 %v1717_v2, %v1716_v55  ;;  %v1797_v1 = vrot.slane %v1796_v3, 4  ;;  %v1738_v24 = vrot.slane %v1737_v7, 4  ;;  %v1817_v21 = vadd.f32 %v1791_v11, %v1783_v54 }
 0x4ce   :  { %v1732_v25 = vadd.f32 %v1731_v14, %v1730_v58  ;;  %v1811_v50 = vrot.slane %v1810_v9, 4  ;;  %v1725_v18 = vadd.f32 %v1724_v15, %v1723_v61  ;;  %v1804_v26 = vrot.slane %v1803_v19, 4 }
 0x4cf   :  { %v1719_v28 = vrot.slane %v1718_v20, 2  ;;  %v1798_v41 = vadd.f32 %v1797_v1, %v1796_v3  ;;  %v1739_v16 = vadd.f32 %v1738_v24, %v1737_v7  ;;  %v1818_v29 = vrot.slane %v1817_v21, 4 }
 0x4d0   :  { %v1733_v34 = vrot.slane %v1732_v25, 2  ;;  %v1812_v52 = vadd.f32 %v1811_v50, %v1810_v9  ;;  %v1726_v47 = vrot.slane %v1725_v18, 2  ;;  %v1805_v5 = vadd.f32 %v1804_v26, %v1803_v19 }
 0x4d1   :  { %v1720_v22 = vadd.f32 %v1719_v28, %v1718_v20  ;;  %v1799_v35 = vrot.slane %v1798_v41, 2  ;;  %v1740_v38 = vrot.slane %v1739_v16, 2  ;;  %v1819_v39 = vadd.f32 %v1818_v29, %v1817_v21 }
 0x4d2   :  { %v1734_v12 = vadd.f32 %v1733_v34, %v1732_v25  ;;  %v1813_v42 = vrot.slane %v1812_v52, 2  ;;  %v1727_v43 = vadd.f32 %v1726_v47, %v1725_v18  ;;  %v1806_v44 = vrot.slane %v1805_v5, 2 }
 0x4d3   :  { %v1721_v46 = vrot.slane %v1720_v22, 1  ;;  %v1800_v13 = vadd.f32 %v1799_v35, %v1798_v41  ;;  %v1741_v49 = vadd.f32 %v1740_v38, %v1739_v16  ;;  %v1820_v53 = vrot.slane %v1819_v39, 2 }
 0x4d4   :  { %v1735_v54 = vrot.slane %v1734_v12, 1  ;;  %v1814_v55 = vadd.f32 %v1813_v42, %v1812_v52  ;;  %v1728_v56 = vrot.slane %v1727_v43, 1  ;;  %v1807_v63 = vadd.f32 %v1806_v44, %v1805_v5 }
 0x4d5   :  { %v1722_v58 = vadd.f32 %v1721_v46, %v1720_v22  ;;  %v1801_v59 = vrot.slane %v1800_v13, 1  ;;  %v1742_v61 = vrot.slane %v1741_v49, 1  ;;  %v1821_v51 = vadd.f32 %v1820_v53, %v1819_v39 }
 0x4d6   :  { %v1736_v2 = vadd.f32 %v1735_v54, %v1734_v12  ;;  %v1815_v3 = vrot.slane %v1814_v55, 1  ;;  %v1729_v7 = vadd.f32 %v1728_v56, %v1727_v43  ;;  %v1808_v11 = vrot.slane %v1807_v63, 1  ;;  %v4488_v54 = vld [vmem:[%s4995_s4 + $0x1d] sm:$0xff] }
 0x4d7   :  { %v1772_v14 = vmul.f32 %v1722_v58, %v4269_v0  ;;  %v1802_v9 = vadd.f32 %v1801_v59, %v1800_v13  ;;  %v1743_v15 = vadd.f32 %v1742_v61, %v1741_v49  ;;  %v1822_v19 = vrot.slane %v1821_v51, 1 }
 0x4d8   :  { %v1774_v20 = vmul.f32 %v1736_v2, %v4269_v0  ;;  %v1816_v1 = vadd.f32 %v1815_v3, %v1814_v55  ;;  %v1773_v24 = vmul.f32 %v1729_v7, %v4269_v0  ;;  %v1809_v21 = vadd.f32 %v1808_v11, %v1807_v63  ;;  %v4495_v55 = vld [vmem:[#allocation10 + $0x1c0] sm:$0xff]  ;;  %v4505_v11 = vld [vmem:[#allocation10 + $0x1d0] sm:$0xff] }
 0x4d9   :  { %v1852_v25 = vmul.f32 %v1802_v9, %v4269_v0  ;;  %v1860_v50 = vmul.f32 %v1772_v14, %v1772_v14  ;;  %v1884_v18 = vsub.f32 %v4429_v62, %v1772_v14  ;;  %v1892_v26 = vsub.f32 %v4439_v37, %v1772_v14 }
 0x4da   :  { %v1854_v28 = vmul.f32 %v1816_v1, %v4269_v0  ;;  %v1862_v41 = vmul.f32 %v1774_v20, %v1774_v20  ;;  %v1886_v16 = vsub.f32 %v4431_v23, %v1774_v20  ;;  %v1894_v29 = vsub.f32 %v4445_v40, %v1774_v20 }
 0x4db   :  { %v1868_v34 = vsub.f32 %v1852_v25, %v1860_v50  ;;  %v1853_v52 = vmul.f32 %v1809_v21, %v4269_v0  ;;  %v1861_v47 = vmul.f32 %v1773_v24, %v1773_v24  ;;  %v1885_v5 = vsub.f32 %v4433_v27, %v1773_v24 }
 0x4dc   :  { %v1870_v22 = vsub.f32 %v1854_v28, %v1862_v41  ;;  %v1893_v35 = vsub.f32 %v4447_v48, %v1773_v24  ;;  %v1775_v62 = vmul.f32 %v1743_v15, %v4269_v0  ;;  %v1823_v38 = vadd.f32 %v1822_v19, %v1821_v51 }
 0x4dd   :  { %v1876_v37 = vmax.f32 %v1868_v34, 0.0  ;;  %v1869_v39 = vsub.f32 %v1853_v52, %v1861_v47  ;;  %v1944_v63 = vrot.slane %v4488_v54, %v4308_v10  ;;  %v1940_v58 = vrot.slane %v4488_v54, %v4210_v33 }
 0x4de   :  { %v1878_v12 = vmax.f32 %v1870_v22, 0.0  ;;  %v1855_v42 = vmul.f32 %v1823_v38, %v4269_v0  ;;  %v1863_v23 = vmul.f32 %v1775_v62, %v1775_v62  ;;  %v1887_v40 = vsub.f32 %v4437_v32, %v1775_v62  ;;  %v1699_v32 = vld [vmem:[%s4995_s4 + $0x25] sm:$0xff] }
 0x4df   :  { %v1900_v43 = vadd.f32 1e-05, %v1876_v37  ;;  %v1877_v44 = vmax.f32 %v1869_v39, 0.0  ;;  %v1895_v46 = vsub.f32 %v4454_v45, %v1775_v62  ;;  %v1936_v45 = vrot.slane %v4488_v54, %v4204_v31 }
 0x4e0   :  { %v1902_v13 = vadd.f32 1e-05, %v1878_v12  ;;  %v1871_v27 = vsub.f32 %v1855_v42, %v1863_v23  ;;  %v1948_v59 = vrot.slane %v4488_v54, %v4311_v8  ;;  %v1997_v61 = vrot.slane %v1699_v32, %v4210_v33 }
 0x4e1   :  { %3850 = vrsqrt.f32 %v1900_v43  ;;  %v1901_v49 = vadd.f32 1e-05, %v1877_v44  ;;  %v1993_v7 = vrot.slane %v1699_v32, %v4204_v31  ;;  %v2005_v14 = vrot.slane %v1699_v32, %v4311_v8 }
 0x4e2   :  { %3852 = vrsqrt.f32 %v1902_v13  ;;  %v1879_v48 = vmax.f32 %v1871_v27, 0.0  ;;  %v2430_v19 = vunpack.c.l.s8.bf16 %v4495_v55  ;;  %v2001_v1 = vrot.slane %v1699_v32, %v4308_v10 }
 0x4e3   :  { %3854 = vrsqrt.f32 %v1901_v49 }
 0x4e4   :  { %v1903_v53 = vadd.f32 1e-05, %v1879_v48 }
 0x4e6   :  { %3856 = vrsqrt.f32 %v1903_v53 }
 0x4eb   :  { %v3851_v56 = vpop.eup %3850 }
 0x4ec   :  { %v3853_v51 = vpop.eup %3852  ;;  %v1924_v2 = vmul.f32 %v3851_v56, %v1892_v26  ;;  %v1916_v3 = vmul.f32 %v3851_v56, %v1884_v18  ;;  %v2432_v18 = vunpack.c.l.s8.bf16 %v4505_v11  ;;  %v2438_v26 = vunpack.c.h.s8.bf16 %v4397_v60 }
 0x4ed   :  { %v3855_v9 = vpop.eup %3854  ;;  %v1926_v15 = vmul.f32 %v3853_v51, %v1894_v29  ;;  %v1918_v20 = vmul.f32 %v3853_v51, %v1886_v16  ;;  %v2440_v56 = vunpack.c.h.s8.bf16 %v4399_v57 }
 0x4ee   :  { %v1981_v24 = vmul.f32 %v1936_v45, %v1924_v2  ;;  %v1925_v21 = vmul.f32 %v3855_v9, %v1893_v35  ;;  %v1917_v25 = vmul.f32 %v3855_v9, %v1885_v5  ;;  %v1973_v50 = vmul.f32 %v1936_v45, %v1916_v3 }
 0x4ef   :  { %v1983_v28 = vmul.f32 %v1944_v63, %v1926_v15  ;;  %v1975_v41 = vmul.f32 %v1944_v63, %v1918_v20 }
 0x4f0   :  { %v3857_v34 = vpop.eup %3856  ;;  %v1982_v52 = vmul.f32 %v1940_v58, %v1925_v21  ;;  %v1974_v47 = vmul.f32 %v1940_v58, %v1917_v25  ;;  %v2030_v22 = vadd.f32 %v1993_v7, %v1973_v50  ;;  %v2038_v29 = vadd.f32 %v1993_v7, %v1981_v24  ;;  %v2159_v24 = vld [vmem:[#allocation10 + $0x208] sm:$0xff]  ;;  %v2165_v50 = vld [vmem:[#allocation10 + $0x238] sm:$0xff] }
 0x4f1   :  { %v1927_v62 = vmul.f32 %v3857_v34, %v1895_v46  ;;  %v1919_v38 = vmul.f32 %v3857_v34, %v1887_v40  ;;  %v2032_v16 = vadd.f32 %v2001_v1, %v1975_v41  ;;  %v2040_v37 = vadd.f32 %v2001_v1, %v1983_v28  ;;  %v2157_v1 = vld [vmem:[#allocation10 + $0x1f8] sm:$0xff]  ;;  %v2167_v28 = vld [vmem:[#allocation10 + $0x248] sm:$0xff] }
 0x4f2   :  { %v2031_v39 = vadd.f32 %v1997_v61, %v1974_v47  ;;  %v2039_v12 = vadd.f32 %v1997_v61, %v1982_v52  ;;  %vm2046_vm14 = vcmp.gt.f32.partialorder %v2030_v22, 0.0  ;;  %vm2054_vm15 = vcmp.gt.f32.partialorder %v2038_v29, 0.0  ;;  %v2160_v61 = vld [vmem:[#allocation10 + $0x210] sm:$0xff]  ;;  %v2166_v47 = vld [vmem:[#allocation10 + $0x240] sm:$0xff] }
 0x4f3   :  { %v1984_v5 = vmul.f32 %v1948_v59, %v1927_v62  ;;  %v2062_v35 = vmul.f32 0.2, %v2030_v22  ;;  %v2070_v42 = vmul.f32 0.2, %v2038_v29  ;;  %v1976_v23 = vmul.f32 %v1948_v59, %v1919_v38  ;;  %v2158_v59 = vld [vmem:[#allocation10 + $0x200] sm:$0xff]  ;;  %v2164_v52 = vld [vmem:[#allocation10 + $0x230] sm:$0xff] }
 0x4f4   :  { %vm2047_vm0 = vcmp.gt.f32.partialorder %v2031_v39, 0.0  ;;  %vm2055_vm1 = vcmp.gt.f32.partialorder %v2039_v12, 0.0  ;;  %v2063_v60 = vmul.f32 0.2, %v2031_v39  ;;  %v2071_v43 = vmul.f32 0.2, %v2039_v12 }
 0x4f5   :  { %v2078_v44 = vsel %vm2046_vm14, %v2030_v22, %v2062_v35  ;;  %v2086_v13 = vsel %vm2054_vm15, %v2038_v29, %v2070_v42  ;;  %v2033_v27 = vadd.f32 %v2005_v14, %v1976_v23  ;;  %v2041_v49 = vadd.f32 %v2005_v14, %v1984_v5  ;;  %v2171_v42 = vld [vmem:[#allocation10 + $0x268] sm:$0xff]  ;;  %v2173_v23 = vld [vmem:[#allocation10 + $0x278] sm:$0xff] }
 0x4f6   :  { %v2079_v46 = vsel %vm2047_vm0, %v2031_v39, %v2063_v60  ;;  %v2087_v40 = vsel %vm2055_vm1, %v2039_v12, %v2071_v43  ;;  %v4512_v48 = vpack.c.bf16 %v2086_v13, %v2078_v44  ;;  %vm2048_vm2 = vcmp.gt.f32.partialorder %v2032_v16, 0.0 }
 0x4f7   :  { %v4514_v53 = vpack.c.bf16 %v2087_v40, %v2079_v46  ;;  %vm2049_vm3 = vcmp.gt.f32.partialorder %v2033_v27, 0.0  ;;  %vm2057_vm4 = vcmp.gt.f32.partialorder %v2041_v49, 0.0  ;;  %v2065_v32 = vmul.f32 0.2, %v2033_v27 }
 0x4f8   :  { %v2073_v45 = vmul.f32 0.2, %v2041_v49  ;;  %vm2056_vm5 = vcmp.gt.f32.partialorder %v2040_v37, 0.0  ;;  %v2064_v63 = vmul.f32 0.2, %v2032_v16  ;;  %v2437_v7 = vunpack.c.h.s8.bf16 %v4495_v55 }
 0x4f9   :  { %2806 = vmatprep.mubr.bf16.mxu0 %v4514_v53  ;;  %2978 = vmatprep.mubr.bf16.mxu1 %v4514_v53  ;;  %v2081_v58 = vsel %vm2049_vm3, %v2033_v27, %v2065_v32  ;;  %v2072_v51 = vmul.f32 0.2, %v2040_v37  ;;  %v2439_v14 = vunpack.c.h.s8.bf16 %v4505_v11  ;;  %v2445_v15 = vunpack.c.l.s8.bf16 %v2158_v59  ;;  %v2179_v27 = vld [vmem:[#allocation10 + $0x2a8] sm:$0xff] }
 0x4fa   :  { %2807 = vmatmul.mubr.bf16.vlgmr.msra.gmra.mrb[16].mxu0 %v4512_v48  ;;  %2979 = vmatmul.mubr.bf16.vlgmr.msra.gmra.mrb[20].mxu1 %v4512_v48  ;;  %v2089_v2 = vsel %vm2057_vm4, %v2041_v49, %v2073_v45  ;;  %v2080_v3 = vsel %vm2048_vm2, %v2032_v16, %v2064_v63  ;;  %v2447_v20 = vunpack.c.l.s8.bf16 %v2160_v61  ;;  %v2446_v55 = vunpack.c.l.s8.bf16 %v2159_v24  ;;  %v2172_v16 = vld [vmem:[#allocation10 + $0x270] sm:$0xff]  ;;  %v2181_v49 = vld [vmem:[#allocation10 + $0x2b8] sm:$0xff] }
 0x4fb   :  { %2818 = vmatpush1.bf16.msra.mxu0 %v2430_v19  ;;  %2990 = vmatpush1.bf16.msra.mxu1 %v2432_v18  ;;  %v4522_v57 = vpack.c.bf16 %v2089_v2, %v2081_v58  ;;  %v2088_v9 = vsel %vm2056_vm5, %v2040_v37, %v2072_v51  ;;  %v2444_v19 = vunpack.c.l.s8.bf16 %v2157_v1  ;;  %v2452_v11 = vunpack.c.h.s8.bf16 %v2158_v59  ;;  %v2174_v37 = vld [vmem:[#allocation10 + $0x280] sm:$0xff]  ;;  %v2180_v63 = vld [vmem:[#allocation10 + $0x2b0] sm:$0xff] }
 0x4fc   :  { %2819 = vmatprep.subr.bf16.mxu0 %v2438_v26  ;;  %2991 = vmatprep.subr.bf16.mxu1 %v2440_v56  ;;  %v4527_v21 = vpack.c.bf16 %v2088_v9, %v2080_v3  ;;  %v2454_v25 = vunpack.c.h.s8.bf16 %v2160_v61  ;;  %v2451_v18 = vunpack.c.h.s8.bf16 %v2157_v1  ;;  %v2453_v26 = vunpack.c.h.s8.bf16 %v2159_v24  ;;  %v2178_v56 = vld [vmem:[#allocation10 + $0x2a0] sm:$0xff]  ;;  %v2188_v3 = vld [vmem:[#allocation10 + $0x2f0] sm:$0xff]  ;;  %v2187_v1 = vld [vmem:[#allocation10 + $0x2e8] sm:$0xff] }
 0x4fd   :  { %2849 = vmatprep.mubr.bf16.mxu0 %v4522_v57  ;;  %3021 = vmatprep.mubr.bf16.mxu1 %v4522_v57  ;;  %v2459_v41 = vunpack.c.l.s8.bf16 %v2165_v50  ;;  %v2461_v34 = vunpack.c.l.s8.bf16 %v2167_v28  ;;  %v2458_v22 = vunpack.c.l.s8.bf16 %v2164_v52  ;;  %v2460_v29 = vunpack.c.l.s8.bf16 %v2166_v47  ;;  %v2186_v2 = vld [vmem:[#allocation10 + $0x2e0] sm:$0xff] }
 0x4fe   :  { %v2466_v62 = vunpack.c.h.s8.bf16 %v2165_v50  ;;  %v2468_v38 = vunpack.c.h.s8.bf16 %v2167_v28  ;;  %v2465_v39 = vunpack.c.h.s8.bf16 %v2164_v52  ;;  %v2467_v12 = vunpack.c.h.s8.bf16 %v2166_v47  ;;  %v2195_v50 = vld [vmem:[#allocation10 + $0x328] sm:$0xff]  ;;  %v2194_v52 = vld [vmem:[#allocation10 + $0x320] sm:$0xff] }
 0x4ff   :  { %2820 = vmatpush1.bf16.msra.mxu0 %v2437_v7  ;;  %2992 = vmatpush1.bf16.msra.mxu1 %v2439_v14  ;;  %v2473_v5 = vunpack.c.l.s8.bf16 %v2172_v16  ;;  %v2475_v35 = vunpack.c.l.s8.bf16 %v2174_v37  ;;  %v2472_v60 = vunpack.c.l.s8.bf16 %v2171_v42  ;;  %v2474_v43 = vunpack.c.l.s8.bf16 %v2173_v23 }
 0x500   :  { %2821 = vmatprep.subr.bf16.mxu0 %v2445_v15  ;;  %2993 = vmatprep.subr.bf16.mxu1 %v2447_v20  ;;  %v2480_v44 = vunpack.c.h.s8.bf16 %v2172_v16  ;;  %v2482_v13 = vunpack.c.h.s8.bf16 %v2174_v37  ;;  %v2479_v46 = vunpack.c.h.s8.bf16 %v2171_v42  ;;  %v2481_v40 = vunpack.c.h.s8.bf16 %v2173_v23  ;;  %v2185_v20 = vld [vmem:[#allocation10 + $0x2d8] sm:$0xff]  ;;  %v2202_v16 = vld [vmem:[#allocation10 + $0x360] sm:$0xff] }
 0x501   :  { %v2487_v32 = vunpack.c.l.s8.bf16 %v2179_v27  ;;  %v2489_v45 = vunpack.c.l.s8.bf16 %v2181_v49  ;;  %v2486_v58 = vunpack.c.l.s8.bf16 %v2178_v56  ;;  %v2488_v59 = vunpack.c.l.s8.bf16 %v2180_v63  ;;  %v2201_v42 = vld [vmem:[#allocation10 + $0x358] sm:$0xff] }
 0x502   :  { %v2494_v61 = vunpack.c.h.s8.bf16 %v2179_v27  ;;  %v2496_v51 = vunpack.c.h.s8.bf16 %v2181_v49  ;;  %v2493_v7 = vunpack.c.h.s8.bf16 %v2178_v56  ;;  %v2495_v14 = vunpack.c.h.s8.bf16 %v2180_v63  ;;  %v2209_v27 = vld [vmem:[#allocation10 + $0x398] sm:$0xff]  ;;  %v4533_v56 = vld [vmem:[#allocation10 + $0x390] sm:$0xff] }
 0x503   :  { %2822 = vmatpush1.bf16.msra.mxu0 %v2444_v19  ;;  %2994 = vmatpush1.bf16.msra.mxu1 %v2446_v55  ;;  %v2501_v9 = vunpack.c.l.s8.bf16 %v2186_v2  ;;  %v2503_v15 = vunpack.c.l.s8.bf16 %v2188_v3  ;;  %v2500_v24 = vunpack.c.l.s8.bf16 %v2185_v20  ;;  %v2502_v19 = vunpack.c.l.s8.bf16 %v2187_v1 }
 0x504   :  { %2823 = vmatprep.subr.bf16.mxu0 %v2452_v11  ;;  %2995 = vmatprep.subr.bf16.mxu1 %v2454_v25  ;;  %v2508_v55 = vunpack.c.h.s8.bf16 %v2186_v2  ;;  %v2510_v11 = vunpack.c.h.s8.bf16 %v2188_v3  ;;  %v2193_v25 = vld [vmem:[#allocation10 + $0x318] sm:$0xff]  ;;  %v2507_v28 = vunpack.c.h.s8.bf16 %v2185_v20  ;;  %v4536_v63 = vsub.s32 4, %v4201_v30 }
 0x505   :  { %v4547_v2 = vsub.s32 5, %v4201_v30  ;;  %v4550_v3 = vsub.s32 7, %v4201_v30 }
 0x507   :  { %2824 = vmatpush1.bf16.msra.mxu0 %v2451_v18  ;;  %2996 = vmatpush1.bf16.msra.mxu1 %v2453_v26  ;;  %v2509_v18 = vunpack.c.h.s8.bf16 %v2187_v1  ;;  %v2515_v26 = vunpack.c.l.s8.bf16 %v2193_v25  ;;  %v4556_v1 = vld [vmem:[#allocation10 + $0x3c8] sm:$0xff] }
 0x508   :  { %2825 = vmatprep.subr.bf16.mxu0 %v2459_v41  ;;  %2997 = vmatprep.subr.bf16.mxu1 %v2461_v34  ;;  %v2517_v41 = vunpack.c.l.s8.bf16 %v2195_v50  ;;  %v2192_v34 = vld [vmem:[#allocation10 + $0x310] sm:$0xff] }
 0x509   :  { %v2514_v47 = vunpack.c.l.s8.bf16 %v2192_v34  ;;  %v2521_v37 = vunpack.c.h.s8.bf16 %v2192_v34  ;;  %v4588_v34 = vrot.slane %v4406_v4, %v4547_v2 }
 0x50b   :  { %2826 = vmatpush1.bf16.msra.mxu0 %v2458_v22  ;;  %2998 = vmatpush1.bf16.msra.mxu1 %v2460_v29  ;;  %v2516_v22 = vunpack.c.l.s8.bf16 %v2194_v52  ;;  %v2522_v29 = vunpack.c.h.s8.bf16 %v2193_v25 }
 0x50c   :  { %2827 = vmatprep.subr.bf16.mxu0 %v2466_v62  ;;  %2999 = vmatprep.subr.bf16.mxu1 %v2468_v38  ;;  %v2524_v62 = vunpack.c.h.s8.bf16 %v2195_v50  ;;  %v2200_v38 = vld [vmem:[#allocation10 + $0x350] sm:$0xff] }
 0x50f   :  { %2828 = vmatpush1.bf16.msra.mxu0 %v2465_v39  ;;  %3000 = vmatpush1.bf16.msra.mxu1 %v2467_v12  ;;  %v2523_v39 = vunpack.c.h.s8.bf16 %v2194_v52  ;;  %v2529_v12 = vunpack.c.l.s8.bf16 %v2200_v38  ;;  %v4592_v52 = vrot.slane %v4411_v6, %v4547_v2 }
 0x510   :  { %2829 = vmatprep.subr.bf16.mxu0 %v2473_v5  ;;  %3001 = vmatprep.subr.bf16.mxu1 %v2475_v35  ;;  %v2531_v5 = vunpack.c.l.s8.bf16 %v2202_v16  ;;  %v2199_v35 = vld [vmem:[#allocation10 + $0x348] sm:$0xff] }
 0x511   :  { %v2528_v23 = vunpack.c.l.s8.bf16 %v2199_v35  ;;  %v2535_v49 = vunpack.c.h.s8.bf16 %v2199_v35 }
 0x513   :  { %2830 = vmatpush1.bf16.msra.mxu0 %v2472_v60  ;;  %3002 = vmatpush1.bf16.msra.mxu1 %v2474_v43  ;;  %v2530_v60 = vunpack.c.l.s8.bf16 %v2201_v42  ;;  %v2536_v43 = vunpack.c.h.s8.bf16 %v2200_v38 }
 0x514   :  { %2831 = vmatprep.subr.bf16.mxu0 %v2480_v44  ;;  %3003 = vmatprep.subr.bf16.mxu1 %v2482_v13  ;;  %v2538_v44 = vunpack.c.h.s8.bf16 %v2202_v16  ;;  %v2207_v13 = vld [vmem:[#allocation10 + $0x388] sm:$0xff] }
 0x517   :  { %2832 = vmatpush1.bf16.msra.mxu0 %v2479_v46  ;;  %3004 = vmatpush1.bf16.msra.mxu1 %v2481_v40  ;;  %v2537_v46 = vunpack.c.h.s8.bf16 %v2201_v42  ;;  %v4531_v40 = vld [vmem:[#allocation10 + $0x380] sm:$0xff] }
 0x518   :  { %2833 = vmatprep.subr.bf16.mxu0 %v2487_v32  ;;  %3005 = vmatprep.subr.bf16.mxu1 %v2489_v45  ;;  %v2543_v32 = vunpack.c.l.s8.bf16 %v2207_v13  ;;  %v2545_v45 = vunpack.c.l.s8.bf16 %v2209_v27  ;;  %v2549_v20 = vunpack.c.h.s8.bf16 %v4531_v40 }
 0x51b   :  { %2834 = vmatpush1.bf16.msra.mxu0 %v2486_v58  ;;  %3006 = vmatpush1.bf16.msra.mxu1 %v2488_v59  ;;  %v4539_v58 = vsub.s32 6, %v4201_v30  ;;  %v4541_v59 = vld [vmem:[#allocation10 + $0x3c0] sm:$0xff]  ;;  %v4561_v30 = vrot.slane %v4406_v4, %v4536_v63 }
 0x51c   :  { %2835 = vmatprep.subr.bf16.mxu0 %v2494_v61  ;;  %3007 = vmatprep.subr.bf16.mxu1 %v2496_v51  ;;  %v2542_v61 = vunpack.c.l.s8.bf16 %v4531_v40  ;;  %v4544_v51 = vld [vmem:[#allocation10 + $0x3d0] sm:$0xff]  ;;  %v2564_v38 = vunpack.c.h.s8.bf16 %v4541_v59 }
 0x51d   :  { %v4574_v25 = vrot.slane %v4411_v6, %v4539_v58  ;;  %v2559_v50 = vunpack.c.l.s8.bf16 %v4544_v51  ;;  %v2566_v16 = vunpack.c.h.s8.bf16 %v4544_v51 }
 0x51f   :  { %2836 = vmatpush1.bf16.msra.mxu0 %v2493_v7  ;;  %3008 = vmatpush1.bf16.msra.mxu1 %v2495_v14  ;;  %v4552_v7 = vld [vmem:[#allocation10 + $0x3b8] sm:$0xff]  ;;  %v2544_v14 = vunpack.c.l.s8.bf16 %v4533_v56 }
 0x520   :  { %2837 = vmatprep.subr.bf16.mxu0 %v2501_v9  ;;  %3009 = vmatprep.subr.bf16.mxu1 %v2503_v15  ;;  %v2550_v9 = vunpack.c.h.s8.bf16 %v2207_v13  ;;  %v2552_v15 = vunpack.c.h.s8.bf16 %v2209_v27  ;;  %v4624_v27 = vld [vmem:[#allocation10 + $0x468] sm:$0xff] }
 0x523   :  { %2838 = vmatpush1.bf16.msra.mxu0 %v2500_v24  ;;  %3010 = vmatpush1.bf16.msra.mxu1 %v2502_v19  ;;  %v2551_v24 = vunpack.c.h.s8.bf16 %v4533_v56  ;;  %v4565_v19 = vrot.slane %v4411_v6, %v4536_v63 }
 0x524   :  { %2839 = vmatprep.subr.bf16.mxu0 %v2508_v55  ;;  %3011 = vmatprep.subr.bf16.mxu1 %v2510_v11  ;;  %v2557_v55 = vunpack.c.l.s8.bf16 %v4541_v59  ;;  %v4570_v11 = vrot.slane %v4406_v4, %v4539_v58 }
 0x527   :  { %2840 = vmatpush1.bf16.msra.mxu0 %v2507_v28  ;;  %3012 = vmatpush1.bf16.msra.mxu1 %v2509_v18  ;;  %v2556_v28 = vunpack.c.l.s8.bf16 %v4552_v7  ;;  %v4578_v18 = vld [vmem:[#allocation10 + $0x3f8] sm:$0xff] }
 0x528   :  { %2841 = vmatprep.subr.bf16.mxu0 %v2515_v26  ;;  %3013 = vmatprep.subr.bf16.mxu1 %v2517_v41  ;;  %v4580_v26 = vld [vmem:[#allocation10 + $0x408] sm:$0xff]  ;;  %v4582_v41 = vld [vmem:[#allocation10 + $0x3f0] sm:$0xff]  ;;  %v2571_v35 = vunpack.c.l.s8.bf16 %v4578_v18 }
 0x529   :  { %v2570_v42 = vunpack.c.l.s8.bf16 %v4582_v41 }
 0x52b   :  { %2842 = vmatpush1.bf16.msra.mxu0 %v2514_v47  ;;  %3014 = vmatpush1.bf16.msra.mxu1 %v2516_v22  ;;  %v4596_v47 = vrot.slane %v4406_v4, %v4550_v3  ;;  %v2558_v22 = vunpack.c.l.s8.bf16 %v4556_v1  ;;  %v4610_v4 = vld [vmem:[#allocation10 + $0x440] sm:$0xff] }
 0x52c   :  { %2843 = vmatprep.subr.bf16.mxu0 %v2522_v29  ;;  %3015 = vmatprep.subr.bf16.mxu1 %v2524_v62  ;;  %v4599_v29 = vld [vmem:[#allocation10 + $0x400] sm:$0xff]  ;;  %v4603_v62 = vrot.slane %v4411_v6, %v4550_v3  ;;  %v2573_v6 = vunpack.c.l.s8.bf16 %v4580_v26 }
 0x52f   :  { %2844 = vmatpush1.bf16.msra.mxu0 %v2521_v37  ;;  %3016 = vmatpush1.bf16.msra.mxu1 %v2523_v39  ;;  %v2563_v37 = vunpack.c.h.s8.bf16 %v4552_v7  ;;  %v4608_v39 = vld [vmem:[#allocation10 + $0x430] sm:$0xff] }
 0x530   :  { %2845 = vmatprep.subr.bf16.mxu0 %v2529_v12  ;;  %3017 = vmatprep.subr.bf16.mxu1 %v2531_v5  ;;  %v4612_v12 = vld [vmem:[#allocation10 + $0x428] sm:$0xff]  ;;  %v2565_v5 = vunpack.c.h.s8.bf16 %v4556_v1 }
 0x533   :  { %2846 = vmatpush1.bf16.msra.mxu0 %v2528_v23  ;;  %3018 = vmatpush1.bf16.msra.mxu1 %v2530_v60  ;;  %v4618_v23 = vld [vmem:[#allocation10 + $0x438] sm:$0xff] }
 0x534   :  { %2847 = vmatprep.subr.bf16.mxu0 %v2536_v43  ;;  %3019 = vmatprep.subr.bf16.mxu1 %v2538_v44 }
 0x537   :  { %2848 = vmatpush1.bf16.msra.mxu0 %v2535_v49  ;;  %3020 = vmatpush1.bf16.msra.mxu1 %v2537_v46  ;;  %v4626_v49 = vld [vmem:[#allocation10 + $0x478] sm:$0xff]  ;;  %v4628_v46 = vld [vmem:[#allocation10 + $0x460] sm:$0xff] }
 0x538   :  { %2860 = vmatprep.subr.bf16.mxu0 %v2543_v32  ;;  %3032 = vmatprep.subr.bf16.mxu1 %v2545_v45 }
 0x53a   :  { %2850 = vmatmul.mubr.bf16.vlgmr.msra.gmra.mrb[16].mxu0 %v4527_v21  ;;  %3022 = vmatmul.mubr.bf16.vlgmr.msra.gmra.mrb[20].mxu1 %v4527_v21 }
 0x53b   :  { %2861 = vmatpush1.bf16.msra.mxu0 %v2542_v61  ;;  %3033 = vmatpush1.bf16.msra.mxu1 %v2544_v14  ;;  %v4634_v61 = vld [vmem:[#allocation10 + $0x470] sm:$0xff] }
 0x53c   :  { %2862 = vmatprep.subr.bf16.mxu0 %v2550_v9  ;;  %3034 = vmatprep.subr.bf16.mxu1 %v2552_v15 }
 0x53f   :  { %2863 = vmatpush1.bf16.msra.mxu0 %v2549_v20  ;;  %3035 = vmatpush1.bf16.msra.mxu1 %v2551_v24  ;;  %v4644_v24 = vld [vmem:[#allocation10 + $0x4a0] sm:$0xff] }
 0x540   :  { %v1487_v44 = vpop.f32.mrb[12].mxu0  ;;  %2864 = vmatprep.subr.bf16.mxu0 %v2557_v55  ;;  %3036 = vmatprep.subr.bf16.mxu1 %v2559_v50 }
 0x541   :  { %v1628_v14 = vmul.f32 %v4561_v30, %v1487_v44  ;;  %v1573_v9 = vpop.f32.mrb[16].mxu1  ;;  %v1489_v40 = vpop.f32.mrb[13].mxu0 }
 0x542   :  { %v1630_v50 = vmul.f32 %v4570_v11, %v1573_v9  ;;  %v1629_v45 = vmul.f32 %v4588_v34, %v1489_v40  ;;  %v1575_v32 = vpop.f32.mrb[17].mxu1  ;;  %v1491_v56 = vpop.f32.mrb[14].mxu0  ;;  %v2613_v40 = vunpack.c.l.s8.bf16 %v4644_v24 }
 0x543   :  { %v4655_v44 = vadd.f32 %v4565_v19, %v1628_v14  ;;  %v1631_v60 = vmul.f32 %v4596_v47, %v1575_v32  ;;  %2865 = vmatpush1.bf16.msra.mxu0 %v2556_v28  ;;  %3037 = vmatpush1.bf16.msra.mxu1 %v2558_v22  ;;  %v1636_v55 = vmul.f32 %v4561_v30, %v1491_v56  ;;  %v1577_v9 = vpop.f32.mrb[18].mxu1  ;;  %v1493_v13 = vpop.f32.mrb[15].mxu0 }
 0x544   :  { %v4663_v15 = vadd.f32 %v4574_v25, %v1630_v50  ;;  %v4666_v43 = vadd.f32 %v4592_v52, %v1629_v45  ;;  %v1638_v14 = vmul.f32 %v4570_v11, %v1577_v9  ;;  %v1637_v32 = vmul.f32 %v4588_v34, %v1493_v13  ;;  %v1579_v20 = vpop.f32.mrb[19].mxu1  ;;  %2866 = vmatprep.subr.bf16.mxu0 %v2564_v38 }
 0x545   :  { %v1704_v30 = vmul.f32 %v4655_v44, %v4240_v17  ;;  %v4675_v28 = vadd.f32 %v4603_v62, %v1631_v60  ;;  %v4678_v22 = vadd.f32 %v4565_v19, %v1636_v55  ;;  %v1639_v45 = vmul.f32 %v4596_v47, %v1579_v20  ;;  %3038 = vmatprep.subr.bf16.mxu1 %v2566_v16 }
 0x546   :  { %v1706_v11 = vmul.f32 %v4663_v15, %v4240_v17  ;;  %v1705_v59 = vmul.f32 %v4666_v43, %v4240_v17  ;;  %v4688_v34 = vadd.f32 %v4574_v25, %v1638_v14  ;;  %v4691_v38 = vadd.f32 %v4592_v52, %v1637_v32 }
 0x547   :  { %v1784_v19 = vmul.f32 %v1704_v30, %v4655_v44  ;;  %v1707_v47 = vmul.f32 %v4675_v28, %v4240_v17  ;;  %v1712_v51 = vmul.f32 %v4678_v22, %v4256_v36  ;;  %v4699_v16 = vadd.f32 %v4603_v62, %v1639_v45  ;;  %2867 = vmatpush1.bf16.msra.mxu0 %v2563_v37 }
 0x548   :  { %v1786_v25 = vmul.f32 %v1706_v11, %v4663_v15  ;;  %v1785_v60 = vmul.f32 %v1705_v59, %v4666_v43  ;;  %v1714_v52 = vmul.f32 %v4688_v34, %v4256_v36  ;;  %v1713_v13 = vmul.f32 %v4691_v38, %v4256_v36  ;;  %3039 = vmatpush1.bf16.msra.mxu1 %v2565_v5 }
 0x549   :  { %v1787_v17 = vmul.f32 %v1707_v47, %v4675_v28  ;;  %v1744_v62 = vadd.f32 %v1712_v51, %v1704_v30  ;;  %v1792_v56 = vmul.f32 %v1712_v51, %v4678_v22  ;;  %v1715_v7 = vmul.f32 %v4699_v16, %v4256_v36  ;;  %2868 = vmatprep.subr.bf16.mxu0 %v2571_v35 }
 0x54a   :  { %v1758_v37 = vadd.f32 %v1714_v52, %v1706_v11  ;;  %v1794_v20 = vmul.f32 %v1714_v52, %v4688_v34  ;;  %v1751_v55 = vadd.f32 %v1713_v13, %v1705_v59  ;;  %v1793_v50 = vmul.f32 %v1713_v13, %v4691_v38  ;;  %3040 = vmatprep.subr.bf16.mxu1 %v2573_v6 }
 0x54b   :  { %v1745_v1 = vrot.slane %v1744_v62, 4  ;;  %v1824_v5 = vadd.f32 %v1792_v56, %v1784_v19  ;;  %v1765_v9 = vadd.f32 %v1715_v7, %v1707_v47  ;;  %v1795_v14 = vmul.f32 %v1715_v7, %v4699_v16  ;;  %2869 = vmatpush1.bf16.msra.mxu0 %v2570_v42 }
 0x54c   :  { %v1759_v36 = vrot.slane %v1758_v37, 4  ;;  %v1838_v32 = vadd.f32 %v1794_v20, %v1786_v25  ;;  %v1752_v35 = vrot.slane %v1751_v55, 4  ;;  %v1831_v30 = vadd.f32 %v1793_v50, %v1785_v60 }
 0x54d   :  { %v5003_v45 = vunpack.c.l.s8.bf16 %v4599_v29  ;;  %v5004_v11 = vunpack.c.h.s8.bf16 %v4578_v18  ;;  %v1746_v59 = vadd.f32 %v1745_v1, %v1744_v62  ;;  %v1825_v6 = vrot.slane %v1824_v5, 4 }
 0x54e   :  { %v1766_v51 = vrot.slane %v1765_v9, 4  ;;  %v1845_v19 = vadd.f32 %v1795_v14, %v1787_v17  ;;  %v5005_v47 = vunpack.c.h.s8.bf16 %v4580_v26  ;;  %v1760_v52 = vadd.f32 %v1759_v36, %v1758_v37 }
 0x54f   :  { %3041 = vmatpush1.bf16.msra.mxu1 %v5003_v45  ;;  %2870 = vmatprep.subr.bf16.mxu0 %v5004_v11  ;;  %v1839_v13 = vrot.slane %v1838_v32, 4  ;;  %v1753_v42 = vadd.f32 %v1752_v35, %v1751_v55  ;;  %v1832_v56 = vrot.slane %v1831_v30, 4  ;;  %v1747_v25 = vrot.slane %v1746_v59, 2 }
 0x550   :  { %3042 = vmatprep.subr.bf16.mxu1 %v5005_v47  ;;  %v1826_v7 = vadd.f32 %v1825_v6, %v1824_v5  ;;  %v1767_v60 = vadd.f32 %v1766_v51, %v1765_v9  ;;  %v1846_v20 = vrot.slane %v1845_v19, 4  ;;  %v5006_v50 = vunpack.c.h.s8.bf16 %v4582_v41 }
 0x551   :  { %v1761_v18 = vrot.slane %v1760_v52, 2  ;;  %v1840_v45 = vadd.f32 %v1839_v13, %v1838_v32  ;;  %v1754_v62 = vrot.slane %v1753_v42, 2  ;;  %v1833_v1 = vadd.f32 %v1832_v56, %v1831_v30 }
 0x552   :  { %2871 = vmatpush1.bf16.msra.mxu0 %v5006_v50  ;;  %v5007_v17 = vunpack.c.h.s8.bf16 %v4599_v29  ;;  %v5008_v26 = vunpack.c.l.s8.bf16 %v4608_v39  ;;  %v1748_v37 = vadd.f32 %v1747_v25, %v1746_v59  ;;  %v1827_v55 = vrot.slane %v1826_v7, 2 }
 0x553   :  { %v1768_v14 = vrot.slane %v1767_v60, 2  ;;  %v1847_v36 = vadd.f32 %v1846_v20, %v1845_v19  ;;  %v5009_v5 = vunpack.c.l.s8.bf16 %v4610_v4  ;;  %v1762_v9 = vadd.f32 %v1761_v18, %v1760_v52 }
 0x554   :  { %3043 = vmatpush1.bf16.msra.mxu1 %v5007_v17  ;;  %2872 = vmatprep.subr.bf16.mxu0 %v5008_v26  ;;  %v1841_v41 = vrot.slane %v1840_v45, 2  ;;  %v1755_v35 = vadd.f32 %v1754_v62, %v1753_v42  ;;  %v1834_v11 = vrot.slane %v1833_v1, 2  ;;  %v1749_v32 = vrot.slane %v1748_v37, 1 }
 0x555   :  { %3044 = vmatprep.subr.bf16.mxu1 %v5009_v5  ;;  %v1828_v6 = vadd.f32 %v1827_v55, %v1826_v7  ;;  %v1769_v30 = vadd.f32 %v1768_v14, %v1767_v60  ;;  %v1848_v51 = vrot.slane %v1847_v36, 2  ;;  %v5010_v29 = vunpack.c.l.s8.bf16 %v4612_v12 }
 0x556   :  { %v1763_v47 = vrot.slane %v1762_v9, 1  ;;  %v1842_v13 = vadd.f32 %v1841_v41, %v1840_v45  ;;  %v1756_v59 = vrot.slane %v1755_v35, 1  ;;  %v1835_v56 = vadd.f32 %v1834_v11, %v1833_v1 }
 0x557   :  { %2873 = vmatpush1.bf16.msra.mxu0 %v5010_v29  ;;  %v5011_v19 = vunpack.c.l.s8.bf16 %v4618_v23  ;;  %v5012_v25 = vunpack.c.h.s8.bf16 %v4608_v39  ;;  %v1750_v52 = vadd.f32 %v1749_v32, %v1748_v37  ;;  %v1829_v42 = vrot.slane %v1828_v6, 1  ;;  %v2244_v29 = vld [vmem:[#allocation10 + $0x4b0] sm:$0xff] }
 0x558   :  { %v1770_v20 = vrot.slane %v1769_v30, 1  ;;  %v1849_v50 = vadd.f32 %v1848_v51, %v1847_v36  ;;  %v5013_v7 = vunpack.c.h.s8.bf16 %v4610_v4  ;;  %v1764_v60 = vadd.f32 %v1763_v47, %v1762_v9 }
 0x559   :  { %3045 = vmatpush1.bf16.msra.mxu1 %v5011_v19  ;;  %2874 = vmatprep.subr.bf16.mxu0 %v5012_v25  ;;  %v1843_v18 = vrot.slane %v1842_v13, 1  ;;  %v1757_v62 = vadd.f32 %v1756_v59, %v1755_v35  ;;  %v1836_v17 = vrot.slane %v1835_v56, 1  ;;  %v4747_v45 = vmul.f32 %v1750_v52, %v4269_v0 }
 0x55a   :  { %3046 = vmatprep.subr.bf16.mxu1 %v5013_v7  ;;  %v1830_v1 = vadd.f32 %v1829_v42, %v1828_v6  ;;  %v1771_v26 = vadd.f32 %v1770_v20, %v1769_v30  ;;  %v1850_v55 = vrot.slane %v1849_v50, 1  ;;  %v5014_v39 = vunpack.c.h.s8.bf16 %v4612_v12 }
 0x55b   :  { %v4752_v37 = vmul.f32 %v1764_v60, %v4269_v0  ;;  %v1844_v14 = vadd.f32 %v1843_v18, %v1842_v13  ;;  %v4755_v4 = vmul.f32 %v1757_v62, %v4269_v0  ;;  %v1837_v36 = vadd.f32 %v1836_v17, %v1835_v56  ;;  %v2241_v60 = vld [vmem:[#allocation10 + $0x498] sm:$0xff] }
 0x55c   :  { %2875 = vmatpush1.bf16.msra.mxu0 %v5014_v39  ;;  %v5015_v5 = vunpack.c.h.s8.bf16 %v4618_v23  ;;  %v1856_v9 = vmul.f32 %v1830_v1, %v4269_v0  ;;  %v1864_v41 = vmul.f32 %v4747_v45, %v4747_v45  ;;  %v1888_v12 = vsub.f32 %v4655_v44, %v4747_v45 }
 0x55d   :  { %v1896_v35 = vsub.f32 %v4678_v22, %v4747_v45  ;;  %v5016_v11 = vunpack.c.l.s8.bf16 %v4624_v27  ;;  %v1858_v32 = vmul.f32 %v1844_v14, %v4269_v0  ;;  %v1866_v23 = vmul.f32 %v4752_v37, %v4752_v37  ;;  %v2243_v14 = vld [vmem:[#allocation10 + $0x4a8] sm:$0xff] }
 0x55e   :  { %3047 = vmatpush1.bf16.msra.mxu1 %v5015_v5  ;;  %v1890_v6 = vsub.f32 %v4663_v15, %v4752_v37  ;;  %v1898_v30 = vsub.f32 %v4688_v34, %v4752_v37  ;;  %v5017_v51 = vunpack.c.l.s8.bf16 %v4626_v49  ;;  %v1872_v47 = vsub.f32 %v1856_v9, %v1864_v41 }
 0x55f   :  { %2876 = vmatprep.subr.bf16.mxu0 %v5016_v11  ;;  %v1857_v13 = vmul.f32 %v1837_v36, %v4269_v0  ;;  %v1865_v59 = vmul.f32 %v4755_v4, %v4755_v4  ;;  %v1889_v56 = vsub.f32 %v4666_v43, %v4755_v4  ;;  %v5018_v19 = vunpack.c.l.s8.bf16 %v4628_v46 }
 0x560   :  { %3048 = vmatprep.subr.bf16.mxu1 %v5017_v51  ;;  %v1874_v25 = vsub.f32 %v1858_v32, %v1866_v23  ;;  %v1897_v52 = vsub.f32 %v4691_v38, %v4755_v4  ;;  %v4787_v42 = vmul.f32 %v1771_v26, %v4269_v0  ;;  %v1851_v20 = vadd.f32 %v1850_v55, %v1849_v50 }
 0x561   :  { %2877 = vmatpush1.bf16.msra.mxu0 %v5018_v19  ;;  %v5019_v7 = vunpack.c.l.s8.bf16 %v4634_v61  ;;  %v1880_v18 = vmax.f32 %v1872_v47, 0.0  ;;  %v1873_v62 = vsub.f32 %v1857_v13, %v1865_v59  ;;  %v5020_v17 = vunpack.c.h.s8.bf16 %v4624_v27  ;;  %v2249_v59 = vld [vmem:[#allocation10 + $0x4d8] sm:$0xff]  ;;  %v2251_v19 = vld [vmem:[#allocation10 + $0x4e8] sm:$0xff] }
 0x562   :  { %v5021_v1 = vunpack.c.h.s8.bf16 %v4626_v49  ;;  %v2615_v39 = vunpack.c.l.s8.bf16 %v2244_v29  ;;  %v1882_v36 = vmax.f32 %v1874_v25, 0.0  ;;  %v1859_v5 = vmul.f32 %v1851_v20, %v4269_v0 }
 0x563   :  { %3049 = vmatpush1.bf16.msra.mxu1 %v5019_v7  ;;  %2878 = vmatprep.subr.bf16.mxu0 %v5020_v17  ;;  %v1867_v50 = vmul.f32 %v4787_v42, %v4787_v42  ;;  %v1891_v26 = vsub.f32 %v4675_v28, %v4787_v42  ;;  %v1904_v55 = vadd.f32 1e-05, %v1880_v18  ;;  %v1881_v9 = vmax.f32 %v1873_v62, 0.0  ;;  %v4809_v62 = vld [vmem:[#allocation10 + $0x510] sm:$0xff] }
 0x564   :  { %3050 = vmatprep.subr.bf16.mxu1 %v5021_v1  ;;  %v1899_v27 = vsub.f32 %v4699_v16, %v4787_v42  ;;  %v5022_v41 = vunpack.c.h.s8.bf16 %v4628_v46  ;;  %v2612_v49 = vunpack.c.l.s8.bf16 %v2241_v60  ;;  %v1906_v11 = vadd.f32 1e-05, %v1882_v36  ;;  %v4821_v36 = vld [vmem:[#allocation10 + $0x518] sm:$0xff] }
 0x565   :  { %v1875_v32 = vsub.f32 %v1859_v5, %v1867_v50  ;;  %v5023_v23 = vunpack.c.h.s8.bf16 %v4634_v61  ;;  %v2614_v0 = vunpack.c.l.s8.bf16 %v2243_v14  ;;  %v2620_v51 = vunpack.c.h.s8.bf16 %v4644_v24  ;;  %v2250_v24 = vld [vmem:[#allocation10 + $0x4e0] sm:$0xff] }
 0x566   :  { %2879 = vmatpush1.bf16.msra.mxu0 %v5022_v41  ;;  %3858 = vrsqrt.f32 %v1904_v55  ;;  %v1905_v47 = vadd.f32 1e-05, %v1881_v9  ;;  %v2622_v13 = vunpack.c.h.s8.bf16 %v2244_v29  ;;  %v2619_v25 = vunpack.c.h.s8.bf16 %v2241_v60  ;;  %v4811_v29 = vld [vmem:[#allocation10 + $0x520] sm:$0xff]  ;;  %v4827_v41 = vld [vmem:[#allocation10 + $0x548] sm:$0xff] }
 0x567   :  { %3051 = vmatpush1.bf16.msra.mxu1 %v5023_v23  ;;  %2880 = vmatprep.subr.bf16.mxu0 %v2613_v40  ;;  %3860 = vrsqrt.f32 %v1906_v11  ;;  %v1883_v46 = vmax.f32 %v1875_v32, 0.0  ;;  %v2621_v61 = vunpack.c.h.s8.bf16 %v2243_v14  ;;  %v2627_v7 = vunpack.c.l.s8.bf16 %v2249_v59  ;;  %v2248_v40 = vld [vmem:[#allocation10 + $0x4d0] sm:$0xff]  ;;  %v4819_v14 = vld [vmem:[#allocation10 + $0x508] sm:$0xff] }
 0x568   :  { %3052 = vmatprep.subr.bf16.mxu1 %v2615_v39  ;;  %3862 = vrsqrt.f32 %v1905_v47  ;;  %v2629_v18 = vunpack.c.l.s8.bf16 %v2251_v19  ;;  %v1952_v17 = vrot.slane %v4488_v54, %v4536_v63  ;;  %v1960_v60 = vrot.slane %v4488_v54, %v4539_v58 }
 0x569   :  { %v1907_v20 = vadd.f32 1e-05, %v1883_v46  ;;  %v1956_v1 = vrot.slane %v4488_v54, %v4547_v2  ;;  %v2626_v39 = vunpack.c.l.s8.bf16 %v2248_v40  ;;  %v4825_v5 = vrot.slane %v4488_v54, %v4550_v3 }
 0x56a   :  { %2881 = vmatpush1.bf16.msra.mxu0 %v2612_v49  ;;  %v2628_v50 = vunpack.c.l.s8.bf16 %v2250_v24  ;;  %v2634_v55 = vunpack.c.h.s8.bf16 %v2249_v59  ;;  %v2636_v9 = vunpack.c.h.s8.bf16 %v2251_v19  ;;  %v2633_v49 = vunpack.c.h.s8.bf16 %v2248_v40  ;;  %v4837_v59 = vld [vmem:[#allocation10 + $0x540] sm:$0xff] }
 0x56b   :  { %3053 = vmatpush1.bf16.msra.mxu1 %v2614_v0  ;;  %2882 = vmatprep.subr.bf16.mxu0 %v2620_v51  ;;  %3864 = vrsqrt.f32 %v1907_v20  ;;  %v2635_v11 = vunpack.c.h.s8.bf16 %v2250_v24  ;;  %v2641_v32 = vunpack.c.l.s8.bf16 %v4809_v62  ;;  %v2643_v23 = vunpack.c.l.s8.bf16 %v4811_v29  ;;  %v4831_v0 = vld [vmem:[#allocation10 + $0x558] sm:$0xff] }
 0x56c   :  { %3054 = vmatprep.subr.bf16.mxu1 %v2622_v13  ;;  %v2640_v51 = vunpack.c.l.s8.bf16 %v4819_v14  ;;  %v2642_v54 = vunpack.c.l.s8.bf16 %v4821_v36  ;;  %v2648_v47 = vunpack.c.h.s8.bf16 %v4809_v62  ;;  %v2650_v13 = vunpack.c.h.s8.bf16 %v4811_v29  ;;  %v3894_v20 = vld [vmem:[%s4995_s4 + $0x25] sm:$0xff] }
 0x56d   :  { %v2647_v19 = vunpack.c.h.s8.bf16 %v4819_v14  ;;  %v2657_v24 = vunpack.c.l.s8.bf16 %v4831_v0  ;;  %v2009_v29 = vrot.slane %v3894_v20, %v4536_v63  ;;  %v2654_v22 = vunpack.c.l.s8.bf16 %v4837_v59 }
 0x56e   :  { %2883 = vmatpush1.bf16.msra.mxu0 %v2619_v25  ;;  %v2662_v38 = vunpack.c.h.s8.bf16 %v4827_v41 }
 0x56f   :  { %3055 = vmatpush1.bf16.msra.mxu1 %v2621_v61  ;;  %2884 = vmatprep.subr.bf16.mxu0 %v2627_v7  ;;  %v2013_v61 = vrot.slane %v3894_v20, %v4547_v2 }
 0x570   :  { %3056 = vmatprep.subr.bf16.mxu1 %v2629_v18  ;;  %v3859_v46 = vpop.eup %3858 }
 0x571   :  { %v3861_v40 = vpop.eup %3860  ;;  %v1928_v18 = vmul.f32 %v3859_v46, %v1896_v35  ;;  %v1920_v62 = vmul.f32 %v3859_v46, %v1888_v12 }
 0x572   :  { %2885 = vmatpush1.bf16.msra.mxu0 %v2626_v39  ;;  %v4854_v39 = vld [vmem:[#allocation10 + $0x550] sm:$0xff]  ;;  %v3863_v25 = vpop.eup %3862  ;;  %v1930_v7 = vmul.f32 %v3861_v40, %v1898_v30  ;;  %v1922_v35 = vmul.f32 %v3861_v40, %v1890_v6 }
 0x573   :  { %3057 = vmatpush1.bf16.msra.mxu1 %v2628_v50  ;;  %2886 = vmatprep.subr.bf16.mxu0 %v2634_v55  ;;  %v2017_v50 = vrot.slane %v3894_v20, %v4539_v58  ;;  %v1985_v44 = vmul.f32 %v1952_v17, %v1928_v18  ;;  %v1929_v45 = vmul.f32 %v3863_v25, %v1897_v52  ;;  %v2656_v55 = vunpack.c.l.s8.bf16 %v4854_v39 }
 0x574   :  { %3058 = vmatprep.subr.bf16.mxu1 %v2636_v9  ;;  %v1921_v12 = vmul.f32 %v3863_v25, %v1889_v56  ;;  %v1977_v34 = vmul.f32 %v1952_v17, %v1920_v62  ;;  %v1987_v30 = vmul.f32 %v1960_v60, %v1930_v7  ;;  %v2021_v9 = vrot.slane %v3894_v20, %v4550_v3  ;;  %v2272_v62 = vld [vmem:[#allocation10 + $0x590] sm:$0xff] }
 0x575   :  { %v1979_v15 = vmul.f32 %v1960_v60, %v1922_v35  ;;  %v3865_v37 = vpop.eup %3864  ;;  %v1986_v6 = vmul.f32 %v1956_v1, %v1929_v45  ;;  %v2042_v4 = vadd.f32 %v2009_v29, %v1985_v44  ;;  %v2269_v45 = vld [vmem:[#allocation10 + $0x578] sm:$0xff] }
 0x576   :  { %2887 = vmatpush1.bf16.msra.mxu0 %v2633_v49  ;;  %v1978_v46 = vmul.f32 %v1956_v1, %v1921_v12  ;;  %v2034_v40 = vadd.f32 %v2009_v29, %v1977_v34  ;;  %v1931_v43 = vmul.f32 %v3865_v37, %v1899_v27  ;;  %v1923_v56 = vmul.f32 %v3865_v37, %v1891_v26  ;;  %v2271_v34 = vld [vmem:[#allocation10 + $0x588] sm:$0xff] }
 0x577   :  { %3059 = vmatpush1.bf16.msra.mxu1 %v2635_v11  ;;  %2888 = vmatprep.subr.bf16.mxu0 %v2641_v32  ;;  %v2036_v3 = vadd.f32 %v2017_v50, %v1979_v15  ;;  %v2043_v17 = vadd.f32 %v2013_v61, %v1986_v6  ;;  %vm2058_vm7 = vcmp.gt.f32.partialorder %v2042_v4, 0.0  ;;  %v2074_v49 = vmul.f32 0.2, %v2042_v4  ;;  %v2279_v15 = vld [vmem:[#allocation10 + $0x5c8] sm:$0xff] }
 0x578   :  { %3060 = vmatprep.subr.bf16.mxu1 %v2643_v23  ;;  %v2035_v52 = vadd.f32 %v2013_v61, %v1978_v46  ;;  %vm2050_vm6 = vcmp.gt.f32.partialorder %v2034_v40, 0.0  ;;  %v2066_v60 = vmul.f32 0.2, %v2034_v40  ;;  %v1988_v1 = vmul.f32 %v4825_v5, %v1931_v43  ;;  %v2278_v43 = vld [vmem:[#allocation10 + $0x5c0] sm:$0xff] }
 0x579   :  { %v1980_v11 = vmul.f32 %v4825_v5, %v1923_v56  ;;  %vm2059_vm9 = vcmp.gt.f32.partialorder %v2043_v17, 0.0  ;;  %v2075_v27 = vmul.f32 0.2, %v2043_v17  ;;  %v2090_v42 = vsel %vm2058_vm7, %v2042_v4, %v2074_v49 }
 0x57a   :  { %2889 = vmatpush1.bf16.msra.mxu0 %v2640_v51  ;;  %vm2051_vm8 = vcmp.gt.f32.partialorder %v2035_v52, 0.0  ;;  %v2067_v16 = vmul.f32 0.2, %v2035_v52  ;;  %v2082_v28 = vsel %vm2050_vm6, %v2034_v40, %v2066_v60  ;;  %v2045_v32 = vadd.f32 %v2021_v9, %v1988_v1  ;;  %v2276_v40 = vld [vmem:[#allocation10 + $0x5b0] sm:$0xff]  ;;  %v2286_v60 = vld [vmem:[#allocation10 + $0x600] sm:$0xff] }
 0x57b   :  { %3061 = vmatpush1.bf16.msra.mxu1 %v2642_v54  ;;  %2890 = vmatprep.subr.bf16.mxu0 %v2648_v47  ;;  %v2037_v26 = vadd.f32 %v2021_v9, %v1980_v11  ;;  %v2091_v25 = vsel %vm2059_vm9, %v2043_v17, %v2075_v27  ;;  %v4881_v20 = vpack.c.bf16 %v2090_v42, %v2082_v28  ;;  %v5024_v47 = vunpack.c.h.s8.bf16 %v4821_v36  ;;  %v2284_v17 = vld [vmem:[#allocation10 + $0x5f0] sm:$0xff]  ;;  %v2285_v28 = vld [vmem:[#allocation10 + $0x5f8] sm:$0xff] }
 0x57c   :  { %3062 = vmatprep.subr.bf16.mxu1 %v2650_v13  ;;  %v2083_v23 = vsel %vm2051_vm8, %v2035_v52, %v2067_v16  ;;  %v2044_v51 = vadd.f32 %v2017_v50, %v1987_v30  ;;  %vm2061_vm11 = vcmp.gt.f32.partialorder %v2045_v32, 0.0  ;;  %v5025_v13 = vunpack.c.l.s8.bf16 %v4827_v41  ;;  %v2283_v16 = vld [vmem:[#allocation10 + $0x5e8] sm:$0xff] }
 0x57d   :  { %v4885_v5 = vpack.c.bf16 %v2091_v25, %v2083_v23  ;;  %vm2053_vm10 = vcmp.gt.f32.partialorder %v2037_v26, 0.0  ;;  %v2069_v54 = vmul.f32 0.2, %v2037_v26  ;;  %v2077_v61 = vmul.f32 0.2, %v2045_v32  ;;  %v2291_v25 = vld [vmem:[#allocation10 + $0x628] sm:$0xff] }
 0x57e   :  { %2891 = vmatpush1.bf16.msra.mxu0 %v2647_v19  ;;  %vm2052_vm12 = vcmp.gt.f32.partialorder %v2036_v3, 0.0  ;;  %vm2060_vm13 = vcmp.gt.f32.partialorder %v2044_v51, 0.0  ;;  %v2068_v7 = vmul.f32 0.2, %v2036_v3  ;;  %v2270_v19 = vld [vmem:[#allocation10 + $0x580] sm:$0xff]  ;;  %v2664_v41 = vunpack.c.h.s8.bf16 %v4831_v0 }
 0x57f   :  { %3063 = vmatpush1.bf16.msra.mxu1 %v5024_v47  ;;  %2903 = vmatprep.subr.bf16.mxu0 %v5025_v13  ;;  %v2085_v14 = vsel %vm2053_vm10, %v2037_v26, %v2069_v54  ;;  %v2076_v18 = vmul.f32 0.2, %v2044_v51  ;;  %v2093_v36 = vsel %vm2061_vm11, %v2045_v32, %v2077_v61  ;;  %v2661_v50 = vunpack.c.h.s8.bf16 %v4837_v59  ;;  %v2290_v61 = vld [vmem:[#allocation10 + $0x620] sm:$0xff] }
 0x580   :  { %2892 = vmatprep.mubr.bf16.mxu0 %v4885_v5  ;;  %3064 = vmatprep.mubr.bf16.mxu1 %v4885_v5  ;;  %v2084_v29 = vsel %vm2052_vm12, %v2036_v3, %v2068_v7  ;;  %v4900_v35 = vpack.c.bf16 %v2093_v36, %v2085_v14  ;;  %v2669_v0 = vunpack.c.l.s8.bf16 %v2270_v19  ;;  %v2668_v59 = vunpack.c.l.s8.bf16 %v2269_v45  ;;  %v2292_v14 = vld [vmem:[#allocation10 + $0x630] sm:$0xff] }
 0x581   :  { %3075 = vmatprep.subr.bf16.mxu1 %v2657_v24  ;;  %2893 = vmatmul.mubr.bf16.vlgmr.msra.gmra.mrb[16].mxu0 %v4881_v20  ;;  %v2092_v44 = vsel %vm2060_vm13, %v2044_v51, %v2076_v18  ;;  %v2663_v24 = vunpack.c.h.s8.bf16 %v4854_v39  ;;  %v2670_v30 = vunpack.c.l.s8.bf16 %v2271_v34  ;;  %v2678_v9 = vunpack.c.h.s8.bf16 %v2272_v62  ;;  %v2277_v39 = vld [vmem:[#allocation10 + $0x5b8] sm:$0xff] }
 0x582   :  { %2904 = vmatpush1.bf16.msra.mxu0 %v2654_v22  ;;  %3065 = vmatmul.mubr.bf16.vlgmr.msra.gmra.mrb[20].mxu1 %v4881_v20  ;;  %v4907_v12 = vpack.c.bf16 %v2092_v44, %v2084_v29  ;;  %v2671_v22 = vunpack.c.l.s8.bf16 %v2272_v62  ;;  %v2675_v37 = vunpack.c.h.s8.bf16 %v2269_v45  ;;  %v2677_v6 = vunpack.c.h.s8.bf16 %v2271_v34  ;;  %v2293_v51 = vld [vmem:[#allocation10 + $0x638] sm:$0xff]  ;;  %v2298_v62 = vld [vmem:[#allocation10 + $0x660] sm:$0xff]  ;;  %v2300_v29 = vld [vmem:[#allocation10 + $0x670] sm:$0xff] }
 0x583   :  { %3076 = vmatpush1.bf16.msra.mxu1 %v2656_v55  ;;  %2905 = vmatprep.subr.bf16.mxu0 %v2662_v38  ;;  %v2676_v55 = vunpack.c.h.s8.bf16 %v2270_v19  ;;  %v2683_v46 = vunpack.c.l.s8.bf16 %v2277_v39  ;;  %v2685_v38 = vunpack.c.l.s8.bf16 %v2279_v15  ;;  %v2682_v4 = vunpack.c.l.s8.bf16 %v2276_v40 }
 0x584   :  { %2935 = vmatprep.mubr.bf16.mxu0 %v4900_v35  ;;  %3107 = vmatprep.mubr.bf16.mxu1 %v4900_v35  ;;  %v2684_v56 = vunpack.c.l.s8.bf16 %v2278_v43  ;;  %v2690_v3 = vunpack.c.h.s8.bf16 %v2277_v39  ;;  %v2692_v52 = vunpack.c.h.s8.bf16 %v2279_v15  ;;  %v2689_v1 = vunpack.c.h.s8.bf16 %v2276_v40  ;;  %v2307_v39 = vld [vmem:[#allocation10 + $0x6a8] sm:$0xff] }
 0x585   :  { %3077 = vmatprep.subr.bf16.mxu1 %v2664_v41  ;;  %v2691_v49 = vunpack.c.h.s8.bf16 %v2278_v43  ;;  %v2697_v11 = vunpack.c.l.s8.bf16 %v2284_v17  ;;  %v2699_v27 = vunpack.c.l.s8.bf16 %v2286_v60  ;;  %v2696_v42 = vunpack.c.l.s8.bf16 %v2283_v16 }
 0x586   :  { %2906 = vmatpush1.bf16.msra.mxu0 %v2661_v50  ;;  %v2698_v26 = vunpack.c.l.s8.bf16 %v2285_v28  ;;  %v2704_v32 = vunpack.c.h.s8.bf16 %v2284_v17  ;;  %v2706_v23 = vunpack.c.h.s8.bf16 %v2286_v60  ;;  %v2703_v54 = vunpack.c.h.s8.bf16 %v2283_v16  ;;  %v2314_v17 = vld [vmem:[#allocation10 + $0x6e0] sm:$0xff] }
 0x587   :  { %3078 = vmatpush1.bf16.msra.mxu1 %v2663_v24  ;;  %2907 = vmatprep.subr.bf16.mxu0 %v2669_v0  ;;  %v2705_v47 = vunpack.c.h.s8.bf16 %v2285_v28  ;;  %v2711_v13 = vunpack.c.l.s8.bf16 %v2291_v25  ;;  %v2713_v7 = vunpack.c.l.s8.bf16 %v2293_v51  ;;  %v2710_v19 = vunpack.c.l.s8.bf16 %v2290_v61  ;;  %v2297_v0 = vld [vmem:[#allocation10 + $0x658] sm:$0xff] }
 0x588   :  { %3079 = vmatprep.subr.bf16.mxu1 %v2671_v22  ;;  %v2712_v18 = vunpack.c.l.s8.bf16 %v2292_v14  ;;  %v2718_v36 = vunpack.c.h.s8.bf16 %v2291_v25  ;;  %v2720_v41 = vunpack.c.h.s8.bf16 %v2293_v51  ;;  %v2717_v50 = vunpack.c.h.s8.bf16 %v2290_v61  ;;  %v2299_v22 = vld [vmem:[#allocation10 + $0x668] sm:$0xff]  ;;  %v2128_v25 = vld [vmem:[#allocation10 + $0x110] sm:$0xff] }
 0x589   :  { %v2719_v44 = vunpack.c.h.s8.bf16 %v2292_v14  ;;  %v2725_v24 = vunpack.c.l.s8.bf16 %v2298_v62  ;;  %v2727_v45 = vunpack.c.l.s8.bf16 %v2300_v29  ;;  %v2724_v34 = vunpack.c.l.s8.bf16 %v2297_v0 }
 0x58a   :  { %2908 = vmatpush1.bf16.msra.mxu0 %v2668_v59  ;;  %v2726_v59 = vunpack.c.l.s8.bf16 %v2299_v22  ;;  %v2731_v15 = vunpack.c.h.s8.bf16 %v2297_v0  ;;  %v2741_v40 = vunpack.c.l.s8.bf16 %v2307_v39  ;;  %v2755_v16 = vunpack.c.l.s8.bf16 %v2314_v17 }
 0x58b   :  { %3080 = vmatpush1.bf16.msra.mxu1 %v2670_v30  ;;  %2909 = vmatprep.subr.bf16.mxu0 %v2676_v55  ;;  %v2732_v30 = vunpack.c.h.s8.bf16 %v2298_v62  ;;  %v2734_v55 = vunpack.c.h.s8.bf16 %v2300_v29  ;;  %v2380_v61 = vunpack.c.l.s8.bf16 %v2128_v25  ;;  %v2135_v62 = vld [vmem:[#allocation10 + $0x148] sm:$0xff] }
 0x58c   :  { %3081 = vmatprep.subr.bf16.mxu1 %v2678_v9  ;;  %v2305_v9 = vld [vmem:[#allocation10 + $0x698] sm:$0xff]  ;;  %v2394_v0 = vunpack.c.l.s8.bf16 %v2135_v62 }
 0x58e   :  { %2910 = vmatpush1.bf16.msra.mxu0 %v2675_v37  ;;  %v2733_v37 = vunpack.c.h.s8.bf16 %v2299_v22 }
 0x58f   :  { %3082 = vmatpush1.bf16.msra.mxu1 %v2677_v6  ;;  %2911 = vmatprep.subr.bf16.mxu0 %v2683_v46  ;;  %v2739_v6 = vunpack.c.l.s8.bf16 %v2305_v9  ;;  %v2304_v46 = vld [vmem:[#allocation10 + $0x690] sm:$0xff] }
 0x590   :  { %3083 = vmatprep.subr.bf16.mxu1 %v2685_v38  ;;  %v2306_v38 = vld [vmem:[#allocation10 + $0x6a0] sm:$0xff]  ;;  %v2738_v43 = vunpack.c.l.s8.bf16 %v2304_v46  ;;  %v2745_v60 = vunpack.c.h.s8.bf16 %v2304_v46 }
 0x591   :  { %v2114_v46 = vld [vmem:[#allocation10 + $0xa0] sm:$0xff] }
 0x592   :  { %2912 = vmatpush1.bf16.msra.mxu0 %v2682_v4  ;;  %v2740_v4 = vunpack.c.l.s8.bf16 %v2306_v38 }
 0x593   :  { %3084 = vmatpush1.bf16.msra.mxu1 %v2684_v56  ;;  %2913 = vmatprep.subr.bf16.mxu0 %v2690_v3  ;;  %v2746_v56 = vunpack.c.h.s8.bf16 %v2305_v9  ;;  %v2748_v3 = vunpack.c.h.s8.bf16 %v2307_v39  ;;  %v2142_v9 = vld [vmem:[#allocation10 + $0x180] sm:$0xff] }
 0x594   :  { %3085 = vmatprep.subr.bf16.mxu1 %v2692_v52  ;;  %v2312_v52 = vld [vmem:[#allocation10 + $0x6d0] sm:$0xff] }
 0x596   :  { %2914 = vmatpush1.bf16.msra.mxu0 %v2689_v1  ;;  %v2747_v1 = vunpack.c.h.s8.bf16 %v2306_v38  ;;  %v2352_v38 = vunpack.c.l.s8.bf16 %v2114_v46 }
 0x597   :  { %3086 = vmatpush1.bf16.msra.mxu1 %v2691_v49  ;;  %2915 = vmatprep.subr.bf16.mxu0 %v2697_v11  ;;  %v2753_v49 = vunpack.c.l.s8.bf16 %v2312_v52  ;;  %v2311_v11 = vld [vmem:[#allocation10 + $0x6c8] sm:$0xff] }
 0x598   :  { %3087 = vmatprep.subr.bf16.mxu1 %v2699_v27  ;;  %v2313_v27 = vld [vmem:[#allocation10 + $0x6d8] sm:$0xff]  ;;  %v2752_v28 = vunpack.c.l.s8.bf16 %v2311_v11  ;;  %v2759_v51 = vunpack.c.h.s8.bf16 %v2311_v11 }
 0x599   :  { %v2121_v11 = vld [vmem:[#allocation10 + $0xd8] sm:$0xff] }
 0x59a   :  { %2916 = vmatpush1.bf16.msra.mxu0 %v2696_v42  ;;  %v2754_v42 = vunpack.c.l.s8.bf16 %v2313_v27 }
 0x59b   :  { %3088 = vmatpush1.bf16.msra.mxu1 %v2698_v26  ;;  %2917 = vmatprep.subr.bf16.mxu0 %v2704_v32  ;;  %v2760_v26 = vunpack.c.h.s8.bf16 %v2312_v52  ;;  %v2762_v32 = vunpack.c.h.s8.bf16 %v2314_v17  ;;  %v2359_v17 = vunpack.c.h.s8.bf16 %v2114_v46 }
 0x59c   :  { %3089 = vmatprep.subr.bf16.mxu1 %v2706_v23  ;;  %v2099_v23 = vld [vmem:[#allocation10 + $0x28] sm:$0xff] }
 0x59e   :  { %2918 = vmatpush1.bf16.msra.mxu0 %v2703_v54  ;;  %v2761_v54 = vunpack.c.h.s8.bf16 %v2313_v27  ;;  %v2366_v27 = vunpack.c.l.s8.bf16 %v2121_v11 }
 0x59f   :  { %3090 = vmatpush1.bf16.msra.mxu1 %v2705_v47  ;;  %2919 = vmatprep.subr.bf16.mxu0 %v2711_v13  ;;  %v2323_v47 = vunpack.c.l.s8.bf16 %v2099_v23  ;;  %v2098_v13 = vld [vmem:[#allocation10 + $0x20] sm:$0xff] }
 0x5a0   :  { %3091 = vmatprep.subr.bf16.mxu1 %v2713_v7  ;;  %v2100_v7 = vld [vmem:[#allocation10 + $0x30] sm:$0xff]  ;;  %v2322_v14 = vunpack.c.l.s8.bf16 %v2098_v13  ;;  %v2329_v29 = vunpack.c.h.s8.bf16 %v2098_v13 }
 0x5a1   :  { %v2156_v13 = vld [vmem:[#allocation10 + $0x1f0] sm:$0xff] }
 0x5a2   :  { %2920 = vmatpush1.bf16.msra.mxu0 %v2710_v19  ;;  %v2324_v19 = vunpack.c.l.s8.bf16 %v2100_v7 }
 0x5a3   :  { %3092 = vmatpush1.bf16.msra.mxu1 %v2712_v18  ;;  %2921 = vmatprep.subr.bf16.mxu0 %v2718_v36  ;;  %v2330_v18 = vunpack.c.h.s8.bf16 %v2099_v23  ;;  %v2106_v36 = vld [vmem:[#allocation10 + $0x60] sm:$0xff] }
 0x5a4   :  { %3093 = vmatprep.subr.bf16.mxu1 %v2720_v41  ;;  %v2387_v41 = vunpack.c.h.s8.bf16 %v2128_v25  ;;  %v2373_v25 = vunpack.c.h.s8.bf16 %v2121_v11 }
 0x5a6   :  { %2922 = vmatpush1.bf16.msra.mxu0 %v2717_v50  ;;  %v2331_v50 = vunpack.c.h.s8.bf16 %v2100_v7  ;;  %v2436_v7 = vunpack.c.l.s8.bf16 %v2156_v13 }
 0x5a7   :  { %3094 = vmatpush1.bf16.msra.mxu1 %v2719_v44  ;;  %2923 = vmatprep.subr.bf16.mxu0 %v2725_v24  ;;  %v2337_v44 = vunpack.c.l.s8.bf16 %v2106_v36  ;;  %v2105_v24 = vld [vmem:[#allocation10 + $0x58] sm:$0xff] }
 0x5a8   :  { %3095 = vmatprep.subr.bf16.mxu1 %v2727_v45  ;;  %v2107_v45 = vld [vmem:[#allocation10 + $0x68] sm:$0xff]  ;;  %v2336_v22 = vunpack.c.l.s8.bf16 %v2105_v24  ;;  %v2343_v39 = vunpack.c.h.s8.bf16 %v2105_v24 }
 0x5a9   :  { %v2163_v24 = vld [vmem:[#allocation10 + $0x228] sm:$0xff] }
 0x5aa   :  { %2924 = vmatpush1.bf16.msra.mxu0 %v2724_v34  ;;  %v2338_v34 = vunpack.c.l.s8.bf16 %v2107_v45 }
 0x5ab   :  { %3096 = vmatpush1.bf16.msra.mxu1 %v2726_v59  ;;  %2925 = vmatprep.subr.bf16.mxu0 %v2732_v30  ;;  %v2344_v59 = vunpack.c.h.s8.bf16 %v2106_v36  ;;  %v2401_v30 = vunpack.c.h.s8.bf16 %v2135_v62  ;;  %v2191_v36 = vld [vmem:[#allocation10 + $0x308] sm:$0xff]  ;;  %v2443_v62 = vunpack.c.h.s8.bf16 %v2156_v13 }
 0x5ac   :  { %3097 = vmatprep.subr.bf16.mxu1 %v2734_v55  ;;  %v2113_v55 = vld [vmem:[#allocation10 + $0x98] sm:$0xff] }
 0x5ae   :  { %2926 = vmatpush1.bf16.msra.mxu0 %v2731_v15  ;;  %v2345_v15 = vunpack.c.h.s8.bf16 %v2107_v45  ;;  %v2450_v45 = vunpack.c.l.s8.bf16 %v2163_v24 }
 0x5af   :  { %3098 = vmatpush1.bf16.msra.mxu1 %v2733_v37  ;;  %2927 = vmatprep.subr.bf16.mxu0 %v2739_v6  ;;  %v2112_v37 = vld [vmem:[#allocation10 + $0x90] sm:$0xff]  ;;  %v2408_v6 = vunpack.c.l.s8.bf16 %v2142_v9 }
 0x5b0   :  { %3099 = vmatprep.subr.bf16.mxu1 %v2741_v40  ;;  %v2350_v40 = vunpack.c.l.s8.bf16 %v2112_v37  ;;  %v2357_v52 = vunpack.c.h.s8.bf16 %v2112_v37  ;;  %v2170_v37 = vld [vmem:[#allocation10 + $0x260] sm:$0xff] }
 0x5b1   :  { %v2464_v46 = vunpack.c.l.s8.bf16 %v2170_v37 }
 0x5b2   :  { %2928 = vmatpush1.bf16.msra.mxu0 %v2738_v43  ;;  %v2358_v43 = vunpack.c.h.s8.bf16 %v2113_v55 }
 0x5b3   :  { %3100 = vmatpush1.bf16.msra.mxu1 %v2740_v4  ;;  %2929 = vmatprep.subr.bf16.mxu0 %v2746_v56  ;;  %v2415_v4 = vunpack.c.h.s8.bf16 %v2142_v9  ;;  %v2120_v56 = vld [vmem:[#allocation10 + $0xd0] sm:$0xff]  ;;  %v2457_v9 = vunpack.c.h.s8.bf16 %v2163_v24 }
 0x5b4   :  { %3101 = vmatprep.subr.bf16.mxu1 %v2748_v3  ;;  %v2149_v3 = vld [vmem:[#allocation10 + $0x1b8] sm:$0xff] }
 0x5b6   :  { %2930 = vmatpush1.bf16.msra.mxu0 %v2745_v60  ;;  %v2365_v60 = vunpack.c.l.s8.bf16 %v2120_v56 }
 0x5b7   :  { %3102 = vmatpush1.bf16.msra.mxu1 %v2747_v1  ;;  %2931 = vmatprep.subr.bf16.mxu0 %v2753_v49  ;;  %v2119_v1 = vld [vmem:[#allocation10 + $0xc8] sm:$0xff]  ;;  %v2422_v49 = vunpack.c.l.s8.bf16 %v2149_v3 }
 0x5b8   :  { %3103 = vmatprep.subr.bf16.mxu1 %v2755_v16  ;;  %v2364_v16 = vunpack.c.l.s8.bf16 %v2119_v1  ;;  %v2371_v23 = vunpack.c.h.s8.bf16 %v2119_v1  ;;  %v2177_v1 = vld [vmem:[#allocation10 + $0x298] sm:$0xff] }
 0x5b9   :  { %v2478_v11 = vunpack.c.l.s8.bf16 %v2177_v1 }
 0x5ba   :  { %2932 = vmatpush1.bf16.msra.mxu0 %v2752_v28  ;;  %v2372_v28 = vunpack.c.h.s8.bf16 %v2120_v56 }
 0x5bb   :  { %3104 = vmatpush1.bf16.msra.mxu1 %v2754_v42  ;;  %2933 = vmatprep.subr.bf16.mxu0 %v2760_v26  ;;  %v2429_v42 = vunpack.c.h.s8.bf16 %v2149_v3  ;;  %v2127_v26 = vld [vmem:[#allocation10 + $0x108] sm:$0xff]  ;;  %v2471_v3 = vunpack.c.h.s8.bf16 %v2170_v37 }
 0x5bc   :  { %3105 = vmatprep.subr.bf16.mxu1 %v2762_v32  ;;  %v2184_v32 = vld [vmem:[#allocation10 + $0x2d0] sm:$0xff] }
 0x5be   :  { %2934 = vmatpush1.bf16.msra.mxu0 %v2759_v51  ;;  %v2379_v51 = vunpack.c.l.s8.bf16 %v2127_v26 }
 0x5bf   :  { %3106 = vmatpush1.bf16.msra.mxu1 %v2761_v54  ;;  %3118 = vmatprep.subr.bf16.mxu0 %v2323_v47  ;;  %v2126_v54 = vld [vmem:[#allocation10 + $0x100] sm:$0xff]  ;;  %v2492_v47 = vunpack.c.l.s8.bf16 %v2184_v32 }
 0x5c0   :  { %3662 = vmatprep.subr.bf16.mxu1 %v2380_v61  ;;  %v2378_v61 = vunpack.c.l.s8.bf16 %v2126_v54 }
 0x5c1   :  { %2936 = vmatmul.mubr.bf16.vlgmr.msra.gmra.mrb[16].mxu0 %v4907_v12 }
 0x5c2   :  { %3108 = vmatmul.mubr.bf16.vlgmr.msra.gmra.mrb[20].mxu1 %v4907_v12  ;;  %3119 = vmatpush1.bf16.msra.mxu0 %v2322_v14  ;;  %v2386_v14 = vunpack.c.h.s8.bf16 %v2127_v26 }
 0x5c3   :  { %3150 = vmatprep.mubr.bf16.mxu0 %v4514_v53  ;;  %3663 = vmatpush3.bf16.msra.mxu1 %v2324_v19  ;;  %v2499_v19 = vunpack.c.h.s8.bf16 %v2184_v32  ;;  %v2485_v32 = vunpack.c.h.s8.bf16 %v2177_v1 }
 0x5c4   :  { %3322 = vmatprep.mubr.bf16.mxu1 %v4514_v53  ;;  %3120 = vmatprep.subr.bf16.mxu0 %v2330_v18  ;;  %v2351_v53 = vunpack.c.l.s8.bf16 %v2113_v55  ;;  %v2134_v18 = vld [vmem:[#allocation10 + $0x140] sm:$0xff] }
 0x5c5   :  { %3664 = vmatprep.subr.bf16.mxu1 %v2387_v41  ;;  %v2385_v41 = vunpack.c.h.s8.bf16 %v2126_v54  ;;  %v2212_v54 = vld [vmem:[#allocation10 + $0x3b0] sm:$0xff] }
 0x5c6   :  { %3121 = vmatpush1.bf16.msra.mxu0 %v2329_v29  ;;  %v2393_v29 = vunpack.c.l.s8.bf16 %v2134_v18  ;;  %v2548_v13 = vunpack.c.l.s8.bf16 %v2212_v54 }
 0x5c7   :  { %3665 = vmatpush3.bf16.msra.mxu1 %v2331_v50  ;;  %3122 = vmatprep.subr.bf16.mxu0 %v2337_v44  ;;  %v2133_v50 = vld [vmem:[#allocation10 + $0x138] sm:$0xff]  ;;  %v2506_v44 = vunpack.c.l.s8.bf16 %v2191_v36 }
 0x5c8   :  { %3666 = vmatprep.subr.bf16.mxu1 %v2394_v0  ;;  %v2392_v0 = vunpack.c.l.s8.bf16 %v2133_v50  ;;  %v2399_v55 = vunpack.c.h.s8.bf16 %v2133_v50  ;;  %v2219_v50 = vld [vmem:[#allocation10 + $0x3e8] sm:$0xff] }
 0x5ca   :  { %3123 = vmatpush1.bf16.msra.mxu0 %v2336_v22  ;;  %v2400_v22 = vunpack.c.h.s8.bf16 %v2134_v18 }
 0x5cb   :  { %3667 = vmatpush3.bf16.msra.mxu1 %v2338_v34  ;;  %3124 = vmatprep.subr.bf16.mxu0 %v2344_v59  ;;  %v2513_v34 = vunpack.c.h.s8.bf16 %v2191_v36  ;;  %v2141_v59 = vld [vmem:[#allocation10 + $0x178] sm:$0xff]  ;;  %v2555_v36 = vunpack.c.h.s8.bf16 %v2212_v54 }
 0x5cc   :  { %3668 = vmatprep.subr.bf16.mxu1 %v2401_v30  ;;  %v2198_v30 = vld [vmem:[#allocation10 + $0x340] sm:$0xff] }
 0x5ce   :  { %3125 = vmatpush1.bf16.msra.mxu0 %v2343_v39  ;;  %v2407_v39 = vunpack.c.l.s8.bf16 %v2141_v59 }
 0x5cf   :  { %3669 = vmatpush3.bf16.msra.mxu1 %v2345_v15  ;;  %3126 = vmatprep.subr.bf16.mxu0 %v2351_v53  ;;  %v2140_v15 = vld [vmem:[#allocation10 + $0x170] sm:$0xff]  ;;  %v2520_v53 = vunpack.c.l.s8.bf16 %v2198_v30 }
 0x5d0   :  { %3670 = vmatprep.subr.bf16.mxu1 %v2408_v6  ;;  %v2406_v6 = vunpack.c.l.s8.bf16 %v2140_v15  ;;  %v2413_v56 = vunpack.c.h.s8.bf16 %v2140_v15 }
 0x5d2   :  { %3127 = vmatpush1.bf16.msra.mxu0 %v2350_v40  ;;  %v2414_v40 = vunpack.c.h.s8.bf16 %v2141_v59 }
 0x5d3   :  { %3671 = vmatpush3.bf16.msra.mxu1 %v2352_v38  ;;  %3128 = vmatprep.subr.bf16.mxu0 %v2358_v43  ;;  %v2527_v38 = vunpack.c.h.s8.bf16 %v2198_v30  ;;  %v2148_v43 = vld [vmem:[#allocation10 + $0x1b0] sm:$0xff] }
 0x5d4   :  { %3672 = vmatprep.subr.bf16.mxu1 %v2415_v4  ;;  %v2205_v4 = vld [vmem:[#allocation10 + $0x378] sm:$0xff]  ;;  %v2168_v30 = vld [vmem:[#allocation10 + $0x250] sm:$0xff] }
 0x5d6   :  { %3129 = vmatpush1.bf16.msra.mxu0 %v2357_v52  ;;  %v2421_v52 = vunpack.c.l.s8.bf16 %v2148_v43 }
 0x5d7   :  { %3673 = vmatpush3.bf16.msra.mxu1 %v2359_v17  ;;  %3130 = vmatprep.subr.bf16.mxu0 %v2365_v60  ;;  %v2147_v17 = vld [vmem:[#allocation10 + $0x1a8] sm:$0xff]  ;;  %v2534_v60 = vunpack.c.l.s8.bf16 %v2205_v4 }
 0x5d8   :  { %3674 = vmatprep.subr.bf16.mxu1 %v2422_v49  ;;  %v2420_v49 = vunpack.c.l.s8.bf16 %v2147_v17  ;;  %v2427_v26 = vunpack.c.h.s8.bf16 %v2147_v17 }
 0x5da   :  { %3131 = vmatpush1.bf16.msra.mxu0 %v2364_v16  ;;  %v2428_v16 = vunpack.c.h.s8.bf16 %v2148_v43 }
 0x5db   :  { %3675 = vmatpush3.bf16.msra.mxu1 %v2366_v27  ;;  %3132 = vmatprep.subr.bf16.mxu0 %v2372_v28  ;;  %v2541_v27 = vunpack.c.h.s8.bf16 %v2205_v4  ;;  %v2155_v28 = vld [vmem:[#allocation10 + $0x1e8] sm:$0xff] }
 0x5dc   :  { %3676 = vmatprep.subr.bf16.mxu1 %v2429_v42  ;;  %v2240_v42 = vld [vmem:[#allocation10 + $0x490] sm:$0xff]  ;;  %v2175_v4 = vld [vmem:[#allocation10 + $0x288] sm:$0xff] }
 0x5de   :  { %3133 = vmatpush1.bf16.msra.mxu0 %v2371_v23  ;;  %v2435_v23 = vunpack.c.l.s8.bf16 %v2155_v28 }
 0x5df   :  { %3677 = vmatpush3.bf16.msra.mxu1 %v2373_v25  ;;  %3134 = vmatprep.subr.bf16.mxu0 %v2379_v51  ;;  %v2154_v25 = vld [vmem:[#allocation10 + $0x1e0] sm:$0xff]  ;;  %v2604_v51 = vunpack.c.l.s8.bf16 %v2240_v42 }
 0x5e0   :  { %3684 = vmatprep.subr.bf16.mxu1 %v2492_v47  ;;  %v2434_v47 = vunpack.c.l.s8.bf16 %v2154_v25  ;;  %v2441_v18 = vunpack.c.h.s8.bf16 %v2154_v25 }
 0x5e2   :  { %3323 = vmatmul.mubr.bf16.vlgmr.msra.gmra.mrb[24].mxu1 %v4512_v48  ;;  %3135 = vmatpush1.bf16.msra.mxu0 %v2378_v61  ;;  %v2442_v61 = vunpack.c.h.s8.bf16 %v2155_v28 }
 0x5e3   :  { %3685 = vmatpush3.bf16.msra.mxu1 %v2436_v7  ;;  %3363 = vmatprep.mubr.bf16.mxu1 %v4522_v57  ;;  %v2162_v7 = vld [vmem:[#allocation10 + $0x220] sm:$0xff] }
 0x5e4   :  { %3136 = vmatprep.subr.bf16.mxu0 %v2386_v14  ;;  %3686 = vmatprep.subr.bf16.mxu1 %v2499_v19  ;;  %v2611_v14 = vunpack.c.h.s8.bf16 %v2240_v42  ;;  %v2247_v19 = vld [vmem:[#allocation10 + $0x4c8] sm:$0xff]  ;;  %v2456_v24 = vunpack.c.h.s8.bf16 %v2162_v7  ;;  %v2182_v42 = vld [vmem:[#allocation10 + $0x2c0] sm:$0xff] }
 0x5e6   :  { %3137 = vmatpush1.bf16.msra.mxu0 %v2385_v41  ;;  %v2449_v41 = vunpack.c.l.s8.bf16 %v2162_v7 }
 0x5e7   :  { %3687 = vmatpush3.bf16.msra.mxu1 %v2443_v62  ;;  %3138 = vmatprep.subr.bf16.mxu0 %v2393_v29  ;;  %v2161_v62 = vld [vmem:[#allocation10 + $0x218] sm:$0xff]  ;;  %v2618_v29 = vunpack.c.l.s8.bf16 %v2247_v19 }
 0x5e8   :  { %3688 = vmatprep.subr.bf16.mxu1 %v2506_v44  ;;  %v2562_v44 = vunpack.c.l.s8.bf16 %v2219_v50 }
 0x5ea   :  { %3139 = vmatpush1.bf16.msra.mxu0 %v2392_v0  ;;  %v2625_v0 = vunpack.c.h.s8.bf16 %v2247_v19  ;;  %v2189_v19 = vld [vmem:[#allocation10 + $0x2f8] sm:$0xff] }
 0x5eb   :  { %3689 = vmatpush3.bf16.msra.mxu1 %v2450_v45  ;;  %3140 = vmatprep.subr.bf16.mxu0 %v2400_v22  ;;  %v2169_v45 = vld [vmem:[#allocation10 + $0x258] sm:$0xff]  ;;  %v2455_v22 = vunpack.c.h.s8.bf16 %v2161_v62 }
 0x5ec   :  { %3690 = vmatprep.subr.bf16.mxu1 %v2513_v34  ;;  %v2569_v34 = vunpack.c.h.s8.bf16 %v2219_v50  ;;  %v2463_v59 = vunpack.c.l.s8.bf16 %v2169_v45 }
 0x5ee   :  { %3141 = vmatpush1.bf16.msra.mxu0 %v2399_v55 }
 0x5ef   :  { %3691 = vmatpush3.bf16.msra.mxu1 %v2457_v9  ;;  %3142 = vmatprep.subr.bf16.mxu0 %v2407_v39  ;;  %v2226_v9 = vld [vmem:[#allocation10 + $0x420] sm:$0xff]  ;;  %v2462_v39 = vunpack.c.l.s8.bf16 %v2168_v30 }
 0x5f0   :  { %3692 = vmatprep.subr.bf16.mxu1 %v2520_v53  ;;  %v2576_v15 = vunpack.c.l.s8.bf16 %v2226_v9  ;;  %v2470_v53 = vunpack.c.h.s8.bf16 %v2169_v45 }
 0x5f2   :  { %3143 = vmatpush1.bf16.msra.mxu0 %v2406_v6  ;;  %v2176_v6 = vld [vmem:[#allocation10 + $0x290] sm:$0xff] }
 0x5f3   :  { %3693 = vmatpush3.bf16.msra.mxu1 %v2464_v46  ;;  %3144 = vmatprep.subr.bf16.mxu0 %v2414_v40  ;;  %v2261_v46 = vld [vmem:[#allocation10 + $0x538] sm:$0xff]  ;;  %v2469_v40 = vunpack.c.h.s8.bf16 %v2168_v30  ;;  %v2477_v43 = vunpack.c.l.s8.bf16 %v2176_v6 }
 0x5f4   :  { %3694 = vmatprep.subr.bf16.mxu1 %v2527_v38  ;;  %v2583_v38 = vunpack.c.h.s8.bf16 %v2226_v9  ;;  %v2653_v1 = vunpack.c.h.s8.bf16 %v2261_v46 }
 0x5f6   :  { %3145 = vmatpush1.bf16.msra.mxu0 %v2413_v56  ;;  %v2646_v56 = vunpack.c.l.s8.bf16 %v2261_v46  ;;  %v2203_v46 = vld [vmem:[#allocation10 + $0x368] sm:$0xff] }
 0x5f7   :  { %3695 = vmatpush3.bf16.msra.mxu1 %v2471_v3  ;;  %3146 = vmatprep.subr.bf16.mxu0 %v2421_v52  ;;  %v2233_v3 = vld [vmem:[#allocation10 + $0x458] sm:$0xff]  ;;  %v2476_v52 = vunpack.c.l.s8.bf16 %v2175_v4 }
 0x5f8   :  { %3696 = vmatprep.subr.bf16.mxu1 %v2534_v60  ;;  %v2590_v17 = vunpack.c.l.s8.bf16 %v2233_v3  ;;  %v2484_v60 = vunpack.c.h.s8.bf16 %v2176_v6 }
 0x5fa   :  { %3147 = vmatpush1.bf16.msra.mxu0 %v2420_v49  ;;  %v2183_v49 = vld [vmem:[#allocation10 + $0x2c8] sm:$0xff] }
 0x5fb   :  { %3697 = vmatpush3.bf16.msra.mxu1 %v2478_v11  ;;  %3148 = vmatprep.subr.bf16.mxu0 %v2428_v16  ;;  %v2296_v11 = vld [vmem:[#allocation10 + $0x650] sm:$0xff]  ;;  %v2483_v16 = vunpack.c.h.s8.bf16 %v2175_v4  ;;  %v2491_v28 = vunpack.c.l.s8.bf16 %v2183_v49 }
 0x5fc   :  { %3698 = vmatprep.subr.bf16.mxu1 %v2541_v27  ;;  %v2597_v27 = vunpack.c.h.s8.bf16 %v2233_v3  ;;  %v2723_v54 = vunpack.c.h.s8.bf16 %v2296_v11 }
 0x5fe   :  { %3149 = vmatpush1.bf16.msra.mxu0 %v2427_v26  ;;  %v2716_v26 = vunpack.c.l.s8.bf16 %v2296_v11 }
 0x5ff   :  { %3699 = vmatpush3.bf16.msra.mxu1 %v2485_v32  ;;  %3161 = vmatprep.subr.bf16.mxu0 %v2435_v23  ;;  %v2268_v32 = vld [vmem:[#allocation10 + $0x570] sm:$0xff]  ;;  %v2490_v23 = vunpack.c.l.s8.bf16 %v2182_v42 }
 0x600   :  { %3706 = vmatprep.subr.bf16.mxu1 %v2604_v51  ;;  %v2660_v25 = vunpack.c.l.s8.bf16 %v2268_v32  ;;  %v2498_v51 = vunpack.c.h.s8.bf16 %v2183_v49  ;;  %v2667_v7 = vunpack.c.h.s8.bf16 %v2268_v32  ;;  %v2210_v49 = vld [vmem:[#allocation10 + $0x3a0] sm:$0xff] }
 0x601   :  { %3151 = vmatmul.mubr.bf16.vlgmr.msra.gmra.mrb[20].mxu0 %v4512_v48  ;;  %v2448_v48 = vunpack.c.l.s8.bf16 %v2161_v62  ;;  %v2546_v11 = vunpack.c.l.s8.bf16 %v2210_v49 }
 0x602   :  { %3364 = vmatmul.mubr.bf16.vlgmr.msra.gmra.mrb[28].mxu1 %v4527_v21  ;;  %3162 = vmatpush1.bf16.msra.mxu0 %v2434_v47  ;;  %v2190_v47 = vld [vmem:[#allocation10 + $0x300] sm:$0xff] }
 0x603   :  { %3193 = vmatprep.mubr.bf16.mxu0 %v4522_v57  ;;  %3707 = vmatpush3.bf16.msra.mxu1 %v2548_v13  ;;  %v2254_v57 = vld [vmem:[#allocation10 + $0x500] sm:$0xff]  ;;  %v2303_v13 = vld [vmem:[#allocation10 + $0x688] sm:$0xff] }
 0x604   :  { %3404 = vmatprep.mubr.bf16.mxu1 %v4885_v5  ;;  %3163 = vmatprep.subr.bf16.mxu0 %v2442_v61  ;;  %v2632_v55 = vunpack.c.l.s8.bf16 %v2254_v57  ;;  %v2639_v37 = vunpack.c.h.s8.bf16 %v2254_v57  ;;  %v2497_v61 = vunpack.c.h.s8.bf16 %v2182_v42  ;;  %v2737_v50 = vunpack.c.h.s8.bf16 %v2303_v13  ;;  %v2196_v57 = vld [vmem:[#allocation10 + $0x330] sm:$0xff] }
 0x605   :  { %3708 = vmatprep.subr.bf16.mxu1 %v2611_v14  ;;  %v2505_v14 = vunpack.c.l.s8.bf16 %v2190_v47 }
 0x606   :  { %3164 = vmatpush1.bf16.msra.mxu0 %v2441_v18  ;;  %v2730_v18 = vunpack.c.l.s8.bf16 %v2303_v13 }
 0x607   :  { %3709 = vmatpush3.bf16.msra.mxu1 %v2555_v36  ;;  %3165 = vmatprep.subr.bf16.mxu0 %v2449_v41  ;;  %v2275_v36 = vld [vmem:[#allocation10 + $0x5a8] sm:$0xff]  ;;  %v2504_v41 = vunpack.c.l.s8.bf16 %v2189_v19 }
 0x608   :  { %3710 = vmatprep.subr.bf16.mxu1 %v2618_v29  ;;  %v2674_v62 = vunpack.c.l.s8.bf16 %v2275_v36  ;;  %v2512_v29 = vunpack.c.h.s8.bf16 %v2190_v47  ;;  %v2224_v47 = vld [vmem:[#allocation10 + $0x410] sm:$0xff] }
 0x60a   :  { %3166 = vmatpush1.bf16.msra.mxu0 %v2448_v48  ;;  %v2197_v48 = vld [vmem:[#allocation10 + $0x338] sm:$0xff] }
 0x60b   :  { %3711 = vmatpush3.bf16.msra.mxu1 %v2562_v44  ;;  %3167 = vmatprep.subr.bf16.mxu0 %v2456_v24  ;;  %v2310_v44 = vld [vmem:[#allocation10 + $0x6c0] sm:$0xff]  ;;  %v2511_v24 = vunpack.c.h.s8.bf16 %v2189_v19  ;;  %v2519_v45 = vunpack.c.l.s8.bf16 %v2197_v48 }
 0x60c   :  { %3712 = vmatprep.subr.bf16.mxu1 %v2625_v0  ;;  %v2681_v0 = vunpack.c.h.s8.bf16 %v2275_v36  ;;  %v2751_v9 = vunpack.c.h.s8.bf16 %v2310_v44  ;;  %v2239_v36 = vld [vmem:[#allocation10 + $0x488] sm:$0xff] }
 0x60e   :  { %3168 = vmatpush1.bf16.msra.mxu0 %v2455_v22  ;;  %v2744_v22 = vunpack.c.l.s8.bf16 %v2310_v44  ;;  %v2246_v44 = vld [vmem:[#allocation10 + $0x4c0] sm:$0xff] }
 0x60f   :  { %3713 = vmatpush3.bf16.msra.mxu1 %v2569_v34  ;;  %3169 = vmatprep.subr.bf16.mxu0 %v2463_v59  ;;  %v2282_v34 = vld [vmem:[#allocation10 + $0x5e0] sm:$0xff]  ;;  %v2518_v59 = vunpack.c.l.s8.bf16 %v2196_v57 }
 0x610   :  { %3714 = vmatprep.subr.bf16.mxu1 %v2632_v55  ;;  %v2688_v30 = vunpack.c.l.s8.bf16 %v2282_v34  ;;  %v2526_v55 = vunpack.c.h.s8.bf16 %v2197_v48  ;;  %v2610_v48 = vunpack.c.h.s8.bf16 %v2239_v36 }
 0x612   :  { %3170 = vmatpush1.bf16.msra.mxu0 %v2462_v39  ;;  %v2204_v39 = vld [vmem:[#allocation10 + $0x370] sm:$0xff] }
 0x613   :  { %3715 = vmatpush3.bf16.msra.mxu1 %v2576_v15  ;;  %3171 = vmatprep.subr.bf16.mxu0 %v2470_v53  ;;  %v2317_v15 = vld [vmem:[#allocation10 + $0x6f8] sm:$0xff]  ;;  %v2525_v53 = vunpack.c.h.s8.bf16 %v2196_v57  ;;  %v2533_v6 = vunpack.c.l.s8.bf16 %v2204_v39 }
 0x614   :  { %3716 = vmatprep.subr.bf16.mxu1 %v2639_v37  ;;  %v2695_v37 = vunpack.c.h.s8.bf16 %v2282_v34  ;;  %v2765_v3 = vunpack.c.h.s8.bf16 %v2317_v15  ;;  %v2253_v34 = vld [vmem:[#allocation10 + $0x4f8] sm:$0xff] }
 0x616   :  { %3172 = vmatpush1.bf16.msra.mxu0 %v2469_v40  ;;  %v2758_v40 = vunpack.c.l.s8.bf16 %v2317_v15  ;;  %v2260_v15 = vld [vmem:[#allocation10 + $0x530] sm:$0xff] }
 0x617   :  { %3717 = vmatpush3.bf16.msra.mxu1 %v2583_v38  ;;  %3173 = vmatprep.subr.bf16.mxu0 %v2477_v43  ;;  %v2289_v38 = vld [vmem:[#allocation10 + $0x618] sm:$0xff]  ;;  %v2532_v43 = vunpack.c.l.s8.bf16 %v2203_v46 }
 0x618   :  { %3718 = vmatprep.subr.bf16.mxu1 %v2646_v56  ;;  %v2702_v4 = vunpack.c.l.s8.bf16 %v2289_v38  ;;  %v2540_v56 = vunpack.c.h.s8.bf16 %v2204_v39  ;;  %v2638_v39 = vunpack.c.h.s8.bf16 %v2253_v34 }
 0x61a   :  { %3174 = vmatpush1.bf16.msra.mxu0 %v2476_v52  ;;  %v2211_v52 = vld [vmem:[#allocation10 + $0x3a8] sm:$0xff] }
 0x61b   :  { %3719 = vmatpush3.bf16.msra.mxu1 %v2590_v17  ;;  %3175 = vmatprep.subr.bf16.mxu0 %v2484_v60  ;;  %v2539_v17 = vunpack.c.h.s8.bf16 %v2203_v46  ;;  %v2709_v60 = vunpack.c.h.s8.bf16 %v2289_v38  ;;  %v2267_v38 = vld [vmem:[#allocation10 + $0x568] sm:$0xff] }
 0x61c   :  { %3720 = vmatprep.subr.bf16.mxu1 %v2653_v1  ;;  %v2547_v1 = vunpack.c.l.s8.bf16 %v2211_v52 }
 0x61e   :  { %3176 = vmatpush1.bf16.msra.mxu0 %v2483_v16  ;;  %v2554_v16 = vunpack.c.h.s8.bf16 %v2211_v52  ;;  %v2666_v52 = vunpack.c.h.s8.bf16 %v2267_v38 }
 0x61f   :  { %3721 = vmatpush3.bf16.msra.mxu1 %v2597_v27  ;;  %3177 = vmatprep.subr.bf16.mxu0 %v2491_v28  ;;  %v2218_v27 = vld [vmem:[#allocation10 + $0x3e0] sm:$0xff]  ;;  %v2553_v28 = vunpack.c.h.s8.bf16 %v2210_v49  ;;  %v2273_v49 = vld [vmem:[#allocation10 + $0x598] sm:$0xff] }
 0x620   :  { %3728 = vmatprep.subr.bf16.mxu1 %v2716_v26  ;;  %v2561_v42 = vunpack.c.l.s8.bf16 %v2218_v27  ;;  %v2217_v26 = vld [vmem:[#allocation10 + $0x3d8] sm:$0xff] }
 0x621   :  { %v2560_v32 = vunpack.c.l.s8.bf16 %v2217_v26 }
 0x622   :  { %3405 = vmatmul.mubr.bf16.vlgmr.msra.gmra.mrb[32].mxu1 %v4881_v20  ;;  %3178 = vmatpush1.bf16.msra.mxu0 %v2490_v23  ;;  %v2568_v23 = vunpack.c.h.s8.bf16 %v2218_v27  ;;  %v2281_v27 = vld [vmem:[#allocation10 + $0x5d8] sm:$0xff] }
 0x623   :  { %3729 = vmatpush3.bf16.msra.mxu1 %v2660_v25  ;;  %3445 = vmatprep.mubr.bf16.mxu1 %v4900_v35  ;;  %v2225_v25 = vld [vmem:[#allocation10 + $0x418] sm:$0xff] }
 0x624   :  { %3179 = vmatprep.subr.bf16.mxu0 %v2498_v51  ;;  %3730 = vmatprep.subr.bf16.mxu1 %v2723_v54  ;;  %v2567_v51 = vunpack.c.h.s8.bf16 %v2217_v26  ;;  %v2575_v54 = vunpack.c.l.s8.bf16 %v2225_v25  ;;  %v2582_v13 = vunpack.c.h.s8.bf16 %v2225_v25  ;;  %v2280_v26 = vld [vmem:[#allocation10 + $0x5d0] sm:$0xff] }
 0x625   :  { %v2288_v25 = vld [vmem:[#allocation10 + $0x610] sm:$0xff] }
 0x626   :  { %3180 = vmatpush1.bf16.msra.mxu0 %v2497_v61  ;;  %v2232_v61 = vld [vmem:[#allocation10 + $0x450] sm:$0xff] }
 0x627   :  { %3731 = vmatpush3.bf16.msra.mxu1 %v2667_v7  ;;  %3181 = vmatprep.subr.bf16.mxu0 %v2505_v14  ;;  %v2589_v7 = vunpack.c.l.s8.bf16 %v2232_v61  ;;  %v2231_v14 = vld [vmem:[#allocation10 + $0x448] sm:$0xff] }
 0x628   :  { %3732 = vmatprep.subr.bf16.mxu1 %v2730_v18  ;;  %v2588_v19 = vunpack.c.l.s8.bf16 %v2231_v14  ;;  %v2596_v18 = vunpack.c.h.s8.bf16 %v2232_v61 }
 0x62a   :  { %3182 = vmatpush1.bf16.msra.mxu0 %v2504_v41  ;;  %v2595_v41 = vunpack.c.h.s8.bf16 %v2231_v14 }
 0x62b   :  { %3733 = vmatpush3.bf16.msra.mxu1 %v2674_v62  ;;  %3183 = vmatprep.subr.bf16.mxu0 %v2512_v29  ;;  %v2603_v62 = vunpack.c.l.s8.bf16 %v2239_v36  ;;  %v2238_v29 = vld [vmem:[#allocation10 + $0x480] sm:$0xff] }
 0x62c   :  { %3734 = vmatprep.subr.bf16.mxu1 %v2737_v50  ;;  %v2602_v50 = vunpack.c.l.s8.bf16 %v2238_v29 }
 0x62e   :  { %3184 = vmatpush1.bf16.msra.mxu0 %v2511_v24  ;;  %v2609_v24 = vunpack.c.h.s8.bf16 %v2238_v29 }
 0x62f   :  { %3735 = vmatpush3.bf16.msra.mxu1 %v2681_v0  ;;  %3185 = vmatprep.subr.bf16.mxu0 %v2519_v45  ;;  %v2617_v0 = vunpack.c.l.s8.bf16 %v2246_v44  ;;  %v2245_v45 = vld [vmem:[#allocation10 + $0x4b8] sm:$0xff] }
 0x630   :  { %3736 = vmatprep.subr.bf16.mxu1 %v2744_v22  ;;  %v2616_v57 = vunpack.c.l.s8.bf16 %v2245_v45  ;;  %v2624_v22 = vunpack.c.h.s8.bf16 %v2246_v44 }
 0x632   :  { %3186 = vmatpush1.bf16.msra.mxu0 %v2518_v59  ;;  %v2623_v59 = vunpack.c.h.s8.bf16 %v2245_v45 }
 0x633   :  { %3737 = vmatpush3.bf16.msra.mxu1 %v2688_v30  ;;  %3187 = vmatprep.subr.bf16.mxu0 %v2526_v55  ;;  %v2631_v30 = vunpack.c.l.s8.bf16 %v2253_v34  ;;  %v2252_v55 = vld [vmem:[#allocation10 + $0x4f0] sm:$0xff]  ;;  %v2708_v34 = vunpack.c.h.s8.bf16 %v2288_v25 }
 0x634   :  { %3738 = vmatprep.subr.bf16.mxu1 %v2751_v9  ;;  %v2630_v9 = vunpack.c.l.s8.bf16 %v2252_v55 }
 0x636   :  { %3188 = vmatpush1.bf16.msra.mxu0 %v2525_v53  ;;  %v2637_v53 = vunpack.c.h.s8.bf16 %v2252_v55 }
 0x637   :  { %3739 = vmatpush3.bf16.msra.mxu1 %v2695_v37  ;;  %3189 = vmatprep.subr.bf16.mxu0 %v2533_v6  ;;  %v2645_v37 = vunpack.c.l.s8.bf16 %v2260_v15  ;;  %v2259_v6 = vld [vmem:[#allocation10 + $0x528] sm:$0xff] }
 0x638   :  { %3740 = vmatprep.subr.bf16.mxu1 %v2758_v40  ;;  %v2644_v46 = vunpack.c.l.s8.bf16 %v2259_v6  ;;  %v2652_v40 = vunpack.c.h.s8.bf16 %v2260_v15 }
 0x63a   :  { %3190 = vmatpush1.bf16.msra.mxu0 %v2532_v43  ;;  %v2651_v43 = vunpack.c.h.s8.bf16 %v2259_v6 }
 0x63b   :  { %3741 = vmatpush3.bf16.msra.mxu1 %v2702_v4  ;;  %3191 = vmatprep.subr.bf16.mxu0 %v2540_v56  ;;  %v2659_v4 = vunpack.c.l.s8.bf16 %v2267_v38  ;;  %v2266_v56 = vld [vmem:[#allocation10 + $0x560] sm:$0xff] }
 0x63c   :  { %3742 = vmatprep.subr.bf16.mxu1 %v2765_v3  ;;  %v2658_v3 = vunpack.c.l.s8.bf16 %v2266_v56  ;;  %v2294_v38 = vld [vmem:[#allocation10 + $0x640] sm:$0xff] }
 0x63e   :  { %3192 = vmatpush1.bf16.msra.mxu0 %v2539_v17  ;;  %v2274_v17 = vld [vmem:[#allocation10 + $0x5a0] sm:$0xff] }
 0x63f   :  { %3743 = vmatpush3.bf16.msra.mxu1 %v2709_v60  ;;  %3204 = vmatprep.subr.bf16.mxu0 %v2547_v1  ;;  %v2665_v60 = vunpack.c.h.s8.bf16 %v2266_v56  ;;  %v2673_v1 = vunpack.c.l.s8.bf16 %v2274_v17 }
 0x641   :  { %3194 = vmatmul.mubr.bf16.vlgmr.msra.gmra.mrb[20].mxu0 %v4527_v21  ;;  %v2574_v21 = vunpack.c.l.s8.bf16 %v2224_v47 }
 0x642   :  { %3446 = vmatmul.mubr.bf16.vlgmr.msra.gmra.mrb[36].mxu1 %v4907_v12  ;;  %3205 = vmatpush1.bf16.msra.mxu0 %v2546_v11  ;;  %v2672_v11 = vunpack.c.l.s8.bf16 %v2273_v49 }
 0x643   :  { %3236 = vmatprep.mubr.bf16.mxu0 %v4885_v5  ;;  %3206 = vmatprep.subr.bf16.mxu0 %v2554_v16  ;;  %v2581_v5 = vunpack.c.h.s8.bf16 %v2224_v47  ;;  %v2680_v16 = vunpack.c.h.s8.bf16 %v2274_v17 }
 0x646   :  { %3207 = vmatpush1.bf16.msra.mxu0 %v2553_v28  ;;  %v2679_v28 = vunpack.c.h.s8.bf16 %v2273_v49 }
 0x647   :  { %3208 = vmatprep.subr.bf16.mxu0 %v2561_v42  ;;  %v2687_v42 = vunpack.c.l.s8.bf16 %v2281_v27 }
 0x64a   :  { %3209 = vmatpush1.bf16.msra.mxu0 %v2560_v32  ;;  %v2686_v32 = vunpack.c.l.s8.bf16 %v2280_v26 }
 0x64b   :  { %3210 = vmatprep.subr.bf16.mxu0 %v2568_v23  ;;  %v4936_v23 = vld [vmem:[%s4995_s4 + $0x35] sm:$0xff] }
 0x64c   :  { %v3522_v29 = vrot.slane %v4936_v23, %v4311_v8 }
 0x64e   :  { %3211 = vmatpush1.bf16.msra.mxu0 %v2567_v51 }
 0x64f   :  { %3212 = vmatprep.subr.bf16.mxu0 %v2575_v54 }
 0x652   :  { %3213 = vmatpush1.bf16.msra.mxu0 %v2574_v21  ;;  %v2693_v21 = vunpack.c.h.s8.bf16 %v2280_v26 }
 0x653   :  { %3214 = vmatprep.subr.bf16.mxu0 %v2582_v13  ;;  %v3510_v13 = vrot.slane %v4936_v23, %v4204_v31 }
 0x656   :  { %3215 = vmatpush1.bf16.msra.mxu0 %v2581_v5  ;;  %v2701_v5 = vunpack.c.l.s8.bf16 %v2288_v25  ;;  %v2309_v25 = vld [vmem:[#allocation10 + $0x6b8] sm:$0xff] }
 0x657   :  { %3216 = vmatprep.subr.bf16.mxu0 %v2589_v7  ;;  %v2287_v7 = vld [vmem:[#allocation10 + $0x608] sm:$0xff] }
 0x658   :  { %v2707_v6 = vunpack.c.h.s8.bf16 %v2287_v7 }
 0x65a   :  { %3217 = vmatpush1.bf16.msra.mxu0 %v2588_v19  ;;  %v3518_v19 = vrot.slane %v4936_v23, %v4308_v10 }
 0x65b   :  { %3218 = vmatprep.subr.bf16.mxu0 %v2596_v18  ;;  %v3514_v18 = vrot.slane %v4936_v23, %v4210_v33 }
 0x65e   :  { %3219 = vmatpush1.bf16.msra.mxu0 %v2595_v41 }
 0x65f   :  { %3220 = vmatprep.subr.bf16.mxu0 %v2603_v62 }
 0x662   :  { %3221 = vmatpush1.bf16.msra.mxu0 %v2602_v50 }
 0x663   :  { %3222 = vmatprep.subr.bf16.mxu0 %v2610_v48 }
 0x666   :  { %3223 = vmatpush1.bf16.msra.mxu0 %v2609_v24  ;;  %v2700_v24 = vunpack.c.l.s8.bf16 %v2287_v7 }
 0x667   :  { %3224 = vmatprep.subr.bf16.mxu0 %v2617_v0 }
 0x66a   :  { %3225 = vmatpush1.bf16.msra.mxu0 %v2616_v57 }
 0x66b   :  { %3226 = vmatprep.subr.bf16.mxu0 %v2624_v22 }
 0x66e   :  { %3227 = vmatpush1.bf16.msra.mxu0 %v2623_v59 }
 0x66f   :  { %3228 = vmatprep.subr.bf16.mxu0 %v2631_v30 }
 0x672   :  { %3229 = vmatpush1.bf16.msra.mxu0 %v2630_v9 }
 0x673   :  { %3230 = vmatprep.subr.bf16.mxu0 %v2638_v39  ;;  %v2295_v39 = vld [vmem:[#allocation10 + $0x648] sm:$0xff] }
 0x674   :  { %v2722_v56 = vunpack.c.h.s8.bf16 %v2295_v39 }
 0x676   :  { %3231 = vmatpush1.bf16.msra.mxu0 %v2637_v53 }
 0x677   :  { %3232 = vmatprep.subr.bf16.mxu0 %v2645_v37 }
 0x67a   :  { %3233 = vmatpush1.bf16.msra.mxu0 %v2644_v46 }
 0x67b   :  { %3234 = vmatprep.subr.bf16.mxu0 %v2652_v40  ;;  %v2715_v40 = vunpack.c.l.s8.bf16 %v2295_v39 }
 0x67e   :  { %3235 = vmatpush1.bf16.msra.mxu0 %v2651_v43 }
 0x67f   :  { %3247 = vmatprep.subr.bf16.mxu0 %v2659_v4  ;;  %v2714_v4 = vunpack.c.l.s8.bf16 %v2294_v38 }
 0x681   :  { %3237 = vmatmul.mubr.bf16.vlgmr.msra.gmra.mrb[20].mxu0 %v4881_v20  ;;  %v4931_v20 = vld [vmem:[%s4995_s4 + $0x3c] sm:$0xff] }
 0x682   :  { %3248 = vmatpush1.bf16.msra.mxu0 %v2658_v3  ;;  %3279 = vmatprep.mubr.bf16.mxu0 %v4900_v35  ;;  %v2694_v35 = vunpack.c.h.s8.bf16 %v2281_v27  ;;  %v3459_v51 = vrot.slane %v4931_v20, %v4204_v31  ;;  %v3467_v54 = vrot.slane %v4931_v20, %v4308_v10  ;;  %v3463_v47 = vrot.slane %v4931_v20, %v4210_v33  ;;  %v2302_v3 = vld [vmem:[#allocation10 + $0x680] sm:$0xff] }
 0x683   :  { %3249 = vmatprep.subr.bf16.mxu0 %v2666_v52  ;;  %v3471_v61 = vrot.slane %v4931_v20, %v4311_v8  ;;  %v2721_v52 = vunpack.c.h.s8.bf16 %v2294_v38 }
 0x686   :  { %3250 = vmatpush1.bf16.msra.mxu0 %v2665_v60  ;;  %v2729_v60 = vunpack.c.l.s8.bf16 %v2302_v3 }
 0x687   :  { %3251 = vmatprep.subr.bf16.mxu0 %v2673_v1  ;;  %v2301_v1 = vld [vmem:[#allocation10 + $0x678] sm:$0xff] }
 0x68a   :  { %3252 = vmatpush1.bf16.msra.mxu0 %v2672_v11 }
 0x68b   :  { %3253 = vmatprep.subr.bf16.mxu0 %v2680_v16 }
 0x68e   :  { %3254 = vmatpush1.bf16.msra.mxu0 %v2679_v28  ;;  %v2728_v28 = vunpack.c.l.s8.bf16 %v2301_v1 }
 0x68f   :  { %3255 = vmatprep.subr.bf16.mxu0 %v2687_v42 }
 0x692   :  { %3256 = vmatpush1.bf16.msra.mxu0 %v2686_v32  ;;  %v2736_v32 = vunpack.c.h.s8.bf16 %v2302_v3 }
 0x693   :  { %3257 = vmatprep.subr.bf16.mxu0 %v2694_v35 }
 0x694   :  { %v2937_v14 = vpop.f32.mrb[16].mxu0 }
 0x695   :  { %v3491_v36 = vmul.f32 %v3459_v51, %v2937_v14  ;;  %v3109_v41 = vpop.f32.mrb[20].mxu1  ;;  %v2939_v62 = vpop.f32.mrb[17].mxu0  ;;  %v2750_v14 = vunpack.c.h.s8.bf16 %v2309_v25 }
 0x696   :  { %v3493_v31 = vmul.f32 %v3467_v54, %v3109_v41  ;;  %v3492_v50 = vmul.f32 %v3463_v47, %v2939_v62  ;;  %v3111_v48 = vpop.f32.mrb[21].mxu1  ;;  %v2941_v44 = vpop.f32.mrb[18].mxu0  ;;  %3258 = vmatpush1.bf16.msra.mxu0 %v2693_v21  ;;  %v2735_v21 = vunpack.c.h.s8.bf16 %v2301_v1  ;;  %v2315_v41 = vld [vmem:[#allocation10 + $0x6e8] sm:$0xff] }
 0x697   :  { %v3542_v0 = vadd.f32 %v3510_v13, %v3491_v36  ;;  %v3494_v45 = vmul.f32 %v3471_v61, %v3111_v48  ;;  %v3498_v57 = vmul.f32 %v3459_v51, %v2941_v44  ;;  %v3113_v22 = vpop.f32.mrb[22].mxu1  ;;  %v2943_v10 = vpop.f32.mrb[19].mxu0  ;;  %3259 = vmatprep.subr.bf16.mxu0 %v2701_v5  ;;  %v2308_v5 = vld [vmem:[#allocation10 + $0x6b0] sm:$0xff] }
 0x698   :  { %v3544_v33 = vadd.f32 %v3518_v19, %v3493_v31  ;;  %v3543_v59 = vadd.f32 %v3514_v18, %v3492_v50  ;;  %v3500_v30 = vmul.f32 %v3467_v54, %v3113_v22  ;;  %v3499_v55 = vmul.f32 %v3463_v47, %v2943_v10  ;;  %v3115_v9 = vpop.f32.mrb[23].mxu1 }
 0x699   :  { %3866 = vtanh.f32 %v3542_v0  ;;  %v3545_v8 = vadd.f32 %v3522_v29, %v3494_v45  ;;  %v3549_v15 = vadd.f32 %v3510_v13, %v3498_v57  ;;  %v3501_v53 = vmul.f32 %v3471_v61, %v3115_v9 }
 0x69a   :  { %3868 = vtanh.f32 %v3544_v33  ;;  %v3551_v37 = vadd.f32 %v3518_v19, %v3500_v30  ;;  %3260 = vmatpush1.bf16.msra.mxu0 %v2700_v24  ;;  %v3550_v46 = vadd.f32 %v3514_v18, %v3499_v55  ;;  %v2743_v61 = vunpack.c.l.s8.bf16 %v2309_v25  ;;  %v2316_v19 = vld [vmem:[#allocation10 + $0x6f0] sm:$0xff] }
 0x69b   :  { %3870 = vtanh.f32 %v3543_v59  ;;  %3261 = vmatprep.subr.bf16.mxu0 %v2708_v34  ;;  %v3552_v43 = vadd.f32 %v3522_v29, %v3501_v53  ;;  %v2742_v7 = vunpack.c.l.s8.bf16 %v2308_v5  ;;  %v2749_v18 = vunpack.c.h.s8.bf16 %v2308_v5 }
 0x69c   :  { %3872 = vtanh.f32 %v3545_v8  ;;  %v2757_v36 = vunpack.c.l.s8.bf16 %v2316_v19  ;;  %v2756_v31 = vunpack.c.l.s8.bf16 %v2315_v41  ;;  %v2764_v44 = vunpack.c.h.s8.bf16 %v2316_v19 }
 0x69d   :  { %3874 = vtanh.f32 %v3549_v15  ;;  %v2763_v45 = vunpack.c.h.s8.bf16 %v2315_v41 }
 0x69e   :  { %3876 = vtanh.f32 %v3551_v37  ;;  %3262 = vmatpush1.bf16.msra.mxu0 %v2707_v6 }
 0x69f   :  { %3878 = vtanh.f32 %v3550_v46  ;;  %3263 = vmatprep.subr.bf16.mxu0 %v2715_v40 }
 0x6a0   :  { %3880 = vtanh.f32 %v3552_v43 }
 0x6a2   :  { %3264 = vmatpush1.bf16.msra.mxu0 %v2714_v4 }
 0x6a3   :  { %v3867_v17 = vpop.eup %3866  ;;  %3265 = vmatprep.subr.bf16.mxu0 %v2722_v56 }
 0x6a4   :  { %v3869_v49 = vpop.eup %3868 }
 0x6a5   :  { %v3871_v11 = vpop.eup %3870 }
 0x6a6   :  { %v3873_v16 = vpop.eup %3872  ;;  %v3650_v27 = vpack.c.bf16 %v3871_v11, %v3867_v17  ;;  %3266 = vmatpush1.bf16.msra.mxu0 %v2721_v52  ;;  %v3534_v52 = vrot.slane %v4936_v23, %v4539_v58 }
 0x6a7   :  { %v3875_v42 = vpop.eup %3874  ;;  %v3651_v26 = vpack.c.bf16 %v3873_v16, %v3869_v49  ;;  %3267 = vmatprep.subr.bf16.mxu0 %v2729_v60 }
 0x6a8   :  { %v3877_v35 = vpop.eup %3876  ;;  %3614 = vst [vmem:[%s5002_s11] sm:$0xff] %v3650_v27 }
 0x6a9   :  { %v3879_v51 = vpop.eup %3878  ;;  %3615 = vst [vmem:[%s5002_s11 + $0x8] sm:$0xff] %v3651_v26 }
 0x6aa   :  { %v3881_v54 = vpop.eup %3880  ;;  %v3654_v47 = vpack.c.bf16 %v3879_v51, %v3875_v42  ;;  %3268 = vmatpush1.bf16.msra.mxu0 %v2728_v28  ;;  %v3530_v51 = vrot.slane %v4936_v23, %v4547_v2 }
 0x6ab   :  { %v3655_v13 = vpack.c.bf16 %v3881_v54, %v3877_v35  ;;  %3269 = vmatprep.subr.bf16.mxu0 %v2736_v32  ;;  %v3479_v32 = vrot.slane %v4931_v20, %v4547_v2  ;;  %v3526_v35 = vrot.slane %v4936_v23, %v4536_v63 }
 0x6ac   :  { %3618 = vst [vmem:[%s5002_s11 + $0x1c] sm:$0xff] %v3654_v47 }
 0x6ad   :  { %3619 = vst [vmem:[%s5002_s11 + $0x24] sm:$0xff] %v3655_v13 }
 0x6ae   :  { %3270 = vmatpush1.bf16.msra.mxu0 %v2735_v21 }
 0x6af   :  { %3271 = vmatprep.subr.bf16.mxu0 %v2743_v61 }
 0x6b2   :  { %3272 = vmatpush1.bf16.msra.mxu0 %v2742_v7 }
 0x6b3   :  { %3273 = vmatprep.subr.bf16.mxu0 %v2750_v14 }
 0x6b5   :  { %v3678_v62 = vpop.f32.mrb[24].mxu1 }
 0x6b6   :  { %v3679_v29 = vpop.f32.mrb[25].mxu1  ;;  %3274 = vmatpush1.bf16.msra.mxu0 %v2749_v18 }
 0x6b7   :  { %v3680_v50 = vadd.f32 %v3679_v29, %v3678_v62  ;;  %v3681_v48 = vpop.f32.mrb[26].mxu1  ;;  %3275 = vmatprep.subr.bf16.mxu0 %v2757_v36 }
 0x6b8   :  { %v3682_v24 = vpop.f32.mrb[27].mxu1 }
 0x6b9   :  { %v3683_v0 = vadd.f32 %v3682_v24, %v3681_v48 }
 0x6ba   :  { %3276 = vmatpush1.bf16.msra.mxu0 %v2756_v31 }
 0x6bb   :  { %3277 = vmatprep.subr.bf16.mxu0 %v2764_v44 }
 0x6be   :  { %3278 = vmatpush1.bf16.msra.mxu0 %v2763_v45 }
 0x6c1   :  { %3280 = vmatmul.mubr.bf16.vlgmr.msra.gmra.mrb[20].mxu0 %v4907_v12  ;;  %v3483_v12 = vrot.slane %v4931_v20, %v4539_v58  ;;  %v3475_v58 = vrot.slane %v4931_v20, %v4536_v63 }
 0x6d5   :  { %v3700_v57 = vpop.f32.mrb[28].mxu1 }
 0x6d6   :  { %v3701_v22 = vpop.f32.mrb[29].mxu1 }
 0x6d7   :  { %v3702_v10 = vadd.f32 %v3701_v22, %v3700_v57  ;;  %v3703_v34 = vpop.f32.mrb[30].mxu1 }
 0x6d8   :  { %v3704_v33 = vpop.f32.mrb[31].mxu1 }
 0x6d9   :  { %v3366_v59 = vadd.f32 %v3702_v10, %v3680_v50  ;;  %v3705_v30 = vadd.f32 %v3704_v33, %v3703_v34 }
 0x6db   :  { %v3369_v55 = vadd.f32 %v3705_v30, %v3683_v0 }
 0x6f5   :  { %v3722_v9 = vpop.f32.mrb[32].mxu1 }
 0x6f6   :  { %v3723_v39 = vpop.f32.mrb[33].mxu1 }
 0x6f7   :  { %v3724_v8 = vadd.f32 %v3723_v39, %v3722_v9  ;;  %v3725_v15 = vpop.f32.mrb[34].mxu1 }
 0x6f8   :  { %v3726_v53 = vpop.f32.mrb[35].mxu1 }
 0x6f9   :  { %v3407_v37 = vadd.f32 %v3724_v8, %v3366_v59  ;;  %v3727_v6 = vadd.f32 %v3726_v53, %v3725_v15 }
 0x6fb   :  { %v3410_v46 = vadd.f32 %v3727_v6, %v3369_v55 }
 0x715   :  { %v3744_v40 = vpop.f32.mrb[36].mxu1 }
 0x716   :  { %v3745_v38 = vpop.f32.mrb[37].mxu1 }
 0x717   :  { %v3746_v43 = vadd.f32 %v3745_v38, %v3744_v40  ;;  %v3747_v4 = vpop.f32.mrb[38].mxu1 }
 0x718   :  { %v3748_v56 = vpop.f32.mrb[39].mxu1 }
 0x719   :  { %v3448_v3 = vadd.f32 %v3746_v43, %v3407_v37  ;;  %v3749_v17 = vadd.f32 %v3748_v56, %v3747_v4 }
 0x71b   :  { %v3497_v60 = vmul.f32 %v3483_v12, %v3448_v3  ;;  %v3451_v1 = vadd.f32 %v3749_v17, %v3410_v46 }
 0x71d   :  { %v3548_v49 = vadd.f32 %v3534_v52, %v3497_v60  ;;  %v3504_v11 = vmul.f32 %v3483_v12, %v3451_v1 }
 0x71f   :  { %3882 = vtanh.f32 %v3548_v49  ;;  %v3555_v16 = vadd.f32 %v3534_v52, %v3504_v11 }
 0x721   :  { %3884 = vtanh.f32 %v3555_v16 }
 0x729   :  { %v3883_v27 = vpop.eup %3882 }
 0x72a   :  { %v3653_v28 = vpack.c.bf16 %v3883_v27, %v3883_v27 }
 0x72b   :  { %v3885_v42 = vpop.eup %3884 }
 0x72c   :  { %3617 = vst [vmem:[%s5002_s11 + $0x18] sm:$0xf] %v3653_v28  ;;  %v3657_v26 = vpack.c.bf16 %v3885_v42, %v3885_v42 }
 0x72e   :  { %3621 = vst [vmem:[%s5002_s11 + $0x34] sm:$0xf] %v3657_v26 }
 0x794   :  { %v3281_v25 = vpop.f32.mrb[20].mxu0 }
 0x795   :  { %v3495_v54 = vmul.f32 %v3475_v58, %v3281_v25  ;;  %v3283_v47 = vpop.f32.mrb[21].mxu0 }
 0x796   :  { %v3496_v21 = vmul.f32 %v3479_v32, %v3283_v47  ;;  %v3285_v13 = vpop.f32.mrb[22].mxu0 }
 0x797   :  { %v3546_v61 = vadd.f32 %v3526_v35, %v3495_v54  ;;  %v3502_v5 = vmul.f32 %v3475_v58, %v3285_v13  ;;  %v3287_v7 = vpop.f32.mrb[23].mxu0 }
 0x798   :  { %v3547_v14 = vadd.f32 %v3530_v51, %v3496_v21  ;;  %v3503_v19 = vmul.f32 %v3479_v32, %v3287_v7 }
 0x799   :  { %3886 = vtanh.f32 %v3546_v61  ;;  %v3553_v18 = vadd.f32 %v3526_v35, %v3502_v5 }
 0x79a   :  { %3888 = vtanh.f32 %v3547_v14  ;;  %v3554_v20 = vadd.f32 %v3530_v51, %v3503_v19 }
 0x79b   :  { %3890 = vtanh.f32 %v3553_v18 }
 0x79c   :  { %3892 = vtanh.f32 %v3554_v20 }
 0x7a3   :  { %v3887_v63 = vpop.eup %3886 }
 0x7a4   :  { %v3889_v36 = vpop.eup %3888 }
 0x7a5   :  { %v3891_v41 = vpop.eup %3890  ;;  %v3652_v62 = vpack.c.bf16 %v3889_v36, %v3887_v63 }
 0x7a6   :  { %v3893_v2 = vpop.eup %3892 }
 0x7a7   :  { %3616 = vst [vmem:[%s5002_s11 + $0x10] sm:$0xff] %v3652_v62  ;;  %v3656_v23 = vpack.c.bf16 %v3893_v2, %v3891_v41 }
 0x7a9   :  { %3620 = vst [vmem:[%s5002_s11 + $0x2c] sm:$0xff] %v3656_v23 }
 0x7aa   :  { %3626 = vsyncpa [#allocation4], 1 }
 0x7ab   :  { %3627 = vsyncpa [#allocation6], 1 }
 0x7ac   :  { %3628 = vsyncpa [#allocation9], 1 }

</bundles_post_ra>
